<compile_context>
chip_gen: v7x
topology: tpu7x:2x2x1
jax: 0.10.0
libtpu: 0.0.40
codegen_flags: <defaults>
</compile_context>

<pallas_src>
import functools

import jax
import jax.numpy as jnp
from jax.experimental import pallas as pl
from jax.experimental.pallas import tpu as pltpu


def _round_up(x, m):
    return (x + m - 1) // m * m


# --------------------------------------------------------------------------
# Generic [M,K] @ [K,N] + bias, f32 accumulate, weight-resident grid order.
# --------------------------------------------------------------------------
def _matmul_bias_kernel(x_ref, w_ref, b_ref, o_ref):
    o_ref[...] = (jnp.dot(x_ref[...], w_ref[...],
                          preferred_element_type=jnp.float32)
                  + b_ref[...]).astype(o_ref.dtype)


def matmul_bias_pallas(x, w, b, *, tm=256, tn=256, out_dtype=jnp.float32):
    """x: [M, K], w: [K, N], b: [N] or [1, N] -> [M, N] out_dtype.

    Grid is (N tiles, M tiles) with M innermost so the (K, tn) weight tile
    index is constant across consecutive iterations and is NOT re-streamed
    from HBM per M tile (the perf-review W_lin fix).
    """
    M, K = x.shape
    N = w.shape[1]
    tm = min(tm, _round_up(M, 8))
    tn = min(tn, _round_up(N, 128))
    Mp = _round_up(M, tm)
    Np = _round_up(N, tn)
    xp = x if Mp == M else jnp.zeros((Mp, K), x.dtype).at[:M].set(x)
    wp = w if Np == N else jnp.zeros((K, Np), w.dtype).at[:, :N].set(w)
    b2 = b.reshape(1, -1).astype(jnp.float32)
    bp = b2 if Np == N else jnp.zeros((1, Np), jnp.float32).at[:, :N].set(b2)

    out = pl.pallas_call(
        _matmul_bias_kernel,
        out_shape=jax.ShapeDtypeStruct((Mp, Np), out_dtype),
        grid_spec=pltpu.PrefetchScalarGridSpec(
            num_scalar_prefetch=0,
            grid=(Np // tn, Mp // tm),            # j outer, i inner
            in_specs=[
                pl.BlockSpec((tm, K), lambda j, i: (i, 0)),
                pl.BlockSpec((K, tn), lambda j, i: (0, j)),   # resident per j
                pl.BlockSpec((1, tn), lambda j, i: (0, j)),
            ],
            out_specs=pl.BlockSpec((tm, tn), lambda j, i: (i, j)),
        ),
        compiler_params=pltpu.CompilerParams(
            dimension_semantics=("parallel", "parallel"),
            vmem_limit_bytes=64 * 1024 * 1024,
        ),
    )(xp, wp, bp)
    return out[:M, :N]


# --------------------------------------------------------------------------
# Serial LSTM recurrence, time-major blocks: per grid step, TS fused steps of
#   gates = gates_x[s] + h @ W_hh^T ; standard i,f,g,o update (gate math f32).
# --------------------------------------------------------------------------
def _lstm_recurrence_kernel(gx_ref, whh_ref, h_out_ref, h_scr, c_scr, *,
                            hidden, ts):
    """gx_ref   : [TS, tb, 4Hp] bf16  precomputed x@W_ih^T + (b_ih+b_hh)
       whh_ref  : [Hp, 4Hp]     bf16  W_hh^T (gate-blocked, order i,f,g,o)
       h_out_ref: [TS, tb, Hp]  bf16  hidden states for this time chunk
       h_scr/c_scr: [tb, Hp]    f32   recurrent state, persists across t-steps
    """
    H = hidden  # multiple of 128 -> gate slices are lane-aligned

    @pl.when(pl.program_id(1) == 0)     # start of the time axis for this batch block
    def _():
        h_scr[...] = jnp.zeros_like(h_scr)
        c_scr[...] = jnp.zeros_like(c_scr)

    whh = whh_ref[...]

    def step(s, carry):
        h = h_scr[...]
        c = c_scr[...]
        gates = gx_ref[s].astype(jnp.float32) + jnp.dot(
            h.astype(jnp.bfloat16), whh,
            preferred_element_type=jnp.float32)                 # [tb, 4Hp] f32
        i_g = jax.nn.sigmoid(gates[:, 0 * H:1 * H])
        f_g = jax.nn.sigmoid(gates[:, 1 * H:2 * H])
        g_g = jnp.tanh(gates[:, 2 * H:3 * H])
        o_g = jax.nn.sigmoid(gates[:, 3 * H:4 * H])
        c_new = f_g * c + i_g * g_g
        h_new = o_g * jnp.tanh(c_new)
        h_scr[...] = h_new
        c_scr[...] = c_new
        h_out_ref[s] = h_new.astype(h_out_ref.dtype)            # full-tile store
        return carry

    jax.lax.fori_loop(0, ts, step, 0, unroll=True)


def lstm_hidden_states_pallas(gx, whhT, *, ts):
    """gx: [Tp, Bp, 4Hp] bf16 precomputed gate inputs -> h_seq [Tp, Bp, Hp] bf16."""
    Tp, Bp, G = gx.shape
    Hp = G // 4
    assert Tp % ts == 0
    # Batch blocks are independent: split across v7x's two TensorCores when
    # the batch allows (each block stays a multiple of 8 sublanes).
    nb = 2 if (Bp % 16 == 0) else 1
    tb = Bp // nb
    kernel = functools.partial(_lstm_recurrence_kernel, hidden=Hp, ts=ts)
    return pl.pallas_call(
        kernel,
        out_shape=jax.ShapeDtypeStruct((Tp, Bp, Hp), jnp.bfloat16),
        grid_spec=pltpu.PrefetchScalarGridSpec(
            num_scalar_prefetch=0,
            grid=(nb, Tp // ts),
            in_specs=[
                pl.BlockSpec((ts, tb, G), lambda b, t: (t, b, 0)),  # gate inputs
                # TODO(synk): pipeline_mode=pl.Buffered(1) for this grid-invariant
                # W_hh block once single-buffering is confirmed stable; bf16 cast
                # already halves its VMEM footprint.
                pl.BlockSpec((Hp, G), lambda b, t: (0, 0)),         # W_hh^T
            ],
            out_specs=pl.BlockSpec((ts, tb, Hp), lambda b, t: (t, b, 0)),
            scratch_shapes=[
                pltpu.VMEM((tb, Hp), jnp.float32),   # h
                pltpu.VMEM((tb, Hp), jnp.float32),   # c
            ],
        ),
        compiler_params=pltpu.CompilerParams(
            dimension_semantics=("parallel", "arbitrary"),   # batch || , time serial
            vmem_limit_bytes=64 * 1024 * 1024,
        ),
    )(gx, whhT)


# --------------------------------------------------------------------------
# One-time parameter preprocessing (hoisted off the per-forward path).
# Padding is exact: padded gate columns have zero weights/bias.
# --------------------------------------------------------------------------
def _pad_gate_axis0(a, H, Hp):
    """Pad the leading 4H gate axis of a [4H, ...] array to [4Hp, ...]."""
    a4 = a.reshape((4, H) + a.shape[1:])
    out = jnp.zeros((4, Hp) + a.shape[1:], a.dtype)
    return out.at[:, :H].set(a4).reshape((4 * Hp,) + a.shape[1:])


def preprocess_params(params, *, proj_tile_n=256):
    """Pad / transpose / bf16-cast weights once; reuse across forward calls."""
    V, H = params["w_lin"].shape
    Hp = _round_up(H, 128)          # lane-aligned gate slices
    Vp = _round_up(V, proj_tile_n)  # lane-dense projection output tiles

    wihT = jnp.transpose(_pad_gate_axis0(params["w_ih"], H, Hp))        # [E, 4Hp]
    whhT = jnp.zeros((Hp, 4 * Hp), jnp.float32).at[:H].set(
        jnp.transpose(_pad_gate_axis0(params["w_hh"], H, Hp)))          # [Hp, 4Hp]
    b_gates = _pad_gate_axis0(params["b_ih"] + params["b_hh"],
                              H, Hp).reshape(1, 4 * Hp)                 # [1, 4Hp]
    wlinT = jnp.zeros((Hp, Vp), jnp.float32).at[:H, :V].set(
        jnp.transpose(params["w_lin"]))                                 # [Hp, Vp]
    b_lin = jnp.zeros((1, Vp), jnp.float32).at[:, :V].set(
        params["b_lin"].reshape(1, V))                                  # [1, Vp]

    return {
        "word_emb": params["word_emb"],                 # f32 gather table
        "wihT": wihT.astype(jnp.bfloat16),
        "whhT": whhT.astype(jnp.bfloat16),
        "b_gates": b_gates.astype(jnp.float32),
        "wlinT": wlinT.astype(jnp.bfloat16),
        "b_lin": b_lin.astype(jnp.float32),
    }


# --------------------------------------------------------------------------
# Full forward pass
# --------------------------------------------------------------------------
def decoder_rnn_b_forward(features, captions, prep, *, time_steps_per_block=16):
    """features: [B, E] f32, captions: [B, T] int32 -> logits [B, T, V] f32."""
    B, E = features.shape
    cap = captions[:, :-1]                                   # [B, T-1]
    T = cap.shape[1] + 1
    V = prep["word_emb"].shape[0]
    Hp = prep["whhT"].shape[0]
    G = 4 * Hp
    Vp = prep["wlinT"].shape[1]

    ts = time_steps_per_block
    Bp = _round_up(B, 8)            # sublane-aligned batch
    Tp = _round_up(T, ts)

    # --- embedding gather + image-feature concat, emitted TIME-MAJOR (glue) ---
    emb_tm = jnp.take(prep["word_emb"], jnp.transpose(cap), axis=0)     # [T-1,B,E]
    inputs_tm = jnp.concatenate([features[None, :, :], emb_tm], axis=0) # [T, B, E]
    inputs_p = jnp.zeros((Tp, Bp, E), jnp.bfloat16).at[:T, :B].set(
        inputs_tm.astype(jnp.bfloat16))

    # 1) hoisted input-gate precompute: one large parallel bf16 matmul
    gx = matmul_bias_pallas(inputs_p.reshape(Tp * Bp, E), prep["wihT"],
                            prep["b_gates"], out_dtype=jnp.bfloat16)
    gx = gx.reshape(Tp, Bp, G)                                          # bf16

    # 2) serial recurrence (only h @ W_hh^T per step), TS steps per grid iter
    h_seq = lstm_hidden_states_pallas(gx, prep["whhT"], ts=ts)          # [Tp,Bp,Hp]

    # 3) hoisted vocab projection: weight-resident, lane-dense parallel matmul.
    #    Small bf16 transpose of h_seq so the (large) logits come out batch-major.
    h_bm = jnp.transpose(h_seq, (1, 0, 2)).reshape(Bp * Tp, Hp)
    logits = matmul_bias_pallas(h_bm, prep["wlinT"], prep["b_lin"],
                                out_dtype=jnp.float32, tm=4096)
    return logits.reshape(Bp, Tp, Vp)[:B, :T, :V]                       # [B, T, V]


# --------------------------------------------------------------------------
# Pure-JAX reference (lax.scan LSTM, f32) for correctness check
# --------------------------------------------------------------------------
def _reference_forward(features, captions, params):
    cap = captions[:, :-1]
    embeds = jnp.take(params["word_emb"], cap, axis=0)
    inputs = jnp.concatenate([features[:, None, :], embeds], axis=1)
    x_tm = jnp.transpose(inputs, (1, 0, 2))
    B = features.shape[0]
    H = params["w_hh"].shape[1]

    def step(carry, x_t):
        h, c = carry
        gates = (x_t @ params["w_ih"].T + h @ params["w_hh"].T
                 + params["b_ih"] + params["b_hh"])
        i_g = jax.nn.sigmoid(gates[:, 0 * H:1 * H])
        f_g = jax.nn.sigmoid(gates[:, 1 * H:2 * H])
        g_g = jnp.tanh(gates[:, 2 * H:3 * H])
        o_g = jax.nn.sigmoid(gates[:, 3 * H:4 * H])
        c_n = f_g * c + i_g * g_g
        h_n = o_g * jnp.tanh(c_n)
        return (h_n, c_n), h_n

    init = (jnp.zeros((B, H), jnp.float32), jnp.zeros((B, H), jnp.float32))
    _, h_seq = jax.lax.scan(step, init, x_tm)                  # [T, B, H]
    logits = h_seq @ params["w_lin"].T + params["b_lin"]       # [T, B, V]
    return jnp.transpose(logits, (1, 0, 2))


def init_params(key, embed_size, hidden_size, vocab_size):
    """Deterministic init matching DecoderRNN_b.init_weights / PyTorch defaults."""
    ks = jax.random.split(key, 7)
    E, H, V = embed_size, hidden_size, vocab_size
    k = 1.0 / jnp.sqrt(jnp.float32(H))   # PyTorch LSTM default U(-1/sqrt(H), 1/sqrt(H))
    return {
        "word_emb": jax.random.uniform(ks[0], (V, E), jnp.float32, -0.1, 0.1),
        "w_ih": jax.random.uniform(ks[1], (4 * H, E), jnp.float32, -k, k),
        "w_hh": jax.random.uniform(ks[2], (4 * H, H), jnp.float32, -k, k),
        "b_ih": jax.random.uniform(ks[3], (4 * H,), jnp.float32, -k, k),
        "b_hh": jax.random.uniform(ks[4], (4 * H,), jnp.float32, -k, k),
        "w_lin": jax.random.uniform(ks[5], (V, H), jnp.float32, -0.1, 0.1),
        "b_lin": jnp.zeros((V,), jnp.float32),
    }


if __name__ == "__main__":
    B, T, E, H, V = 2, 8, 32, 32, 40   # captions length T -> seq len T after concat

    key = jax.random.PRNGKey(0)
    k_feat, k_cap, k_par = jax.random.split(key, 3)

    features = jax.random.normal(k_feat, (B, E), jnp.float32)
    captions = jax.random.randint(k_cap, (B, T), 0, V, jnp.int32)
    params = init_params(k_par, E, H, V)

    prep = preprocess_params(params)                  # one-time weight prep
    fwd = jax.jit(decoder_rnn_b_forward)

    out = fwd(features, captions, prep)
    out = jax.block_until_ready(out)

    ref = _reference_forward(features, captions, params)
    assert out.shape == (B, T, V)
    # bf16 MXU operands (f32 accumulate / f32 gate math) -> relaxed tolerance.
    assert jnp.allclose(out, ref, atol=5e-2, rtol=5e-2), "mismatch vs JAX reference"

    print("KERNEL_OK")
</pallas_src>

<mosaic_0001>
module attributes {stable_mosaic.version = 11 : i64} {
  func.func @_matmul_bias_kernel(%arg0: i32, %arg1: i32, %arg2: memref<128x32xbf16, #tpu.memory_space<vmem>>, %arg3: memref<32x256xbf16, #tpu.memory_space<vmem>>, %arg4: memref<1x256xf32, #tpu.memory_space<vmem>>, %arg5: memref<128x256xbf16, #tpu.memory_space<vmem>>) attributes {dimension_semantics = [#tpu.dimension_semantics<parallel>, #tpu.dimension_semantics<parallel>], iteration_bounds = array<i64: 2, 1>, scalar_prefetch = 0 : i64, scratch_operands = 0 : i64, tpu.core_type = #tpu.core_type<tc>, window_params = [{transform_indices = @transform_0, window_bounds = array<i64: 128, 32>}, {transform_indices = @transform_1, window_bounds = array<i64: 32, 256>}, {transform_indices = @transform_2, window_bounds = array<i64: 1, 256>}, {transform_indices = @transform_3, window_bounds = array<i64: 128, 256>}]} {
    %c0 = arith.constant 0 : index
    %c0_0 = arith.constant 0 : index
    %0 = vector.load %arg2[%c0, %c0_0] : memref<128x32xbf16, #tpu.memory_space<vmem>>, vector<128x32xbf16>
    %c0_1 = arith.constant 0 : index
    %c0_2 = arith.constant 0 : index
    %1 = vector.load %arg3[%c0_1, %c0_2] : memref<32x256xbf16, #tpu.memory_space<vmem>>, vector<32x256xbf16>
    %cst = arith.constant dense<0.000000e+00> : vector<128x256xf32>
    %2 = tpu.matmul %0, %1, %cst {dimension_numbers = #tpu.dot_dimension_numbers<[1], [0], [0], [1], [0, 0, 1, 1], [], []>} : vector<128x32xbf16>, vector<32x256xbf16>, vector<128x256xf32> -> vector<128x256xf32>
    %c0_3 = arith.constant 0 : index
    %c0_4 = arith.constant 0 : index
    %3 = vector.load %arg4[%c0_3, %c0_4] : memref<1x256xf32, #tpu.memory_space<vmem>>, vector<1x256xf32>
    %4 = vector.broadcast %3 : vector<1x256xf32> to vector<128x256xf32>
    %5 = arith.addf %2, %4 : vector<128x256xf32>
    %6 = arith.truncf %5 : vector<128x256xf32> to vector<128x256xbf16>
    %c0_5 = arith.constant 0 : index
    %c0_6 = arith.constant 0 : index
    %7 = vector.load %arg5[%c0_5, %c0_6] : memref<128x256xbf16, #tpu.memory_space<vmem>>, vector<128x256xbf16>
    tpu.vector_store %arg5[%c0_5, %c0_6], %6 {strides = array<i32>} : memref<128x256xbf16, #tpu.memory_space<vmem>>, vector<128x256xbf16>,
    return
  }
  func.func @transform_0(%arg0: i32, %arg1: i32) -> (i32, i32) {
    %c0_i32 = arith.constant 0 : i32
    %c0_i32_0 = arith.constant 0 : i32
    return %arg1, %c0_i32 : i32, i32
  }
  func.func @transform_1(%arg0: i32, %arg1: i32) -> (i32, i32) {
    %c0_i32 = arith.constant 0 : i32
    %c0_i32_0 = arith.constant 0 : i32
    return %c0_i32, %arg0 : i32, i32
  }
  func.func @transform_2(%arg0: i32, %arg1: i32) -> (i32, i32) {
    %c0_i32 = arith.constant 0 : i32
    %c0_i32_0 = arith.constant 0 : i32
    return %c0_i32, %arg0 : i32, i32
  }
  func.func @transform_3(%arg0: i32, %arg1: i32) -> (i32, i32) {
    %c0_i32 = arith.constant 0 : i32
    return %arg1, %arg0 : i32, i32
  }
}

module attributes {stable_mosaic.version = 11 : i64} {
  func.func @_matmul_bias_kernel(%arg0: i32, %arg1: i32, %arg2: memref<128x128xbf16, #tpu.memory_space<vmem>>, %arg3: memref<128x256xbf16, #tpu.memory_space<vmem>>, %arg4: memref<1x256xf32, #tpu.memory_space<vmem>>, %arg5: memref<128x256xf32, #tpu.memory_space<vmem>>) attributes {dimension_semantics = [#tpu.dimension_semantics<parallel>, #tpu.dimension_semantics<parallel>], iteration_bounds = array<i64: 1, 1>, scalar_prefetch = 0 : i64, scratch_operands = 0 : i64, tpu.core_type = #tpu.core_type<tc>, window_params = [{transform_indices = @transform_0, window_bounds = array<i64: 128, 128>}, {transform_indices = @transform_1, window_bounds = array<i64: 128, 256>}, {transform_indices = @transform_2, window_bounds = array<i64: 1, 256>}, {transform_indices = @transform_3, window_bounds = array<i64: 128, 256>}]} {
    %c0 = arith.constant 0 : index
    %c0_0 = arith.constant 0 : index
    %0 = vector.load %arg2[%c0, %c0_0] : memref<128x128xbf16, #tpu.memory_space<vmem>>, vector<128x128xbf16>
    %c0_1 = arith.constant 0 : index
    %c0_2 = arith.constant 0 : index
    %1 = vector.load %arg3[%c0_1, %c0_2] : memref<128x256xbf16, #tpu.memory_space<vmem>>, vector<128x256xbf16>
    %cst = arith.constant dense<0.000000e+00> : vector<128x256xf32>
    %2 = tpu.matmul %0, %1, %cst {dimension_numbers = #tpu.dot_dimension_numbers<[1], [0], [0], [1], [0, 0, 1, 1], [], []>} : vector<128x128xbf16>, vector<128x256xbf16>, vector<128x256xf32> -> vector<128x256xf32>
    %c0_3 = arith.constant 0 : index
    %c0_4 = arith.constant 0 : index
    %3 = vector.load %arg4[%c0_3, %c0_4] : memref<1x256xf32, #tpu.memory_space<vmem>>, vector<1x256xf32>
    %4 = vector.broadcast %3 : vector<1x256xf32> to vector<128x256xf32>
    %5 = arith.addf %2, %4 : vector<128x256xf32>
    %c0_5 = arith.constant 0 : index
    %c0_6 = arith.constant 0 : index
    %6 = vector.load %arg5[%c0_5, %c0_6] : memref<128x256xf32, #tpu.memory_space<vmem>>, vector<128x256xf32>
    tpu.vector_store %arg5[%c0_5, %c0_6], %5 {strides = array<i32>} : memref<128x256xf32, #tpu.memory_space<vmem>>, vector<128x256xf32>,
    return
  }
  func.func @transform_0(%arg0: i32, %arg1: i32) -> (i32, i32) {
    %c0_i32 = arith.constant 0 : i32
    %c0_i32_0 = arith.constant 0 : i32
    return %arg1, %c0_i32 : i32, i32
  }
  func.func @transform_1(%arg0: i32, %arg1: i32) -> (i32, i32) {
    %c0_i32 = arith.constant 0 : i32
    %c0_i32_0 = arith.constant 0 : i32
    return %c0_i32, %arg0 : i32, i32
  }
  func.func @transform_2(%arg0: i32, %arg1: i32) -> (i32, i32) {
    %c0_i32 = arith.constant 0 : i32
    %c0_i32_0 = arith.constant 0 : i32
    return %c0_i32, %arg0 : i32, i32
  }
  func.func @transform_3(%arg0: i32, %arg1: i32) -> (i32, i32) {
    %c0_i32 = arith.constant 0 : i32
    return %arg1, %arg0 : i32, i32
  }
}

module attributes {stable_mosaic.version = 11 : i64} {
  func.func @_lstm_recurrence_kernel(%arg0: i32, %arg1: i32, %arg2: memref<16x8x512xbf16, #tpu.memory_space<vmem>>, %arg3: memref<128x512xbf16, #tpu.memory_space<vmem>>, %arg4: memref<16x8x128xbf16, #tpu.memory_space<vmem>>, %arg5: memref<8x128xf32, #tpu.memory_space<vmem>>, %arg6: memref<8x128xf32, #tpu.memory_space<vmem>>) attributes {dimension_semantics = [#tpu.dimension_semantics<parallel>, #tpu.dimension_semantics<arbitrary>], iteration_bounds = array<i64: 1, 1>, scalar_prefetch = 0 : i64, scratch_operands = 2 : i64, tpu.core_type = #tpu.core_type<tc>, window_params = [{transform_indices = @transform_0, window_bounds = array<i64: 16, 8, 512>}, {pipeline_mode = #tpu.pipeline_mode<synchronous>, transform_indices = @transform_1, window_bounds = array<i64: 128, 512>}, {transform_indices = @transform_2, window_bounds = array<i64: 16, 8, 128>}]} {
    %c0_i32 = arith.constant 0 : i32
    %0 = arith.cmpi eq, %arg1, %c0_i32 : i32
    %1 = arith.extui %0 : i1 to i32
    %c0_i32_0 = arith.constant 0 : i32
    %2 = arith.cmpi ne, %1, %c0_i32_0 : i32
    scf.if %2 {
      %cst_258 = arith.constant 0.000000e+00 : f32
      %660 = vector.broadcast %cst_258 : f32 to vector<8x128xf32>
      %c0_259 = arith.constant 0 : index
      %c0_260 = arith.constant 0 : index
      %661 = vector.load %arg5[%c0_259, %c0_260] : memref<8x128xf32, #tpu.memory_space<vmem>>, vector<8x128xf32>
      tpu.vector_store %arg5[%c0_259, %c0_260], %660 {strides = array<i32>} : memref<8x128xf32, #tpu.memory_space<vmem>>, vector<8x128xf32>,
      %cst_261 = arith.constant 0.000000e+00 : f32
      %662 = vector.broadcast %cst_261 : f32 to vector<8x128xf32>
      %c0_262 = arith.constant 0 : index
      %c0_263 = arith.constant 0 : index
      %663 = vector.load %arg6[%c0_262, %c0_263] : memref<8x128xf32, #tpu.memory_space<vmem>>, vector<8x128xf32>
      tpu.vector_store %arg6[%c0_262, %c0_263], %662 {strides = array<i32>} : memref<8x128xf32, #tpu.memory_space<vmem>>, vector<8x128xf32>,
    } else {
    }
    %c0 = arith.constant 0 : index
    %c0_1 = arith.constant 0 : index
    %3 = vector.load %arg3[%c0, %c0_1] : memref<128x512xbf16, #tpu.memory_space<vmem>>, vector<128x512xbf16>
    %c0_i32_2 = arith.constant 0 : i32
    %c0_3 = arith.constant 0 : index
    %c0_4 = arith.constant 0 : index
    %4 = vector.load %arg5[%c0_3, %c0_4] : memref<8x128xf32, #tpu.memory_space<vmem>>, vector<8x128xf32>
    %c0_5 = arith.constant 0 : index
    %c0_6 = arith.constant 0 : index
    %5 = vector.load %arg6[%c0_5, %c0_6] : memref<8x128xf32, #tpu.memory_space<vmem>>, vector<8x128xf32>
    %6 = arith.index_cast %c0_i32_2 : i32 to index
    %c0_7 = arith.constant 0 : index
    %c0_8 = arith.constant 0 : index
    %7 = vector.load %arg2[%6, %c0_7, %c0_8] : memref<16x8x512xbf16, #tpu.memory_space<vmem>>, vector<1x8x512xbf16>
    %8 = vector.shape_cast %7 : vector<1x8x512xbf16> to vector<8x512xbf16>
    %9 = arith.extf %8 : vector<8x512xbf16> to vector<8x512xf32>
    %10 = arith.truncf %4 : vector<8x128xf32> to vector<8x128xbf16>
    %cst = arith.constant dense<0.000000e+00> : vector<8x512xf32>
    %11 = tpu.matmul %10, %3, %cst {dimension_numbers = #tpu.dot_dimension_numbers<[1], [0], [0], [1], [0, 0, 1, 1], [], []>} : vector<8x128xbf16>, vector<128x512xbf16>, vector<8x512xf32> -> vector<8x512xf32>
    %12 = arith.addf %9, %11 : vector<8x512xf32>
    %13 = vector.extract_strided_slice %12 {offsets = [0, 0], sizes = [8, 128], strides = [1, 1]} : vector<8x512xf32> to vector<8x128xf32>
    %14 = arith.negf %13 : vector<8x128xf32>
    %15 = math.exp %14 : vector<8x128xf32>
    %cst_9 = arith.constant 1.000000e+00 : f32
    %16 = vector.broadcast %cst_9 : f32 to vector<8x128xf32>
    %17 = arith.addf %16, %15 : vector<8x128xf32>
    %18 = arith.divf %16, %17 : vector<8x128xf32>
    %19 = vector.extract_strided_slice %12 {offsets = [0, 128], sizes = [8, 128], strides = [1, 1]} : vector<8x512xf32> to vector<8x128xf32>
    %20 = arith.negf %19 : vector<8x128xf32>
    %21 = math.exp %20 : vector<8x128xf32>
    %cst_10 = arith.constant 1.000000e+00 : f32
    %22 = vector.broadcast %cst_10 : f32 to vector<8x128xf32>
    %23 = arith.addf %22, %21 : vector<8x128xf32>
    %24 = arith.divf %22, %23 : vector<8x128xf32>
    %25 = vector.extract_strided_slice %12 {offsets = [0, 256], sizes = [8, 128], strides = [1, 1]} : vector<8x512xf32> to vector<8x128xf32>
    %26 = math.tanh %25 : vector<8x128xf32>
    %27 = vector.extract_strided_slice %12 {offsets = [0, 384], sizes = [8, 128], strides = [1, 1]} : vector<8x512xf32> to vector<8x128xf32>
    %28 = arith.negf %27 : vector<8x128xf32>
    %29 = math.exp %28 : vector<8x128xf32>
    %cst_11 = arith.constant 1.000000e+00 : f32
    %30 = vector.broadcast %cst_11 : f32 to vector<8x128xf32>
    %31 = arith.addf %30, %29 : vector<8x128xf32>
    %32 = arith.divf %30, %31 : vector<8x128xf32>
    %33 = arith.mulf %24, %5 : vector<8x128xf32>
    %34 = arith.mulf %18, %26 : vector<8x128xf32>
    %35 = arith.addf %33, %34 : vector<8x128xf32>
    %36 = math.tanh %35 : vector<8x128xf32>
    %37 = arith.mulf %32, %36 : vector<8x128xf32>
    %c0_12 = arith.constant 0 : index
    %c0_13 = arith.constant 0 : index
    %38 = vector.load %arg5[%c0_12, %c0_13] : memref<8x128xf32, #tpu.memory_space<vmem>>, vector<8x128xf32>
    tpu.vector_store %arg5[%c0_12, %c0_13], %37 {strides = array<i32>} : memref<8x128xf32, #tpu.memory_space<vmem>>, vector<8x128xf32>,
    %c0_14 = arith.constant 0 : index
    %c0_15 = arith.constant 0 : index
    %39 = vector.load %arg6[%c0_14, %c0_15] : memref<8x128xf32, #tpu.memory_space<vmem>>, vector<8x128xf32>
    tpu.vector_store %arg6[%c0_14, %c0_15], %35 {strides = array<i32>} : memref<8x128xf32, #tpu.memory_space<vmem>>, vector<8x128xf32>,
    %40 = arith.truncf %37 : vector<8x128xf32> to vector<8x128xbf16>
    %41 = arith.index_cast %c0_i32_2 : i32 to index
    %c0_16 = arith.constant 0 : index
    %c0_17 = arith.constant 0 : index
    %42 = vector.load %arg4[%41, %c0_16, %c0_17] : memref<16x8x128xbf16, #tpu.memory_space<vmem>>, vector<1x8x128xbf16>
    %43 = vector.shape_cast %42 : vector<1x8x128xbf16> to vector<8x128xbf16>
    %44 = vector.shape_cast %40 : vector<8x128xbf16> to vector<1x8x128xbf16>
    tpu.vector_store %arg4[%41, %c0_16, %c0_17], %44 {strides = array<i32>} : memref<16x8x128xbf16, #tpu.memory_space<vmem>>, vector<1x8x128xbf16>,
    %c1_i32 = arith.constant 1 : i32
    %c0_18 = arith.constant 0 : index
    %c0_19 = arith.constant 0 : index
    %45 = vector.load %arg5[%c0_18, %c0_19] : memref<8x128xf32, #tpu.memory_space<vmem>>, vector<8x128xf32>
    %c0_20 = arith.constant 0 : index
    %c0_21 = arith.constant 0 : index
    %46 = vector.load %arg6[%c0_20, %c0_21] : memref<8x128xf32, #tpu.memory_space<vmem>>, vector<8x128xf32>
    %47 = arith.index_cast %c1_i32 : i32 to index
    %c0_22 = arith.constant 0 : index
    %c0_23 = arith.constant 0 : index
    %48 = vector.load %arg2[%47, %c0_22, %c0_23] : memref<16x8x512xbf16, #tpu.memory_space<vmem>>, vector<1x8x512xbf16>
    %49 = vector.shape_cast %48 : vector<1x8x512xbf16> to vector<8x512xbf16>
    %50 = arith.extf %49 : vector<8x512xbf16> to vector<8x512xf32>
    %51 = arith.truncf %45 : vector<8x128xf32> to vector<8x128xbf16>
    %cst_24 = arith.constant dense<0.000000e+00> : vector<8x512xf32>
    %52 = tpu.matmul %51, %3, %cst_24 {dimension_numbers = #tpu.dot_dimension_numbers<[1], [0], [0], [1], [0, 0, 1, 1], [], []>} : vector<8x128xbf16>, vector<128x512xbf16>, vector<8x512xf32> -> vector<8x512xf32>
    %53 = arith.addf %50, %52 : vector<8x512xf32>
    %54 = vector.extract_strided_slice %53 {offsets = [0, 0], sizes = [8, 128], strides = [1, 1]} : vector<8x512xf32> to vector<8x128xf32>
    %55 = arith.negf %54 : vector<8x128xf32>
    %56 = math.exp %55 : vector<8x128xf32>
    %cst_25 = arith.constant 1.000000e+00 : f32
    %57 = vector.broadcast %cst_25 : f32 to vector<8x128xf32>
    %58 = arith.addf %57, %56 : vector<8x128xf32>
    %59 = arith.divf %57, %58 : vector<8x128xf32>
    %60 = vector.extract_strided_slice %53 {offsets = [0, 128], sizes = [8, 128], strides = [1, 1]} : vector<8x512xf32> to vector<8x128xf32>
    %61 = arith.negf %60 : vector<8x128xf32>
    %62 = math.exp %61 : vector<8x128xf32>
    %cst_26 = arith.constant 1.000000e+00 : f32
    %63 = vector.broadcast %cst_26 : f32 to vector<8x128xf32>
    %64 = arith.addf %63, %62 : vector<8x128xf32>
    %65 = arith.divf %63, %64 : vector<8x128xf32>
    %66 = vector.extract_strided_slice %53 {offsets = [0, 256], sizes = [8, 128], strides = [1, 1]} : vector<8x512xf32> to vector<8x128xf32>
    %67 = math.tanh %66 : vector<8x128xf32>
    %68 = vector.extract_strided_slice %53 {offsets = [0, 384], sizes = [8, 128], strides = [1, 1]} : vector<8x512xf32> to vector<8x128xf32>
    %69 = arith.negf %68 : vector<8x128xf32>
    %70 = math.exp %69 : vector<8x128xf32>
    %cst_27 = arith.constant 1.000000e+00 : f32
    %71 = vector.broadcast %cst_27 : f32 to vector<8x128xf32>
    %72 = arith.addf %71, %70 : vector<8x128xf32>
    %73 = arith.divf %71, %72 : vector<8x128xf32>
    %74 = arith.mulf %65, %46 : vector<8x128xf32>
    %75 = arith.mulf %59, %67 : vector<8x128xf32>
    %76 = arith.addf %74, %75 : vector<8x128xf32>
    %77 = math.tanh %76 : vector<8x128xf32>
    %78 = arith.mulf %73, %77 : vector<8x128xf32>
    %c0_28 = arith.constant 0 : index
    %c0_29 = arith.constant 0 : index
    %79 = vector.load %arg5[%c0_28, %c0_29] : memref<8x128xf32, #tpu.memory_space<vmem>>, vector<8x128xf32>
    tpu.vector_store %arg5[%c0_28, %c0_29], %78 {strides = array<i32>} : memref<8x128xf32, #tpu.memory_space<vmem>>, vector<8x128xf32>,
    %c0_30 = arith.constant 0 : index
    %c0_31 = arith.constant 0 : index
    %80 = vector.load %arg6[%c0_30, %c0_31] : memref<8x128xf32, #tpu.memory_space<vmem>>, vector<8x128xf32>
    tpu.vector_store %arg6[%c0_30, %c0_31], %76 {strides = array<i32>} : memref<8x128xf32, #tpu.memory_space<vmem>>, vector<8x128xf32>,
    %81 = arith.truncf %78 : vector<8x128xf32> to vector<8x128xbf16>
    %82 = arith.index_cast %c1_i32 : i32 to index
    %c0_32 = arith.constant 0 : index
    %c0_33 = arith.constant 0 : index
    %83 = vector.load %arg4[%82, %c0_32, %c0_33] : memref<16x8x128xbf16, #tpu.memory_space<vmem>>, vector<1x8x128xbf16>
    %84 = vector.shape_cast %83 : vector<1x8x128xbf16> to vector<8x128xbf16>
    %85 = vector.shape_cast %81 : vector<8x128xbf16> to vector<1x8x128xbf16>
    tpu.vector_store %arg4[%82, %c0_32, %c0_33], %85 {strides = array<i32>} : memref<16x8x128xbf16, #tpu.memory_space<vmem>>, vector<1x8x128xbf16>,
    %c2_i32 = arith.constant 2 : i32
    %c0_34 = arith.constant 0 : index
    %c0_35 = arith.constant 0 : index
    %86 = vector.load %arg5[%c0_34, %c0_35] : memref<8x128xf32, #tpu.memory_space<vmem>>, vector<8x128xf32>
    %c0_36 = arith.constant 0 : index
    %c0_37 = arith.constant 0 : index
    %87 = vector.load %arg6[%c0_36, %c0_37] : memref<8x128xf32, #tpu.memory_space<vmem>>, vector<8x128xf32>
    %88 = arith.index_cast %c2_i32 : i32 to index
    %c0_38 = arith.constant 0 : index
    %c0_39 = arith.constant 0 : index
    %89 = vector.load %arg2[%88, %c0_38, %c0_39] : memref<16x8x512xbf16, #tpu.memory_space<vmem>>, vector<1x8x512xbf16>
    %90 = vector.shape_cast %89 : vector<1x8x512xbf16> to vector<8x512xbf16>
    %91 = arith.extf %90 : vector<8x512xbf16> to vector<8x512xf32>
    %92 = arith.truncf %86 : vector<8x128xf32> to vector<8x128xbf16>
    %cst_40 = arith.constant dense<0.000000e+00> : vector<8x512xf32>
    %93 = tpu.matmul %92, %3, %cst_40 {dimension_numbers = #tpu.dot_dimension_numbers<[1], [0], [0], [1], [0, 0, 1, 1], [], []>} : vector<8x128xbf16>, vector<128x512xbf16>, vector<8x512xf32> -> vector<8x512xf32>
    %94 = arith.addf %91, %93 : vector<8x512xf32>
    %95 = vector.extract_strided_slice %94 {offsets = [0, 0], sizes = [8, 128], strides = [1, 1]} : vector<8x512xf32> to vector<8x128xf32>
    %96 = arith.negf %95 : vector<8x128xf32>
    %97 = math.exp %96 : vector<8x128xf32>
    %cst_41 = arith.constant 1.000000e+00 : f32
    %98 = vector.broadcast %cst_41 : f32 to vector<8x128xf32>
    %99 = arith.addf %98, %97 : vector<8x128xf32>
    %100 = arith.divf %98, %99 : vector<8x128xf32>
    %101 = vector.extract_strided_slice %94 {offsets = [0, 128], sizes = [8, 128], strides = [1, 1]} : vector<8x512xf32> to vector<8x128xf32>
    %102 = arith.negf %101 : vector<8x128xf32>
    %103 = math.exp %102 : vector<8x128xf32>
    %cst_42 = arith.constant 1.000000e+00 : f32
    %104 = vector.broadcast %cst_42 : f32 to vector<8x128xf32>
    %105 = arith.addf %104, %103 : vector<8x128xf32>
    %106 = arith.divf %104, %105 : vector<8x128xf32>
    %107 = vector.extract_strided_slice %94 {offsets = [0, 256], sizes = [8, 128], strides = [1, 1]} : vector<8x512xf32> to vector<8x128xf32>
    %108 = math.tanh %107 : vector<8x128xf32>
    %109 = vector.extract_strided_slice %94 {offsets = [0, 384], sizes = [8, 128], strides = [1, 1]} : vector<8x512xf32> to vector<8x128xf32>
    %110 = arith.negf %109 : vector<8x128xf32>
    %111 = math.exp %110 : vector<8x128xf32>
    %cst_43 = arith.constant 1.000000e+00 : f32
    %112 = vector.broadcast %cst_43 : f32 to vector<8x128xf32>
    %113 = arith.addf %112, %111 : vector<8x128xf32>
    %114 = arith.divf %112, %113 : vector<8x128xf32>
    %115 = arith.mulf %106, %87 : vector<8x128xf32>
    %116 = arith.mulf %100, %108 : vector<8x128xf32>
    %117 = arith.addf %115, %116 : vector<8x128xf32>
    %118 = math.tanh %117 : vector<8x128xf32>
    %119 = arith.mulf %114, %118 : vector<8x128xf32>
    %c0_44 = arith.constant 0 : index
    %c0_45 = arith.constant 0 : index
    %120 = vector.load %arg5[%c0_44, %c0_45] : memref<8x128xf32, #tpu.memory_space<vmem>>, vector<8x128xf32>
    tpu.vector_store %arg5[%c0_44, %c0_45], %119 {strides = array<i32>} : memref<8x128xf32, #tpu.memory_space<vmem>>, vector<8x128xf32>,
    %c0_46 = arith.constant 0 : index
    %c0_47 = arith.constant 0 : index
    %121 = vector.load %arg6[%c0_46, %c0_47] : memref<8x128xf32, #tpu.memory_space<vmem>>, vector<8x128xf32>
    tpu.vector_store %arg6[%c0_46, %c0_47], %117 {strides = array<i32>} : memref<8x128xf32, #tpu.memory_space<vmem>>, vector<8x128xf32>,
    %122 = arith.truncf %119 : vector<8x128xf32> to vector<8x128xbf16>
    %123 = arith.index_cast %c2_i32 : i32 to index
    %c0_48 = arith.constant 0 : index
    %c0_49 = arith.constant 0 : index
    %124 = vector.load %arg4[%123, %c0_48, %c0_49] : memref<16x8x128xbf16, #tpu.memory_space<vmem>>, vector<1x8x128xbf16>
    %125 = vector.shape_cast %124 : vector<1x8x128xbf16> to vector<8x128xbf16>
    %126 = vector.shape_cast %122 : vector<8x128xbf16> to vector<1x8x128xbf16>
    tpu.vector_store %arg4[%123, %c0_48, %c0_49], %126 {strides = array<i32>} : memref<16x8x128xbf16, #tpu.memory_space<vmem>>, vector<1x8x128xbf16>,
    %c3_i32 = arith.constant 3 : i32
    %c0_50 = arith.constant 0 : index
    %c0_51 = arith.constant 0 : index
    %127 = vector.load %arg5[%c0_50, %c0_51] : memref<8x128xf32, #tpu.memory_space<vmem>>, vector<8x128xf32>
    %c0_52 = arith.constant 0 : index
    %c0_53 = arith.constant 0 : index
    %128 = vector.load %arg6[%c0_52, %c0_53] : memref<8x128xf32, #tpu.memory_space<vmem>>, vector<8x128xf32>
    %129 = arith.index_cast %c3_i32 : i32 to index
    %c0_54 = arith.constant 0 : index
    %c0_55 = arith.constant 0 : index
    %130 = vector.load %arg2[%129, %c0_54, %c0_55] : memref<16x8x512xbf16, #tpu.memory_space<vmem>>, vector<1x8x512xbf16>
    %131 = vector.shape_cast %130 : vector<1x8x512xbf16> to vector<8x512xbf16>
    %132 = arith.extf %131 : vector<8x512xbf16> to vector<8x512xf32>
    %133 = arith.truncf %127 : vector<8x128xf32> to vector<8x128xbf16>
    %cst_56 = arith.constant dense<0.000000e+00> : vector<8x512xf32>
    %134 = tpu.matmul %133, %3, %cst_56 {dimension_numbers = #tpu.dot_dimension_numbers<[1], [0], [0], [1], [0, 0, 1, 1], [], []>} : vector<8x128xbf16>, vector<128x512xbf16>, vector<8x512xf32> -> vector<8x512xf32>
    %135 = arith.addf %132, %134 : vector<8x512xf32>
    %136 = vector.extract_strided_slice %135 {offsets = [0, 0], sizes = [8, 128], strides = [1, 1]} : vector<8x512xf32> to vector<8x128xf32>
    %137 = arith.negf %136 : vector<8x128xf32>
    %138 = math.exp %137 : vector<8x128xf32>
    %cst_57 = arith.constant 1.000000e+00 : f32
    %139 = vector.broadcast %cst_57 : f32 to vector<8x128xf32>
    %140 = arith.addf %139, %138 : vector<8x128xf32>
    %141 = arith.divf %139, %140 : vector<8x128xf32>
    %142 = vector.extract_strided_slice %135 {offsets = [0, 128], sizes = [8, 128], strides = [1, 1]} : vector<8x512xf32> to vector<8x128xf32>
    %143 = arith.negf %142 : vector<8x128xf32>
    %144 = math.exp %143 : vector<8x128xf32>
    %cst_58 = arith.constant 1.000000e+00 : f32
    %145 = vector.broadcast %cst_58 : f32 to vector<8x128xf32>
    %146 = arith.addf %145, %144 : vector<8x128xf32>
    %147 = arith.divf %145, %146 : vector<8x128xf32>
    %148 = vector.extract_strided_slice %135 {offsets = [0, 256], sizes = [8, 128], strides = [1, 1]} : vector<8x512xf32> to vector<8x128xf32>
    %149 = math.tanh %148 : vector<8x128xf32>
    %150 = vector.extract_strided_slice %135 {offsets = [0, 384], sizes = [8, 128], strides = [1, 1]} : vector<8x512xf32> to vector<8x128xf32>
    %151 = arith.negf %150 : vector<8x128xf32>
    %152 = math.exp %151 : vector<8x128xf32>
    %cst_59 = arith.constant 1.000000e+00 : f32
    %153 = vector.broadcast %cst_59 : f32 to vector<8x128xf32>
    %154 = arith.addf %153, %152 : vector<8x128xf32>
    %155 = arith.divf %153, %154 : vector<8x128xf32>
    %156 = arith.mulf %147, %128 : vector<8x128xf32>
    %157 = arith.mulf %141, %149 : vector<8x128xf32>
    %158 = arith.addf %156, %157 : vector<8x128xf32>
    %159 = math.tanh %158 : vector<8x128xf32>
    %160 = arith.mulf %155, %159 : vector<8x128xf32>
    %c0_60 = arith.constant 0 : index
    %c0_61 = arith.constant 0 : index
    %161 = vector.load %arg5[%c0_60, %c0_61] : memref<8x128xf32, #tpu.memory_space<vmem>>, vector<8x128xf32>
    tpu.vector_store %arg5[%c0_60, %c0_61], %160 {strides = array<i32>} : memref<8x128xf32, #tpu.memory_space<vmem>>, vector<8x128xf32>,
    %c0_62 = arith.constant 0 : index
    %c0_63 = arith.constant 0 : index
    %162 = vector.load %arg6[%c0_62, %c0_63] : memref<8x128xf32, #tpu.memory_space<vmem>>, vector<8x128xf32>
    tpu.vector_store %arg6[%c0_62, %c0_63], %158 {strides = array<i32>} : memref<8x128xf32, #tpu.memory_space<vmem>>, vector<8x128xf32>,
    %163 = arith.truncf %160 : vector<8x128xf32> to vector<8x128xbf16>
    %164 = arith.index_cast %c3_i32 : i32 to index
    %c0_64 = arith.constant 0 : index
    %c0_65 = arith.constant 0 : index
    %165 = vector.load %arg4[%164, %c0_64, %c0_65] : memref<16x8x128xbf16, #tpu.memory_space<vmem>>, vector<1x8x128xbf16>
    %166 = vector.shape_cast %165 : vector<1x8x128xbf16> to vector<8x128xbf16>
    %167 = vector.shape_cast %163 : vector<8x128xbf16> to vector<1x8x128xbf16>
    tpu.vector_store %arg4[%164, %c0_64, %c0_65], %167 {strides = array<i32>} : memref<16x8x128xbf16, #tpu.memory_space<vmem>>, vector<1x8x128xbf16>,
    %c4_i32 = arith.constant 4 : i32
    %c0_66 = arith.constant 0 : index
    %c0_67 = arith.constant 0 : index
    %168 = vector.load %arg5[%c0_66, %c0_67] : memref<8x128xf32, #tpu.memory_space<vmem>>, vector<8x128xf32>
    %c0_68 = arith.constant 0 : index
    %c0_69 = arith.constant 0 : index
    %169 = vector.load %arg6[%c0_68, %c0_69] : memref<8x128xf32, #tpu.memory_space<vmem>>, vector<8x128xf32>
    %170 = arith.index_cast %c4_i32 : i32 to index
    %c0_70 = arith.constant 0 : index
    %c0_71 = arith.constant 0 : index
    %171 = vector.load %arg2[%170, %c0_70, %c0_71] : memref<16x8x512xbf16, #tpu.memory_space<vmem>>, vector<1x8x512xbf16>
    %172 = vector.shape_cast %171 : vector<1x8x512xbf16> to vector<8x512xbf16>
    %173 = arith.extf %172 : vector<8x512xbf16> to vector<8x512xf32>
    %174 = arith.truncf %168 : vector<8x128xf32> to vector<8x128xbf16>
    %cst_72 = arith.constant dense<0.000000e+00> : vector<8x512xf32>
    %175 = tpu.matmul %174, %3, %cst_72 {dimension_numbers = #tpu.dot_dimension_numbers<[1], [0], [0], [1], [0, 0, 1, 1], [], []>} : vector<8x128xbf16>, vector<128x512xbf16>, vector<8x512xf32> -> vector<8x512xf32>
    %176 = arith.addf %173, %175 : vector<8x512xf32>
    %177 = vector.extract_strided_slice %176 {offsets = [0, 0], sizes = [8, 128], strides = [1, 1]} : vector<8x512xf32> to vector<8x128xf32>
    %178 = arith.negf %177 : vector<8x128xf32>
    %179 = math.exp %178 : vector<8x128xf32>
    %cst_73 = arith.constant 1.000000e+00 : f32
    %180 = vector.broadcast %cst_73 : f32 to vector<8x128xf32>
    %181 = arith.addf %180, %179 : vector<8x128xf32>
    %182 = arith.divf %180, %181 : vector<8x128xf32>
    %183 = vector.extract_strided_slice %176 {offsets = [0, 128], sizes = [8, 128], strides = [1, 1]} : vector<8x512xf32> to vector<8x128xf32>
    %184 = arith.negf %183 : vector<8x128xf32>
    %185 = math.exp %184 : vector<8x128xf32>
    %cst_74 = arith.constant 1.000000e+00 : f32
    %186 = vector.broadcast %cst_74 : f32 to vector<8x128xf32>
    %187 = arith.addf %186, %185 : vector<8x128xf32>
    %188 = arith.divf %186, %187 : vector<8x128xf32>
    %189 = vector.extract_strided_slice %176 {offsets = [0, 256], sizes = [8, 128], strides = [1, 1]} : vector<8x512xf32> to vector<8x128xf32>
    %190 = math.tanh %189 : vector<8x128xf32>
    %191 = vector.extract_strided_slice %176 {offsets = [0, 384], sizes = [8, 128], strides = [1, 1]} : vector<8x512xf32> to vector<8x128xf32>
    %192 = arith.negf %191 : vector<8x128xf32>
    %193 = math.exp %192 : vector<8x128xf32>
    %cst_75 = arith.constant 1.000000e+00 : f32
    %194 = vector.broadcast %cst_75 : f32 to vector<8x128xf32>
    %195 = arith.addf %194, %193 : vector<8x128xf32>
    %196 = arith.divf %194, %195 : vector<8x128xf32>
    %197 = arith.mulf %188, %169 : vector<8x128xf32>
    %198 = arith.mulf %182, %190 : vector<8x128xf32>
    %199 = arith.addf %197, %198 : vector<8x128xf32>
    %200 = math.tanh %199 : vector<8x128xf32>
    %201 = arith.mulf %196, %200 : vector<8x128xf32>
    %c0_76 = arith.constant 0 : index
    %c0_77 = arith.constant 0 : index
    %202 = vector.load %arg5[%c0_76, %c0_77] : memref<8x128xf32, #tpu.memory_space<vmem>>, vector<8x128xf32>
    tpu.vector_store %arg5[%c0_76, %c0_77], %201 {strides = array<i32>} : memref<8x128xf32, #tpu.memory_space<vmem>>, vector<8x128xf32>,
    %c0_78 = arith.constant 0 : index
    %c0_79 = arith.constant 0 : index
    %203 = vector.load %arg6[%c0_78, %c0_79] : memref<8x128xf32, #tpu.memory_space<vmem>>, vector<8x128xf32>
    tpu.vector_store %arg6[%c0_78, %c0_79], %199 {strides = array<i32>} : memref<8x128xf32, #tpu.memory_space<vmem>>, vector<8x128xf32>,
    %204 = arith.truncf %201 : vector<8x128xf32> to vector<8x128xbf16>
    %205 = arith.index_cast %c4_i32 : i32 to index
    %c0_80 = arith.constant 0 : index
    %c0_81 = arith.constant 0 : index
    %206 = vector.load %arg4[%205, %c0_80, %c0_81] : memref<16x8x128xbf16, #tpu.memory_space<vmem>>, vector<1x8x128xbf16>
    %207 = vector.shape_cast %206 : vector<1x8x128xbf16> to vector<8x128xbf16>
    %208 = vector.shape_cast %204 : vector<8x128xbf16> to vector<1x8x128xbf16>
    tpu.vector_store %arg4[%205, %c0_80, %c0_81], %208 {strides = array<i32>} : memref<16x8x128xbf16, #tpu.memory_space<vmem>>, vector<1x8x128xbf16>,
    %c5_i32 = arith.constant 5 : i32
    %c0_82 = arith.constant 0 : index
    %c0_83 = arith.constant 0 : index
    %209 = vector.load %arg5[%c0_82, %c0_83] : memref<8x128xf32, #tpu.memory_space<vmem>>, vector<8x128xf32>
    %c0_84 = arith.constant 0 : index
    %c0_85 = arith.constant 0 : index
    %210 = vector.load %arg6[%c0_84, %c0_85] : memref<8x128xf32, #tpu.memory_space<vmem>>, vector<8x128xf32>
    %211 = arith.index_cast %c5_i32 : i32 to index
    %c0_86 = arith.constant 0 : index
    %c0_87 = arith.constant 0 : index
    %212 = vector.load %arg2[%211, %c0_86, %c0_87] : memref<16x8x512xbf16, #tpu.memory_space<vmem>>, vector<1x8x512xbf16>
    %213 = vector.shape_cast %212 : vector<1x8x512xbf16> to vector<8x512xbf16>
    %214 = arith.extf %213 : vector<8x512xbf16> to vector<8x512xf32>
    %215 = arith.truncf %209 : vector<8x128xf32> to vector<8x128xbf16>
    %cst_88 = arith.constant dense<0.000000e+00> : vector<8x512xf32>
    %216 = tpu.matmul %215, %3, %cst_88 {dimension_numbers = #tpu.dot_dimension_numbers<[1], [0], [0], [1], [0, 0, 1, 1], [], []>} : vector<8x128xbf16>, vector<128x512xbf16>, vector<8x512xf32> -> vector<8x512xf32>
    %217 = arith.addf %214, %216 : vector<8x512xf32>
    %218 = vector.extract_strided_slice %217 {offsets = [0, 0], sizes = [8, 128], strides = [1, 1]} : vector<8x512xf32> to vector<8x128xf32>
    %219 = arith.negf %218 : vector<8x128xf32>
    %220 = math.exp %219 : vector<8x128xf32>
    %cst_89 = arith.constant 1.000000e+00 : f32
    %221 = vector.broadcast %cst_89 : f32 to vector<8x128xf32>
    %222 = arith.addf %221, %220 : vector<8x128xf32>
    %223 = arith.divf %221, %222 : vector<8x128xf32>
    %224 = vector.extract_strided_slice %217 {offsets = [0, 128], sizes = [8, 128], strides = [1, 1]} : vector<8x512xf32> to vector<8x128xf32>
    %225 = arith.negf %224 : vector<8x128xf32>
    %226 = math.exp %225 : vector<8x128xf32>
    %cst_90 = arith.constant 1.000000e+00 : f32
    %227 = vector.broadcast %cst_90 : f32 to vector<8x128xf32>
    %228 = arith.addf %227, %226 : vector<8x128xf32>
    %229 = arith.divf %227, %228 : vector<8x128xf32>
    %230 = vector.extract_strided_slice %217 {offsets = [0, 256], sizes = [8, 128], strides = [1, 1]} : vector<8x512xf32> to vector<8x128xf32>
    %231 = math.tanh %230 : vector<8x128xf32>
    %232 = vector.extract_strided_slice %217 {offsets = [0, 384], sizes = [8, 128], strides = [1, 1]} : vector<8x512xf32> to vector<8x128xf32>
    %233 = arith.negf %232 : vector<8x128xf32>
    %234 = math.exp %233 : vector<8x128xf32>
    %cst_91 = arith.constant 1.000000e+00 : f32
    %235 = vector.broadcast %cst_91 : f32 to vector<8x128xf32>
    %236 = arith.addf %235, %234 : vector<8x128xf32>
    %237 = arith.divf %235, %236 : vector<8x128xf32>
    %238 = arith.mulf %229, %210 : vector<8x128xf32>
    %239 = arith.mulf %223, %231 : vector<8x128xf32>
    %240 = arith.addf %238, %239 : vector<8x128xf32>
    %241 = math.tanh %240 : vector<8x128xf32>
    %242 = arith.mulf %237, %241 : vector<8x128xf32>
    %c0_92 = arith.constant 0 : index
    %c0_93 = arith.constant 0 : index
    %243 = vector.load %arg5[%c0_92, %c0_93] : memref<8x128xf32, #tpu.memory_space<vmem>>, vector<8x128xf32>
    tpu.vector_store %arg5[%c0_92, %c0_93], %242 {strides = array<i32>} : memref<8x128xf32, #tpu.memory_space<vmem>>, vector<8x128xf32>,
    %c0_94 = arith.constant 0 : index
    %c0_95 = arith.constant 0 : index
    %244 = vector.load %arg6[%c0_94, %c0_95] : memref<8x128xf32, #tpu.memory_space<vmem>>, vector<8x128xf32>
    tpu.vector_store %arg6[%c0_94, %c0_95], %240 {strides = array<i32>} : memref<8x128xf32, #tpu.memory_space<vmem>>, vector<8x128xf32>,
    %245 = arith.truncf %242 : vector<8x128xf32> to vector<8x128xbf16>
    %246 = arith.index_cast %c5_i32 : i32 to index
    %c0_96 = arith.constant 0 : index
    %c0_97 = arith.constant 0 : index
    %247 = vector.load %arg4[%246, %c0_96, %c0_97] : memref<16x8x128xbf16, #tpu.memory_space<vmem>>, vector<1x8x128xbf16>
    %248 = vector.shape_cast %247 : vector<1x8x128xbf16> to vector<8x128xbf16>
    %249 = vector.shape_cast %245 : vector<8x128xbf16> to vector<1x8x128xbf16>
    tpu.vector_store %arg4[%246, %c0_96, %c0_97], %249 {strides = array<i32>} : memref<16x8x128xbf16, #tpu.memory_space<vmem>>, vector<1x8x128xbf16>,
    %c6_i32 = arith.constant 6 : i32
    %c0_98 = arith.constant 0 : index
    %c0_99 = arith.constant 0 : index
    %250 = vector.load %arg5[%c0_98, %c0_99] : memref<8x128xf32, #tpu.memory_space<vmem>>, vector<8x128xf32>
    %c0_100 = arith.constant 0 : index
    %c0_101 = arith.constant 0 : index
    %251 = vector.load %arg6[%c0_100, %c0_101] : memref<8x128xf32, #tpu.memory_space<vmem>>, vector<8x128xf32>
    %252 = arith.index_cast %c6_i32 : i32 to index
    %c0_102 = arith.constant 0 : index
    %c0_103 = arith.constant 0 : index
    %253 = vector.load %arg2[%252, %c0_102, %c0_103] : memref<16x8x512xbf16, #tpu.memory_space<vmem>>, vector<1x8x512xbf16>
    %254 = vector.shape_cast %253 : vector<1x8x512xbf16> to vector<8x512xbf16>
    %255 = arith.extf %254 : vector<8x512xbf16> to vector<8x512xf32>
    %256 = arith.truncf %250 : vector<8x128xf32> to vector<8x128xbf16>
    %cst_104 = arith.constant dense<0.000000e+00> : vector<8x512xf32>
    %257 = tpu.matmul %256, %3, %cst_104 {dimension_numbers = #tpu.dot_dimension_numbers<[1], [0], [0], [1], [0, 0, 1, 1], [], []>} : vector<8x128xbf16>, vector<128x512xbf16>, vector<8x512xf32> -> vector<8x512xf32>
    %258 = arith.addf %255, %257 : vector<8x512xf32>
    %259 = vector.extract_strided_slice %258 {offsets = [0, 0], sizes = [8, 128], strides = [1, 1]} : vector<8x512xf32> to vector<8x128xf32>
    %260 = arith.negf %259 : vector<8x128xf32>
    %261 = math.exp %260 : vector<8x128xf32>
    %cst_105 = arith.constant 1.000000e+00 : f32
    %262 = vector.broadcast %cst_105 : f32 to vector<8x128xf32>
    %263 = arith.addf %262, %261 : vector<8x128xf32>
    %264 = arith.divf %262, %263 : vector<8x128xf32>
    %265 = vector.extract_strided_slice %258 {offsets = [0, 128], sizes = [8, 128], strides = [1, 1]} : vector<8x512xf32> to vector<8x128xf32>
    %266 = arith.negf %265 : vector<8x128xf32>
    %267 = math.exp %266 : vector<8x128xf32>
    %cst_106 = arith.constant 1.000000e+00 : f32
    %268 = vector.broadcast %cst_106 : f32 to vector<8x128xf32>
    %269 = arith.addf %268, %267 : vector<8x128xf32>
    %270 = arith.divf %268, %269 : vector<8x128xf32>
    %271 = vector.extract_strided_slice %258 {offsets = [0, 256], sizes = [8, 128], strides = [1, 1]} : vector<8x512xf32> to vector<8x128xf32>
    %272 = math.tanh %271 : vector<8x128xf32>
    %273 = vector.extract_strided_slice %258 {offsets = [0, 384], sizes = [8, 128], strides = [1, 1]} : vector<8x512xf32> to vector<8x128xf32>
    %274 = arith.negf %273 : vector<8x128xf32>
    %275 = math.exp %274 : vector<8x128xf32>
    %cst_107 = arith.constant 1.000000e+00 : f32
    %276 = vector.broadcast %cst_107 : f32 to vector<8x128xf32>
    %277 = arith.addf %276, %275 : vector<8x128xf32>
    %278 = arith.divf %276, %277 : vector<8x128xf32>
    %279 = arith.mulf %270, %251 : vector<8x128xf32>
    %280 = arith.mulf %264, %272 : vector<8x128xf32>
    %281 = arith.addf %279, %280 : vector<8x128xf32>
    %282 = math.tanh %281 : vector<8x128xf32>
    %283 = arith.mulf %278, %282 : vector<8x128xf32>
    %c0_108 = arith.constant 0 : index
    %c0_109 = arith.constant 0 : index
    %284 = vector.load %arg5[%c0_108, %c0_109] : memref<8x128xf32, #tpu.memory_space<vmem>>, vector<8x128xf32>
    tpu.vector_store %arg5[%c0_108, %c0_109], %283 {strides = array<i32>} : memref<8x128xf32, #tpu.memory_space<vmem>>, vector<8x128xf32>,
    %c0_110 = arith.constant 0 : index
    %c0_111 = arith.constant 0 : index
    %285 = vector.load %arg6[%c0_110, %c0_111] : memref<8x128xf32, #tpu.memory_space<vmem>>, vector<8x128xf32>
    tpu.vector_store %arg6[%c0_110, %c0_111], %281 {strides = array<i32>} : memref<8x128xf32, #tpu.memory_space<vmem>>, vector<8x128xf32>,
    %286 = arith.truncf %283 : vector<8x128xf32> to vector<8x128xbf16>
    %287 = arith.index_cast %c6_i32 : i32 to index
    %c0_112 = arith.constant 0 : index
    %c0_113 = arith.constant 0 : index
    %288 = vector.load %arg4[%287, %c0_112, %c0_113] : memref<16x8x128xbf16, #tpu.memory_space<vmem>>, vector<1x8x128xbf16>
    %289 = vector.shape_cast %288 : vector<1x8x128xbf16> to vector<8x128xbf16>
    %290 = vector.shape_cast %286 : vector<8x128xbf16> to vector<1x8x128xbf16>
    tpu.vector_store %arg4[%287, %c0_112, %c0_113], %290 {strides = array<i32>} : memref<16x8x128xbf16, #tpu.memory_space<vmem>>, vector<1x8x128xbf16>,
    %c7_i32 = arith.constant 7 : i32
    %c0_114 = arith.constant 0 : index
    %c0_115 = arith.constant 0 : index
    %291 = vector.load %arg5[%c0_114, %c0_115] : memref<8x128xf32, #tpu.memory_space<vmem>>, vector<8x128xf32>
    %c0_116 = arith.constant 0 : index
    %c0_117 = arith.constant 0 : index
    %292 = vector.load %arg6[%c0_116, %c0_117] : memref<8x128xf32, #tpu.memory_space<vmem>>, vector<8x128xf32>
    %293 = arith.index_cast %c7_i32 : i32 to index
    %c0_118 = arith.constant 0 : index
    %c0_119 = arith.constant 0 : index
    %294 = vector.load %arg2[%293, %c0_118, %c0_119] : memref<16x8x512xbf16, #tpu.memory_space<vmem>>, vector<1x8x512xbf16>
    %295 = vector.shape_cast %294 : vector<1x8x512xbf16> to vector<8x512xbf16>
    %296 = arith.extf %295 : vector<8x512xbf16> to vector<8x512xf32>
    %297 = arith.truncf %291 : vector<8x128xf32> to vector<8x128xbf16>
    %cst_120 = arith.constant dense<0.000000e+00> : vector<8x512xf32>
    %298 = tpu.matmul %297, %3, %cst_120 {dimension_numbers = #tpu.dot_dimension_numbers<[1], [0], [0], [1], [0, 0, 1, 1], [], []>} : vector<8x128xbf16>, vector<128x512xbf16>, vector<8x512xf32> -> vector<8x512xf32>
    %299 = arith.addf %296, %298 : vector<8x512xf32>
    %300 = vector.extract_strided_slice %299 {offsets = [0, 0], sizes = [8, 128], strides = [1, 1]} : vector<8x512xf32> to vector<8x128xf32>
    %301 = arith.negf %300 : vector<8x128xf32>
    %302 = math.exp %301 : vector<8x128xf32>
    %cst_121 = arith.constant 1.000000e+00 : f32
    %303 = vector.broadcast %cst_121 : f32 to vector<8x128xf32>
    %304 = arith.addf %303, %302 : vector<8x128xf32>
    %305 = arith.divf %303, %304 : vector<8x128xf32>
    %306 = vector.extract_strided_slice %299 {offsets = [0, 128], sizes = [8, 128], strides = [1, 1]} : vector<8x512xf32> to vector<8x128xf32>
    %307 = arith.negf %306 : vector<8x128xf32>
    %308 = math.exp %307 : vector<8x128xf32>
    %cst_122 = arith.constant 1.000000e+00 : f32
    %309 = vector.broadcast %cst_122 : f32 to vector<8x128xf32>
    %310 = arith.addf %309, %308 : vector<8x128xf32>
    %311 = arith.divf %309, %310 : vector<8x128xf32>
    %312 = vector.extract_strided_slice %299 {offsets = [0, 256], sizes = [8, 128], strides = [1, 1]} : vector<8x512xf32> to vector<8x128xf32>
    %313 = math.tanh %312 : vector<8x128xf32>
    %314 = vector.extract_strided_slice %299 {offsets = [0, 384], sizes = [8, 128], strides = [1, 1]} : vector<8x512xf32> to vector<8x128xf32>
    %315 = arith.negf %314 : vector<8x128xf32>
    %316 = math.exp %315 : vector<8x128xf32>
    %cst_123 = arith.constant 1.000000e+00 : f32
    %317 = vector.broadcast %cst_123 : f32 to vector<8x128xf32>
    %318 = arith.addf %317, %316 : vector<8x128xf32>
    %319 = arith.divf %317, %318 : vector<8x128xf32>
    %320 = arith.mulf %311, %292 : vector<8x128xf32>
    %321 = arith.mulf %305, %313 : vector<8x128xf32>
    %322 = arith.addf %320, %321 : vector<8x128xf32>
    %323 = math.tanh %322 : vector<8x128xf32>
    %324 = arith.mulf %319, %323 : vector<8x128xf32>
    %c0_124 = arith.constant 0 : index
    %c0_125 = arith.constant 0 : index
    %325 = vector.load %arg5[%c0_124, %c0_125] : memref<8x128xf32, #tpu.memory_space<vmem>>, vector<8x128xf32>
    tpu.vector_store %arg5[%c0_124, %c0_125], %324 {strides = array<i32>} : memref<8x128xf32, #tpu.memory_space<vmem>>, vector<8x128xf32>,
    %c0_126 = arith.constant 0 : index
    %c0_127 = arith.constant 0 : index
    %326 = vector.load %arg6[%c0_126, %c0_127] : memref<8x128xf32, #tpu.memory_space<vmem>>, vector<8x128xf32>
    tpu.vector_store %arg6[%c0_126, %c0_127], %322 {strides = array<i32>} : memref<8x128xf32, #tpu.memory_space<vmem>>, vector<8x128xf32>,
    %327 = arith.truncf %324 : vector<8x128xf32> to vector<8x128xbf16>
    %328 = arith.index_cast %c7_i32 : i32 to index
    %c0_128 = arith.constant 0 : index
    %c0_129 = arith.constant 0 : index
    %329 = vector.load %arg4[%328, %c0_128, %c0_129] : memref<16x8x128xbf16, #tpu.memory_space<vmem>>, vector<1x8x128xbf16>
    %330 = vector.shape_cast %329 : vector<1x8x128xbf16> to vector<8x128xbf16>
    %331 = vector.shape_cast %327 : vector<8x128xbf16> to vector<1x8x128xbf16>
    tpu.vector_store %arg4[%328, %c0_128, %c0_129], %331 {strides = array<i32>} : memref<16x8x128xbf16, #tpu.memory_space<vmem>>, vector<1x8x128xbf16>,
    %c8_i32 = arith.constant 8 : i32
    %c0_130 = arith.constant 0 : index
    %c0_131 = arith.constant 0 : index
    %332 = vector.load %arg5[%c0_130, %c0_131] : memref<8x128xf32, #tpu.memory_space<vmem>>, vector<8x128xf32>
    %c0_132 = arith.constant 0 : index
    %c0_133 = arith.constant 0 : index
    %333 = vector.load %arg6[%c0_132, %c0_133] : memref<8x128xf32, #tpu.memory_space<vmem>>, vector<8x128xf32>
    %334 = arith.index_cast %c8_i32 : i32 to index
    %c0_134 = arith.constant 0 : index
    %c0_135 = arith.constant 0 : index
    %335 = vector.load %arg2[%334, %c0_134, %c0_135] : memref<16x8x512xbf16, #tpu.memory_space<vmem>>, vector<1x8x512xbf16>
    %336 = vector.shape_cast %335 : vector<1x8x512xbf16> to vector<8x512xbf16>
    %337 = arith.extf %336 : vector<8x512xbf16> to vector<8x512xf32>
    %338 = arith.truncf %332 : vector<8x128xf32> to vector<8x128xbf16>
    %cst_136 = arith.constant dense<0.000000e+00> : vector<8x512xf32>
    %339 = tpu.matmul %338, %3, %cst_136 {dimension_numbers = #tpu.dot_dimension_numbers<[1], [0], [0], [1], [0, 0, 1, 1], [], []>} : vector<8x128xbf16>, vector<128x512xbf16>, vector<8x512xf32> -> vector<8x512xf32>
    %340 = arith.addf %337, %339 : vector<8x512xf32>
    %341 = vector.extract_strided_slice %340 {offsets = [0, 0], sizes = [8, 128], strides = [1, 1]} : vector<8x512xf32> to vector<8x128xf32>
    %342 = arith.negf %341 : vector<8x128xf32>
    %343 = math.exp %342 : vector<8x128xf32>
    %cst_137 = arith.constant 1.000000e+00 : f32
    %344 = vector.broadcast %cst_137 : f32 to vector<8x128xf32>
    %345 = arith.addf %344, %343 : vector<8x128xf32>
    %346 = arith.divf %344, %345 : vector<8x128xf32>
    %347 = vector.extract_strided_slice %340 {offsets = [0, 128], sizes = [8, 128], strides = [1, 1]} : vector<8x512xf32> to vector<8x128xf32>
    %348 = arith.negf %347 : vector<8x128xf32>
    %349 = math.exp %348 : vector<8x128xf32>
    %cst_138 = arith.constant 1.000000e+00 : f32
    %350 = vector.broadcast %cst_138 : f32 to vector<8x128xf32>
    %351 = arith.addf %350, %349 : vector<8x128xf32>
    %352 = arith.divf %350, %351 : vector<8x128xf32>
    %353 = vector.extract_strided_slice %340 {offsets = [0, 256], sizes = [8, 128], strides = [1, 1]} : vector<8x512xf32> to vector<8x128xf32>
    %354 = math.tanh %353 : vector<8x128xf32>
    %355 = vector.extract_strided_slice %340 {offsets = [0, 384], sizes = [8, 128], strides = [1, 1]} : vector<8x512xf32> to vector<8x128xf32>
    %356 = arith.negf %355 : vector<8x128xf32>
    %357 = math.exp %356 : vector<8x128xf32>
    %cst_139 = arith.constant 1.000000e+00 : f32
    %358 = vector.broadcast %cst_139 : f32 to vector<8x128xf32>
    %359 = arith.addf %358, %357 : vector<8x128xf32>
    %360 = arith.divf %358, %359 : vector<8x128xf32>
    %361 = arith.mulf %352, %333 : vector<8x128xf32>
    %362 = arith.mulf %346, %354 : vector<8x128xf32>
    %363 = arith.addf %361, %362 : vector<8x128xf32>
    %364 = math.tanh %363 : vector<8x128xf32>
    %365 = arith.mulf %360, %364 : vector<8x128xf32>
    %c0_140 = arith.constant 0 : index
    %c0_141 = arith.constant 0 : index
    %366 = vector.load %arg5[%c0_140, %c0_141] : memref<8x128xf32, #tpu.memory_space<vmem>>, vector<8x128xf32>
    tpu.vector_store %arg5[%c0_140, %c0_141], %365 {strides = array<i32>} : memref<8x128xf32, #tpu.memory_space<vmem>>, vector<8x128xf32>,
    %c0_142 = arith.constant 0 : index
    %c0_143 = arith.constant 0 : index
    %367 = vector.load %arg6[%c0_142, %c0_143] : memref<8x128xf32, #tpu.memory_space<vmem>>, vector<8x128xf32>
    tpu.vector_store %arg6[%c0_142, %c0_143], %363 {strides = array<i32>} : memref<8x128xf32, #tpu.memory_space<vmem>>, vector<8x128xf32>,
    %368 = arith.truncf %365 : vector<8x128xf32> to vector<8x128xbf16>
    %369 = arith.index_cast %c8_i32 : i32 to index
    %c0_144 = arith.constant 0 : index
    %c0_145 = arith.constant 0 : index
    %370 = vector.load %arg4[%369, %c0_144, %c0_145] : memref<16x8x128xbf16, #tpu.memory_space<vmem>>, vector<1x8x128xbf16>
    %371 = vector.shape_cast %370 : vector<1x8x128xbf16> to vector<8x128xbf16>
    %372 = vector.shape_cast %368 : vector<8x128xbf16> to vector<1x8x128xbf16>
    tpu.vector_store %arg4[%369, %c0_144, %c0_145], %372 {strides = array<i32>} : memref<16x8x128xbf16, #tpu.memory_space<vmem>>, vector<1x8x128xbf16>,
    %c9_i32 = arith.constant 9 : i32
    %c0_146 = arith.constant 0 : index
    %c0_147 = arith.constant 0 : index
    %373 = vector.load %arg5[%c0_146, %c0_147] : memref<8x128xf32, #tpu.memory_space<vmem>>, vector<8x128xf32>
    %c0_148 = arith.constant 0 : index
    %c0_149 = arith.constant 0 : index
    %374 = vector.load %arg6[%c0_148, %c0_149] : memref<8x128xf32, #tpu.memory_space<vmem>>, vector<8x128xf32>
    %375 = arith.index_cast %c9_i32 : i32 to index
    %c0_150 = arith.constant 0 : index
    %c0_151 = arith.constant 0 : index
    %376 = vector.load %arg2[%375, %c0_150, %c0_151] : memref<16x8x512xbf16, #tpu.memory_space<vmem>>, vector<1x8x512xbf16>
    %377 = vector.shape_cast %376 : vector<1x8x512xbf16> to vector<8x512xbf16>
    %378 = arith.extf %377 : vector<8x512xbf16> to vector<8x512xf32>
    %379 = arith.truncf %373 : vector<8x128xf32> to vector<8x128xbf16>
    %cst_152 = arith.constant dense<0.000000e+00> : vector<8x512xf32>
    %380 = tpu.matmul %379, %3, %cst_152 {dimension_numbers = #tpu.dot_dimension_numbers<[1], [0], [0], [1], [0, 0, 1, 1], [], []>} : vector<8x128xbf16>, vector<128x512xbf16>, vector<8x512xf32> -> vector<8x512xf32>
    %381 = arith.addf %378, %380 : vector<8x512xf32>
    %382 = vector.extract_strided_slice %381 {offsets = [0, 0], sizes = [8, 128], strides = [1, 1]} : vector<8x512xf32> to vector<8x128xf32>
    %383 = arith.negf %382 : vector<8x128xf32>
    %384 = math.exp %383 : vector<8x128xf32>
    %cst_153 = arith.constant 1.000000e+00 : f32
    %385 = vector.broadcast %cst_153 : f32 to vector<8x128xf32>
    %386 = arith.addf %385, %384 : vector<8x128xf32>
    %387 = arith.divf %385, %386 : vector<8x128xf32>
    %388 = vector.extract_strided_slice %381 {offsets = [0, 128], sizes = [8, 128], strides = [1, 1]} : vector<8x512xf32> to vector<8x128xf32>
    %389 = arith.negf %388 : vector<8x128xf32>
    %390 = math.exp %389 : vector<8x128xf32>
    %cst_154 = arith.constant 1.000000e+00 : f32
    %391 = vector.broadcast %cst_154 : f32 to vector<8x128xf32>
    %392 = arith.addf %391, %390 : vector<8x128xf32>
    %393 = arith.divf %391, %392 : vector<8x128xf32>
    %394 = vector.extract_strided_slice %381 {offsets = [0, 256], sizes = [8, 128], strides = [1, 1]} : vector<8x512xf32> to vector<8x128xf32>
    %395 = math.tanh %394 : vector<8x128xf32>
    %396 = vector.extract_strided_slice %381 {offsets = [0, 384], sizes = [8, 128], strides = [1, 1]} : vector<8x512xf32> to vector<8x128xf32>
    %397 = arith.negf %396 : vector<8x128xf32>
    %398 = math.exp %397 : vector<8x128xf32>
    %cst_155 = arith.constant 1.000000e+00 : f32
    %399 = vector.broadcast %cst_155 : f32 to vector<8x128xf32>
    %400 = arith.addf %399, %398 : vector<8x128xf32>
    %401 = arith.divf %399, %400 : vector<8x128xf32>
    %402 = arith.mulf %393, %374 : vector<8x128xf32>
    %403 = arith.mulf %387, %395 : vector<8x128xf32>
    %404 = arith.addf %402, %403 : vector<8x128xf32>
    %405 = math.tanh %404 : vector<8x128xf32>
    %406 = arith.mulf %401, %405 : vector<8x128xf32>
    %c0_156 = arith.constant 0 : index
    %c0_157 = arith.constant 0 : index
    %407 = vector.load %arg5[%c0_156, %c0_157] : memref<8x128xf32, #tpu.memory_space<vmem>>, vector<8x128xf32>
    tpu.vector_store %arg5[%c0_156, %c0_157], %406 {strides = array<i32>} : memref<8x128xf32, #tpu.memory_space<vmem>>, vector<8x128xf32>,
    %c0_158 = arith.constant 0 : index
    %c0_159 = arith.constant 0 : index
    %408 = vector.load %arg6[%c0_158, %c0_159] : memref<8x128xf32, #tpu.memory_space<vmem>>, vector<8x128xf32>
    tpu.vector_store %arg6[%c0_158, %c0_159], %404 {strides = array<i32>} : memref<8x128xf32, #tpu.memory_space<vmem>>, vector<8x128xf32>,
    %409 = arith.truncf %406 : vector<8x128xf32> to vector<8x128xbf16>
    %410 = arith.index_cast %c9_i32 : i32 to index
    %c0_160 = arith.constant 0 : index
    %c0_161 = arith.constant 0 : index
    %411 = vector.load %arg4[%410, %c0_160, %c0_161] : memref<16x8x128xbf16, #tpu.memory_space<vmem>>, vector<1x8x128xbf16>
    %412 = vector.shape_cast %411 : vector<1x8x128xbf16> to vector<8x128xbf16>
    %413 = vector.shape_cast %409 : vector<8x128xbf16> to vector<1x8x128xbf16>
    tpu.vector_store %arg4[%410, %c0_160, %c0_161], %413 {strides = array<i32>} : memref<16x8x128xbf16, #tpu.memory_space<vmem>>, vector<1x8x128xbf16>,
    %c10_i32 = arith.constant 10 : i32
    %c0_162 = arith.constant 0 : index
    %c0_163 = arith.constant 0 : index
    %414 = vector.load %arg5[%c0_162, %c0_163] : memref<8x128xf32, #tpu.memory_space<vmem>>, vector<8x128xf32>
    %c0_164 = arith.constant 0 : index
    %c0_165 = arith.constant 0 : index
    %415 = vector.load %arg6[%c0_164, %c0_165] : memref<8x128xf32, #tpu.memory_space<vmem>>, vector<8x128xf32>
    %416 = arith.index_cast %c10_i32 : i32 to index
    %c0_166 = arith.constant 0 : index
    %c0_167 = arith.constant 0 : index
    %417 = vector.load %arg2[%416, %c0_166, %c0_167] : memref<16x8x512xbf16, #tpu.memory_space<vmem>>, vector<1x8x512xbf16>
    %418 = vector.shape_cast %417 : vector<1x8x512xbf16> to vector<8x512xbf16>
    %419 = arith.extf %418 : vector<8x512xbf16> to vector<8x512xf32>
    %420 = arith.truncf %414 : vector<8x128xf32> to vector<8x128xbf16>
    %cst_168 = arith.constant dense<0.000000e+00> : vector<8x512xf32>
    %421 = tpu.matmul %420, %3, %cst_168 {dimension_numbers = #tpu.dot_dimension_numbers<[1], [0], [0], [1], [0, 0, 1, 1], [], []>} : vector<8x128xbf16>, vector<128x512xbf16>, vector<8x512xf32> -> vector<8x512xf32>
    %422 = arith.addf %419, %421 : vector<8x512xf32>
    %423 = vector.extract_strided_slice %422 {offsets = [0, 0], sizes = [8, 128], strides = [1, 1]} : vector<8x512xf32> to vector<8x128xf32>
    %424 = arith.negf %423 : vector<8x128xf32>
    %425 = math.exp %424 : vector<8x128xf32>
    %cst_169 = arith.constant 1.000000e+00 : f32
    %426 = vector.broadcast %cst_169 : f32 to vector<8x128xf32>
    %427 = arith.addf %426, %425 : vector<8x128xf32>
    %428 = arith.divf %426, %427 : vector<8x128xf32>
    %429 = vector.extract_strided_slice %422 {offsets = [0, 128], sizes = [8, 128], strides = [1, 1]} : vector<8x512xf32> to vector<8x128xf32>
    %430 = arith.negf %429 : vector<8x128xf32>
    %431 = math.exp %430 : vector<8x128xf32>
    %cst_170 = arith.constant 1.000000e+00 : f32
    %432 = vector.broadcast %cst_170 : f32 to vector<8x128xf32>
    %433 = arith.addf %432, %431 : vector<8x128xf32>
    %434 = arith.divf %432, %433 : vector<8x128xf32>
    %435 = vector.extract_strided_slice %422 {offsets = [0, 256], sizes = [8, 128], strides = [1, 1]} : vector<8x512xf32> to vector<8x128xf32>
    %436 = math.tanh %435 : vector<8x128xf32>
    %437 = vector.extract_strided_slice %422 {offsets = [0, 384], sizes = [8, 128], strides = [1, 1]} : vector<8x512xf32> to vector<8x128xf32>
    %438 = arith.negf %437 : vector<8x128xf32>
    %439 = math.exp %438 : vector<8x128xf32>
    %cst_171 = arith.constant 1.000000e+00 : f32
    %440 = vector.broadcast %cst_171 : f32 to vector<8x128xf32>
    %441 = arith.addf %440, %439 : vector<8x128xf32>
    %442 = arith.divf %440, %441 : vector<8x128xf32>
    %443 = arith.mulf %434, %415 : vector<8x128xf32>
    %444 = arith.mulf %428, %436 : vector<8x128xf32>
    %445 = arith.addf %443, %444 : vector<8x128xf32>
    %446 = math.tanh %445 : vector<8x128xf32>
    %447 = arith.mulf %442, %446 : vector<8x128xf32>
    %c0_172 = arith.constant 0 : index
    %c0_173 = arith.constant 0 : index
    %448 = vector.load %arg5[%c0_172, %c0_173] : memref<8x128xf32, #tpu.memory_space<vmem>>, vector<8x128xf32>
    tpu.vector_store %arg5[%c0_172, %c0_173], %447 {strides = array<i32>} : memref<8x128xf32, #tpu.memory_space<vmem>>, vector<8x128xf32>,
    %c0_174 = arith.constant 0 : index
    %c0_175 = arith.constant 0 : index
    %449 = vector.load %arg6[%c0_174, %c0_175] : memref<8x128xf32, #tpu.memory_space<vmem>>, vector<8x128xf32>
    tpu.vector_store %arg6[%c0_174, %c0_175], %445 {strides = array<i32>} : memref<8x128xf32, #tpu.memory_space<vmem>>, vector<8x128xf32>,
    %450 = arith.truncf %447 : vector<8x128xf32> to vector<8x128xbf16>
    %451 = arith.index_cast %c10_i32 : i32 to index
    %c0_176 = arith.constant 0 : index
    %c0_177 = arith.constant 0 : index
    %452 = vector.load %arg4[%451, %c0_176, %c0_177] : memref<16x8x128xbf16, #tpu.memory_space<vmem>>, vector<1x8x128xbf16>
    %453 = vector.shape_cast %452 : vector<1x8x128xbf16> to vector<8x128xbf16>
    %454 = vector.shape_cast %450 : vector<8x128xbf16> to vector<1x8x128xbf16>
    tpu.vector_store %arg4[%451, %c0_176, %c0_177], %454 {strides = array<i32>} : memref<16x8x128xbf16, #tpu.memory_space<vmem>>, vector<1x8x128xbf16>,
    %c11_i32 = arith.constant 11 : i32
    %c0_178 = arith.constant 0 : index
    %c0_179 = arith.constant 0 : index
    %455 = vector.load %arg5[%c0_178, %c0_179] : memref<8x128xf32, #tpu.memory_space<vmem>>, vector<8x128xf32>
    %c0_180 = arith.constant 0 : index
    %c0_181 = arith.constant 0 : index
    %456 = vector.load %arg6[%c0_180, %c0_181] : memref<8x128xf32, #tpu.memory_space<vmem>>, vector<8x128xf32>
    %457 = arith.index_cast %c11_i32 : i32 to index
    %c0_182 = arith.constant 0 : index
    %c0_183 = arith.constant 0 : index
    %458 = vector.load %arg2[%457, %c0_182, %c0_183] : memref<16x8x512xbf16, #tpu.memory_space<vmem>>, vector<1x8x512xbf16>
    %459 = vector.shape_cast %458 : vector<1x8x512xbf16> to vector<8x512xbf16>
    %460 = arith.extf %459 : vector<8x512xbf16> to vector<8x512xf32>
    %461 = arith.truncf %455 : vector<8x128xf32> to vector<8x128xbf16>
    %cst_184 = arith.constant dense<0.000000e+00> : vector<8x512xf32>
    %462 = tpu.matmul %461, %3, %cst_184 {dimension_numbers = #tpu.dot_dimension_numbers<[1], [0], [0], [1], [0, 0, 1, 1], [], []>} : vector<8x128xbf16>, vector<128x512xbf16>, vector<8x512xf32> -> vector<8x512xf32>
    %463 = arith.addf %460, %462 : vector<8x512xf32>
    %464 = vector.extract_strided_slice %463 {offsets = [0, 0], sizes = [8, 128], strides = [1, 1]} : vector<8x512xf32> to vector<8x128xf32>
    %465 = arith.negf %464 : vector<8x128xf32>
    %466 = math.exp %465 : vector<8x128xf32>
    %cst_185 = arith.constant 1.000000e+00 : f32
    %467 = vector.broadcast %cst_185 : f32 to vector<8x128xf32>
    %468 = arith.addf %467, %466 : vector<8x128xf32>
    %469 = arith.divf %467, %468 : vector<8x128xf32>
    %470 = vector.extract_strided_slice %463 {offsets = [0, 128], sizes = [8, 128], strides = [1, 1]} : vector<8x512xf32> to vector<8x128xf32>
    %471 = arith.negf %470 : vector<8x128xf32>
    %472 = math.exp %471 : vector<8x128xf32>
    %cst_186 = arith.constant 1.000000e+00 : f32
    %473 = vector.broadcast %cst_186 : f32 to vector<8x128xf32>
    %474 = arith.addf %473, %472 : vector<8x128xf32>
    %475 = arith.divf %473, %474 : vector<8x128xf32>
    %476 = vector.extract_strided_slice %463 {offsets = [0, 256], sizes = [8, 128], strides = [1, 1]} : vector<8x512xf32> to vector<8x128xf32>
    %477 = math.tanh %476 : vector<8x128xf32>
    %478 = vector.extract_strided_slice %463 {offsets = [0, 384], sizes = [8, 128], strides = [1, 1]} : vector<8x512xf32> to vector<8x128xf32>
    %479 = arith.negf %478 : vector<8x128xf32>
    %480 = math.exp %479 : vector<8x128xf32>
    %cst_187 = arith.constant 1.000000e+00 : f32
    %481 = vector.broadcast %cst_187 : f32 to vector<8x128xf32>
    %482 = arith.addf %481, %480 : vector<8x128xf32>
    %483 = arith.divf %481, %482 : vector<8x128xf32>
    %484 = arith.mulf %475, %456 : vector<8x128xf32>
    %485 = arith.mulf %469, %477 : vector<8x128xf32>
    %486 = arith.addf %484, %485 : vector<8x128xf32>
    %487 = math.tanh %486 : vector<8x128xf32>
    %488 = arith.mulf %483, %487 : vector<8x128xf32>
    %c0_188 = arith.constant 0 : index
    %c0_189 = arith.constant 0 : index
    %489 = vector.load %arg5[%c0_188, %c0_189] : memref<8x128xf32, #tpu.memory_space<vmem>>, vector<8x128xf32>
    tpu.vector_store %arg5[%c0_188, %c0_189], %488 {strides = array<i32>} : memref<8x128xf32, #tpu.memory_space<vmem>>, vector<8x128xf32>,
    %c0_190 = arith.constant 0 : index
    %c0_191 = arith.constant 0 : index
    %490 = vector.load %arg6[%c0_190, %c0_191] : memref<8x128xf32, #tpu.memory_space<vmem>>, vector<8x128xf32>
    tpu.vector_store %arg6[%c0_190, %c0_191], %486 {strides = array<i32>} : memref<8x128xf32, #tpu.memory_space<vmem>>, vector<8x128xf32>,
    %491 = arith.truncf %488 : vector<8x128xf32> to vector<8x128xbf16>
    %492 = arith.index_cast %c11_i32 : i32 to index
    %c0_192 = arith.constant 0 : index
    %c0_193 = arith.constant 0 : index
    %493 = vector.load %arg4[%492, %c0_192, %c0_193] : memref<16x8x128xbf16, #tpu.memory_space<vmem>>, vector<1x8x128xbf16>
    %494 = vector.shape_cast %493 : vector<1x8x128xbf16> to vector<8x128xbf16>
    %495 = vector.shape_cast %491 : vector<8x128xbf16> to vector<1x8x128xbf16>
    tpu.vector_store %arg4[%492, %c0_192, %c0_193], %495 {strides = array<i32>} : memref<16x8x128xbf16, #tpu.memory_space<vmem>>, vector<1x8x128xbf16>,
    %c12_i32 = arith.constant 12 : i32
    %c0_194 = arith.constant 0 : index
    %c0_195 = arith.constant 0 : index
    %496 = vector.load %arg5[%c0_194, %c0_195] : memref<8x128xf32, #tpu.memory_space<vmem>>, vector<8x128xf32>
    %c0_196 = arith.constant 0 : index
    %c0_197 = arith.constant 0 : index
    %497 = vector.load %arg6[%c0_196, %c0_197] : memref<8x128xf32, #tpu.memory_space<vmem>>, vector<8x128xf32>
    %498 = arith.index_cast %c12_i32 : i32 to index
    %c0_198 = arith.constant 0 : index
    %c0_199 = arith.constant 0 : index
    %499 = vector.load %arg2[%498, %c0_198, %c0_199] : memref<16x8x512xbf16, #tpu.memory_space<vmem>>, vector<1x8x512xbf16>
    %500 = vector.shape_cast %499 : vector<1x8x512xbf16> to vector<8x512xbf16>
    %501 = arith.extf %500 : vector<8x512xbf16> to vector<8x512xf32>
    %502 = arith.truncf %496 : vector<8x128xf32> to vector<8x128xbf16>
    %cst_200 = arith.constant dense<0.000000e+00> : vector<8x512xf32>
    %503 = tpu.matmul %502, %3, %cst_200 {dimension_numbers = #tpu.dot_dimension_numbers<[1], [0], [0], [1], [0, 0, 1, 1], [], []>} : vector<8x128xbf16>, vector<128x512xbf16>, vector<8x512xf32> -> vector<8x512xf32>
    %504 = arith.addf %501, %503 : vector<8x512xf32>
    %505 = vector.extract_strided_slice %504 {offsets = [0, 0], sizes = [8, 128], strides = [1, 1]} : vector<8x512xf32> to vector<8x128xf32>
    %506 = arith.negf %505 : vector<8x128xf32>
    %507 = math.exp %506 : vector<8x128xf32>
    %cst_201 = arith.constant 1.000000e+00 : f32
    %508 = vector.broadcast %cst_201 : f32 to vector<8x128xf32>
    %509 = arith.addf %508, %507 : vector<8x128xf32>
    %510 = arith.divf %508, %509 : vector<8x128xf32>
    %511 = vector.extract_strided_slice %504 {offsets = [0, 128], sizes = [8, 128], strides = [1, 1]} : vector<8x512xf32> to vector<8x128xf32>
    %512 = arith.negf %511 : vector<8x128xf32>
    %513 = math.exp %512 : vector<8x128xf32>
    %cst_202 = arith.constant 1.000000e+00 : f32
    %514 = vector.broadcast %cst_202 : f32 to vector<8x128xf32>
    %515 = arith.addf %514, %513 : vector<8x128xf32>
    %516 = arith.divf %514, %515 : vector<8x128xf32>
    %517 = vector.extract_strided_slice %504 {offsets = [0, 256], sizes = [8, 128], strides = [1, 1]} : vector<8x512xf32> to vector<8x128xf32>
    %518 = math.tanh %517 : vector<8x128xf32>
    %519 = vector.extract_strided_slice %504 {offsets = [0, 384], sizes = [8, 128], strides = [1, 1]} : vector<8x512xf32> to vector<8x128xf32>
    %520 = arith.negf %519 : vector<8x128xf32>
    %521 = math.exp %520 : vector<8x128xf32>
    %cst_203 = arith.constant 1.000000e+00 : f32
    %522 = vector.broadcast %cst_203 : f32 to vector<8x128xf32>
    %523 = arith.addf %522, %521 : vector<8x128xf32>
    %524 = arith.divf %522, %523 : vector<8x128xf32>
    %525 = arith.mulf %516, %497 : vector<8x128xf32>
    %526 = arith.mulf %510, %518 : vector<8x128xf32>
    %527 = arith.addf %525, %526 : vector<8x128xf32>
    %528 = math.tanh %527 : vector<8x128xf32>
    %529 = arith.mulf %524, %528 : vector<8x128xf32>
    %c0_204 = arith.constant 0 : index
    %c0_205 = arith.constant 0 : index
    %530 = vector.load %arg5[%c0_204, %c0_205] : memref<8x128xf32, #tpu.memory_space<vmem>>, vector<8x128xf32>
    tpu.vector_store %arg5[%c0_204, %c0_205], %529 {strides = array<i32>} : memref<8x128xf32, #tpu.memory_space<vmem>>, vector<8x128xf32>,
    %c0_206 = arith.constant 0 : index
    %c0_207 = arith.constant 0 : index
    %531 = vector.load %arg6[%c0_206, %c0_207] : memref<8x128xf32, #tpu.memory_space<vmem>>, vector<8x128xf32>
    tpu.vector_store %arg6[%c0_206, %c0_207], %527 {strides = array<i32>} : memref<8x128xf32, #tpu.memory_space<vmem>>, vector<8x128xf32>,
    %532 = arith.truncf %529 : vector<8x128xf32> to vector<8x128xbf16>
    %533 = arith.index_cast %c12_i32 : i32 to index
    %c0_208 = arith.constant 0 : index
    %c0_209 = arith.constant 0 : index
    %534 = vector.load %arg4[%533, %c0_208, %c0_209] : memref<16x8x128xbf16, #tpu.memory_space<vmem>>, vector<1x8x128xbf16>
    %535 = vector.shape_cast %534 : vector<1x8x128xbf16> to vector<8x128xbf16>
    %536 = vector.shape_cast %532 : vector<8x128xbf16> to vector<1x8x128xbf16>
    tpu.vector_store %arg4[%533, %c0_208, %c0_209], %536 {strides = array<i32>} : memref<16x8x128xbf16, #tpu.memory_space<vmem>>, vector<1x8x128xbf16>,
    %c13_i32 = arith.constant 13 : i32
    %c0_210 = arith.constant 0 : index
    %c0_211 = arith.constant 0 : index
    %537 = vector.load %arg5[%c0_210, %c0_211] : memref<8x128xf32, #tpu.memory_space<vmem>>, vector<8x128xf32>
    %c0_212 = arith.constant 0 : index
    %c0_213 = arith.constant 0 : index
    %538 = vector.load %arg6[%c0_212, %c0_213] : memref<8x128xf32, #tpu.memory_space<vmem>>, vector<8x128xf32>
    %539 = arith.index_cast %c13_i32 : i32 to index
    %c0_214 = arith.constant 0 : index
    %c0_215 = arith.constant 0 : index
    %540 = vector.load %arg2[%539, %c0_214, %c0_215] : memref<16x8x512xbf16, #tpu.memory_space<vmem>>, vector<1x8x512xbf16>
    %541 = vector.shape_cast %540 : vector<1x8x512xbf16> to vector<8x512xbf16>
    %542 = arith.extf %541 : vector<8x512xbf16> to vector<8x512xf32>
    %543 = arith.truncf %537 : vector<8x128xf32> to vector<8x128xbf16>
    %cst_216 = arith.constant dense<0.000000e+00> : vector<8x512xf32>
    %544 = tpu.matmul %543, %3, %cst_216 {dimension_numbers = #tpu.dot_dimension_numbers<[1], [0], [0], [1], [0, 0, 1, 1], [], []>} : vector<8x128xbf16>, vector<128x512xbf16>, vector<8x512xf32> -> vector<8x512xf32>
    %545 = arith.addf %542, %544 : vector<8x512xf32>
    %546 = vector.extract_strided_slice %545 {offsets = [0, 0], sizes = [8, 128], strides = [1, 1]} : vector<8x512xf32> to vector<8x128xf32>
    %547 = arith.negf %546 : vector<8x128xf32>
    %548 = math.exp %547 : vector<8x128xf32>
    %cst_217 = arith.constant 1.000000e+00 : f32
    %549 = vector.broadcast %cst_217 : f32 to vector<8x128xf32>
    %550 = arith.addf %549, %548 : vector<8x128xf32>
    %551 = arith.divf %549, %550 : vector<8x128xf32>
    %552 = vector.extract_strided_slice %545 {offsets = [0, 128], sizes = [8, 128], strides = [1, 1]} : vector<8x512xf32> to vector<8x128xf32>
    %553 = arith.negf %552 : vector<8x128xf32>
    %554 = math.exp %553 : vector<8x128xf32>
    %cst_218 = arith.constant 1.000000e+00 : f32
    %555 = vector.broadcast %cst_218 : f32 to vector<8x128xf32>
    %556 = arith.addf %555, %554 : vector<8x128xf32>
    %557 = arith.divf %555, %556 : vector<8x128xf32>
    %558 = vector.extract_strided_slice %545 {offsets = [0, 256], sizes = [8, 128], strides = [1, 1]} : vector<8x512xf32> to vector<8x128xf32>
    %559 = math.tanh %558 : vector<8x128xf32>
    %560 = vector.extract_strided_slice %545 {offsets = [0, 384], sizes = [8, 128], strides = [1, 1]} : vector<8x512xf32> to vector<8x128xf32>
    %561 = arith.negf %560 : vector<8x128xf32>
    %562 = math.exp %561 : vector<8x128xf32>
    %cst_219 = arith.constant 1.000000e+00 : f32
    %563 = vector.broadcast %cst_219 : f32 to vector<8x128xf32>
    %564 = arith.addf %563, %562 : vector<8x128xf32>
    %565 = arith.divf %563, %564 : vector<8x128xf32>
    %566 = arith.mulf %557, %538 : vector<8x128xf32>
    %567 = arith.mulf %551, %559 : vector<8x128xf32>
    %568 = arith.addf %566, %567 : vector<8x128xf32>
    %569 = math.tanh %568 : vector<8x128xf32>
    %570 = arith.mulf %565, %569 : vector<8x128xf32>
    %c0_220 = arith.constant 0 : index
    %c0_221 = arith.constant 0 : index
    %571 = vector.load %arg5[%c0_220, %c0_221] : memref<8x128xf32, #tpu.memory_space<vmem>>, vector<8x128xf32>
    tpu.vector_store %arg5[%c0_220, %c0_221], %570 {strides = array<i32>} : memref<8x128xf32, #tpu.memory_space<vmem>>, vector<8x128xf32>,
    %c0_222 = arith.constant 0 : index
    %c0_223 = arith.constant 0 : index
    %572 = vector.load %arg6[%c0_222, %c0_223] : memref<8x128xf32, #tpu.memory_space<vmem>>, vector<8x128xf32>
    tpu.vector_store %arg6[%c0_222, %c0_223], %568 {strides = array<i32>} : memref<8x128xf32, #tpu.memory_space<vmem>>, vector<8x128xf32>,
    %573 = arith.truncf %570 : vector<8x128xf32> to vector<8x128xbf16>
    %574 = arith.index_cast %c13_i32 : i32 to index
    %c0_224 = arith.constant 0 : index
    %c0_225 = arith.constant 0 : index
    %575 = vector.load %arg4[%574, %c0_224, %c0_225] : memref<16x8x128xbf16, #tpu.memory_space<vmem>>, vector<1x8x128xbf16>
    %576 = vector.shape_cast %575 : vector<1x8x128xbf16> to vector<8x128xbf16>
    %577 = vector.shape_cast %573 : vector<8x128xbf16> to vector<1x8x128xbf16>
    tpu.vector_store %arg4[%574, %c0_224, %c0_225], %577 {strides = array<i32>} : memref<16x8x128xbf16, #tpu.memory_space<vmem>>, vector<1x8x128xbf16>,
    %c14_i32 = arith.constant 14 : i32
    %c0_226 = arith.constant 0 : index
    %c0_227 = arith.constant 0 : index
    %578 = vector.load %arg5[%c0_226, %c0_227] : memref<8x128xf32, #tpu.memory_space<vmem>>, vector<8x128xf32>
    %c0_228 = arith.constant 0 : index
    %c0_229 = arith.constant 0 : index
    %579 = vector.load %arg6[%c0_228, %c0_229] : memref<8x128xf32, #tpu.memory_space<vmem>>, vector<8x128xf32>
    %580 = arith.index_cast %c14_i32 : i32 to index
    %c0_230 = arith.constant 0 : index
    %c0_231 = arith.constant 0 : index
    %581 = vector.load %arg2[%580, %c0_230, %c0_231] : memref<16x8x512xbf16, #tpu.memory_space<vmem>>, vector<1x8x512xbf16>
    %582 = vector.shape_cast %581 : vector<1x8x512xbf16> to vector<8x512xbf16>
    %583 = arith.extf %582 : vector<8x512xbf16> to vector<8x512xf32>
    %584 = arith.truncf %578 : vector<8x128xf32> to vector<8x128xbf16>
    %cst_232 = arith.constant dense<0.000000e+00> : vector<8x512xf32>
    %585 = tpu.matmul %584, %3, %cst_232 {dimension_numbers = #tpu.dot_dimension_numbers<[1], [0], [0], [1], [0, 0, 1, 1], [], []>} : vector<8x128xbf16>, vector<128x512xbf16>, vector<8x512xf32> -> vector<8x512xf32>
    %586 = arith.addf %583, %585 : vector<8x512xf32>
    %587 = vector.extract_strided_slice %586 {offsets = [0, 0], sizes = [8, 128], strides = [1, 1]} : vector<8x512xf32> to vector<8x128xf32>
    %588 = arith.negf %587 : vector<8x128xf32>
    %589 = math.exp %588 : vector<8x128xf32>
    %cst_233 = arith.constant 1.000000e+00 : f32
    %590 = vector.broadcast %cst_233 : f32 to vector<8x128xf32>
    %591 = arith.addf %590, %589 : vector<8x128xf32>
    %592 = arith.divf %590, %591 : vector<8x128xf32>
    %593 = vector.extract_strided_slice %586 {offsets = [0, 128], sizes = [8, 128], strides = [1, 1]} : vector<8x512xf32> to vector<8x128xf32>
    %594 = arith.negf %593 : vector<8x128xf32>
    %595 = math.exp %594 : vector<8x128xf32>
    %cst_234 = arith.constant 1.000000e+00 : f32
    %596 = vector.broadcast %cst_234 : f32 to vector<8x128xf32>
    %597 = arith.addf %596, %595 : vector<8x128xf32>
    %598 = arith.divf %596, %597 : vector<8x128xf32>
    %599 = vector.extract_strided_slice %586 {offsets = [0, 256], sizes = [8, 128], strides = [1, 1]} : vector<8x512xf32> to vector<8x128xf32>
    %600 = math.tanh %599 : vector<8x128xf32>
    %601 = vector.extract_strided_slice %586 {offsets = [0, 384], sizes = [8, 128], strides = [1, 1]} : vector<8x512xf32> to vector<8x128xf32>
    %602 = arith.negf %601 : vector<8x128xf32>
    %603 = math.exp %602 : vector<8x128xf32>
    %cst_235 = arith.constant 1.000000e+00 : f32
    %604 = vector.broadcast %cst_235 : f32 to vector<8x128xf32>
    %605 = arith.addf %604, %603 : vector<8x128xf32>
    %606 = arith.divf %604, %605 : vector<8x128xf32>
    %607 = arith.mulf %598, %579 : vector<8x128xf32>
    %608 = arith.mulf %592, %600 : vector<8x128xf32>
    %609 = arith.addf %607, %608 : vector<8x128xf32>
    %610 = math.tanh %609 : vector<8x128xf32>
    %611 = arith.mulf %606, %610 : vector<8x128xf32>
    %c0_236 = arith.constant 0 : index
    %c0_237 = arith.constant 0 : index
    %612 = vector.load %arg5[%c0_236, %c0_237] : memref<8x128xf32, #tpu.memory_space<vmem>>, vector<8x128xf32>
    tpu.vector_store %arg5[%c0_236, %c0_237], %611 {strides = array<i32>} : memref<8x128xf32, #tpu.memory_space<vmem>>, vector<8x128xf32>,
    %c0_238 = arith.constant 0 : index
    %c0_239 = arith.constant 0 : index
    %613 = vector.load %arg6[%c0_238, %c0_239] : memref<8x128xf32, #tpu.memory_space<vmem>>, vector<8x128xf32>
    tpu.vector_store %arg6[%c0_238, %c0_239], %609 {strides = array<i32>} : memref<8x128xf32, #tpu.memory_space<vmem>>, vector<8x128xf32>,
    %614 = arith.truncf %611 : vector<8x128xf32> to vector<8x128xbf16>
    %615 = arith.index_cast %c14_i32 : i32 to index
    %c0_240 = arith.constant 0 : index
    %c0_241 = arith.constant 0 : index
    %616 = vector.load %arg4[%615, %c0_240, %c0_241] : memref<16x8x128xbf16, #tpu.memory_space<vmem>>, vector<1x8x128xbf16>
    %617 = vector.shape_cast %616 : vector<1x8x128xbf16> to vector<8x128xbf16>
    %618 = vector.shape_cast %614 : vector<8x128xbf16> to vector<1x8x128xbf16>
    tpu.vector_store %arg4[%615, %c0_240, %c0_241], %618 {strides = array<i32>} : memref<16x8x128xbf16, #tpu.memory_space<vmem>>, vector<1x8x128xbf16>,
    %c15_i32 = arith.constant 15 : i32
    %c0_242 = arith.constant 0 : index
    %c0_243 = arith.constant 0 : index
    %619 = vector.load %arg5[%c0_242, %c0_243] : memref<8x128xf32, #tpu.memory_space<vmem>>, vector<8x128xf32>
    %c0_244 = arith.constant 0 : index
    %c0_245 = arith.constant 0 : index
    %620 = vector.load %arg6[%c0_244, %c0_245] : memref<8x128xf32, #tpu.memory_space<vmem>>, vector<8x128xf32>
    %621 = arith.index_cast %c15_i32 : i32 to index
    %c0_246 = arith.constant 0 : index
    %c0_247 = arith.constant 0 : index
    %622 = vector.load %arg2[%621, %c0_246, %c0_247] : memref<16x8x512xbf16, #tpu.memory_space<vmem>>, vector<1x8x512xbf16>
    %623 = vector.shape_cast %622 : vector<1x8x512xbf16> to vector<8x512xbf16>
    %624 = arith.extf %623 : vector<8x512xbf16> to vector<8x512xf32>
    %625 = arith.truncf %619 : vector<8x128xf32> to vector<8x128xbf16>
    %cst_248 = arith.constant dense<0.000000e+00> : vector<8x512xf32>
    %626 = tpu.matmul %625, %3, %cst_248 {dimension_numbers = #tpu.dot_dimension_numbers<[1], [0], [0], [1], [0, 0, 1, 1], [], []>} : vector<8x128xbf16>, vector<128x512xbf16>, vector<8x512xf32> -> vector<8x512xf32>
    %627 = arith.addf %624, %626 : vector<8x512xf32>
    %628 = vector.extract_strided_slice %627 {offsets = [0, 0], sizes = [8, 128], strides = [1, 1]} : vector<8x512xf32> to vector<8x128xf32>
    %629 = arith.negf %628 : vector<8x128xf32>
    %630 = math.exp %629 : vector<8x128xf32>
    %cst_249 = arith.constant 1.000000e+00 : f32
    %631 = vector.broadcast %cst_249 : f32 to vector<8x128xf32>
    %632 = arith.addf %631, %630 : vector<8x128xf32>
    %633 = arith.divf %631, %632 : vector<8x128xf32>
    %634 = vector.extract_strided_slice %627 {offsets = [0, 128], sizes = [8, 128], strides = [1, 1]} : vector<8x512xf32> to vector<8x128xf32>
    %635 = arith.negf %634 : vector<8x128xf32>
    %636 = math.exp %635 : vector<8x128xf32>
    %cst_250 = arith.constant 1.000000e+00 : f32
    %637 = vector.broadcast %cst_250 : f32 to vector<8x128xf32>
    %638 = arith.addf %637, %636 : vector<8x128xf32>
    %639 = arith.divf %637, %638 : vector<8x128xf32>
    %640 = vector.extract_strided_slice %627 {offsets = [0, 256], sizes = [8, 128], strides = [1, 1]} : vector<8x512xf32> to vector<8x128xf32>
    %641 = math.tanh %640 : vector<8x128xf32>
    %642 = vector.extract_strided_slice %627 {offsets = [0, 384], sizes = [8, 128], strides = [1, 1]} : vector<8x512xf32> to vector<8x128xf32>
    %643 = arith.negf %642 : vector<8x128xf32>
    %644 = math.exp %643 : vector<8x128xf32>
    %cst_251 = arith.constant 1.000000e+00 : f32
    %645 = vector.broadcast %cst_251 : f32 to vector<8x128xf32>
    %646 = arith.addf %645, %644 : vector<8x128xf32>
    %647 = arith.divf %645, %646 : vector<8x128xf32>
    %648 = arith.mulf %639, %620 : vector<8x128xf32>
    %649 = arith.mulf %633, %641 : vector<8x128xf32>
    %650 = arith.addf %648, %649 : vector<8x128xf32>
    %651 = math.tanh %650 : vector<8x128xf32>
    %652 = arith.mulf %647, %651 : vector<8x128xf32>
    %c0_252 = arith.constant 0 : index
    %c0_253 = arith.constant 0 : index
    %653 = vector.load %arg5[%c0_252, %c0_253] : memref<8x128xf32, #tpu.memory_space<vmem>>, vector<8x128xf32>
    tpu.vector_store %arg5[%c0_252, %c0_253], %652 {strides = array<i32>} : memref<8x128xf32, #tpu.memory_space<vmem>>, vector<8x128xf32>,
    %c0_254 = arith.constant 0 : index
    %c0_255 = arith.constant 0 : index
    %654 = vector.load %arg6[%c0_254, %c0_255] : memref<8x128xf32, #tpu.memory_space<vmem>>, vector<8x128xf32>
    tpu.vector_store %arg6[%c0_254, %c0_255], %650 {strides = array<i32>} : memref<8x128xf32, #tpu.memory_space<vmem>>, vector<8x128xf32>,
    %655 = arith.truncf %652 : vector<8x128xf32> to vector<8x128xbf16>
    %656 = arith.index_cast %c15_i32 : i32 to index
    %c0_256 = arith.constant 0 : index
    %c0_257 = arith.constant 0 : index
    %657 = vector.load %arg4[%656, %c0_256, %c0_257] : memref<16x8x128xbf16, #tpu.memory_space<vmem>>, vector<1x8x128xbf16>
    %658 = vector.shape_cast %657 : vector<1x8x128xbf16> to vector<8x128xbf16>
    %659 = vector.shape_cast %655 : vector<8x128xbf16> to vector<1x8x128xbf16>
    tpu.vector_store %arg4[%656, %c0_256, %c0_257], %659 {strides = array<i32>} : memref<16x8x128xbf16, #tpu.memory_space<vmem>>, vector<1x8x128xbf16>,
    %c16_i32 = arith.constant 16 : i32
    return
  }
  func.func @transform_0(%arg0: i32, %arg1: i32) -> (i32, i32, i32) {
    %c0_i32 = arith.constant 0 : i32
    %c0_i32_0 = arith.constant 0 : i32
    return %arg1, %arg0, %c0_i32 : i32, i32, i32
  }
  func.func @transform_1(%arg0: i32, %arg1: i32) -> (i32, i32) {
    %c0_i32 = arith.constant 0 : i32
    %c0_i32_0 = arith.constant 0 : i32
    %c0_i32_1 = arith.constant 0 : i32
    return %c0_i32, %c0_i32_0 : i32, i32
  }
  func.func @transform_2(%arg0: i32, %arg1: i32) -> (i32, i32, i32) {
    %c0_i32 = arith.constant 0 : i32
    %c0_i32_0 = arith.constant 0 : i32
    return %arg1, %arg0, %c0_i32 : i32, i32, i32
  }
}

</mosaic_0001>

<bundles_post_ra>
// kernel: decoder_rnn_b_forward.5
= control target key start
LH: loop header
LB: loop body
LE: loop exit
PB: predicated region body
PF: predicated region fallthrough
CT: control target
= control target key end

     0   :  { %8 = vsyncpa [#allocation3], 0  ;;  %s690_s0 = inlined_call_operand.hbm [shape: bf16[128,128], index: 0, kind: input, shape index: {}]   ;;  %s691_s1 = inlined_call_operand.hbm [shape: bf16[128,256], index: 1, kind: input, shape index: {}]   ;;  %s692_s2 = inlined_call_operand.hbm [shape: f32[1,256], index: 2, kind: input, shape index: {}]   ;;  %s693_s3 = inlined_call_operand.hbm [shape: f32[128,256], index: 3, kind: output, shape index: {}]  }
   0x1   :  { %9 = vsyncpa [#allocation6], 0 }
   0x2   :  { %10 = vsyncpa [#allocation4], 0  ;;  %s567_s12 = smov [#allocation5]   ;;  %s473_s16 = scalar_lea.hbm %s691_s1, 2048 }
   0x3   :  { %s28_s13 = sshll.u32 %s567_s12, 4  ;;  %p474_p0 = scmp.ne.s32.totalorder %s691_s1, %s473_s16  ;;  %s29_s13 = int_to_ptr.vmem [resolvable:$true] %s28_s13 }
   0x4   :  { %p477_p1 = scmp.lt.u32.totalorder %s473_s16, %s691_s1 }
   0x6   :  { %p479_p2 = pnand %p477_p1, %p474_p0 }
   0x8   :  { %482 = shalt.err (!%p479_p2)
}
   0x9   :  { %s483_s21 = scalar_lea.vmem %s29_s13, 2048  ;;  %p488_p4 = scmp.lt.s32.totalorder %s29_s13, %s29_s13 }
   0xa   :  { %p484_p3 = scmp.ne.s32.totalorder %s29_s13, %s483_s21  ;;  %p489_p5 = scmp.lt.s32.totalorder %s483_s21, %s483_s21 }
   0xc   :  { %p490_p6 = por %p489_p5, %p488_p4 }
   0xe   :  { %p491_p7 = pnand %p490_p6, %p484_p3 }
  0x10   :  { %494 = shalt.err (!%p491_p7)
}
  0x11   :  { %s568_s22 = smov 128   ;;  %s569_s23 = smov 8  }
  0x12   :  { %34 = dma.hbm_to_vmem [thread:$0]  %s691_s1, 2048, %s29_s13, [#allocation6], %s568_s22, %s568_s22, %s569_s23  }
  0x13   :  { %s570_s26 = smov [#allocation2]   ;;  %s495_s30 = scalar_lea.hbm %s690_s0, 1024 }
  0x14   :  { %s16_s27 = sshll.u32 %s570_s26, 4  ;;  %p496_p8 = scmp.ne.s32.totalorder %s690_s0, %s495_s30  ;;  %s17_s27 = int_to_ptr.vmem [resolvable:$true] %s16_s27 }
  0x15   :  { %p499_p9 = scmp.lt.u32.totalorder %s495_s30, %s690_s0 }
  0x17   :  { %p501_p10 = pnand %p499_p9, %p496_p8 }
  0x19   :  { %504 = shalt.err (!%p501_p10)
}
  0x1a   :  { %s505_s8 = scalar_lea.vmem %s17_s27, 1024  ;;  %p510_p12 = scmp.lt.s32.totalorder %s17_s27, %s17_s27 }
  0x1b   :  { %p506_p11 = scmp.ne.s32.totalorder %s17_s27, %s505_s8  ;;  %p511_p13 = scmp.lt.s32.totalorder %s505_s8, %s505_s8 }
  0x1d   :  { %p512_p0 = por %p511_p13, %p510_p12 }
  0x1f   :  { %p513_p1 = pnand %p512_p0, %p506_p11 }
  0x21   :  { %516 = shalt.err (!%p513_p1)
}
  0x22   :  { %s571_s1 = smov 64   ;;  %s572_s9 = smov 4  }
  0x23   :  { %22 = dma.hbm_to_vmem [thread:$0]  %s690_s0, 1024, %s17_s27, [#allocation3], %s571_s1, %s571_s1, %s572_s9  }
  0x24   :  { %s573_s12 = smov [#allocation7]   ;;  %s517_s16 = scalar_lea.hbm %s692_s2, 32 }
  0x25   :  { %s41_s13 = sshll.u32 %s573_s12, 4  ;;  %p518_p2 = scmp.ne.s32.totalorder %s692_s2, %s517_s16  ;;  %s42_s13 = int_to_ptr.vmem [resolvable:$true] %s41_s13 }
  0x26   :  { %p521_p3 = scmp.lt.u32.totalorder %s517_s16, %s692_s2 }
  0x28   :  { %p523_p4 = pnand %p521_p3, %p518_p2 }
  0x2a   :  { %526 = shalt.err (!%p523_p4)
}
  0x2b   :  { %s527_s21 = scalar_lea.vmem %s42_s13, 32  ;;  %p532_p6 = scmp.lt.s32.totalorder %s42_s13, %s42_s13 }
  0x2c   :  { %p528_p5 = scmp.ne.s32.totalorder %s42_s13, %s527_s21  ;;  %p533_p7 = scmp.lt.s32.totalorder %s527_s21, %s527_s21 }
  0x2e   :  { %p534_p8 = por %p533_p7, %p532_p6 }
  0x30   :  { %p535_p9 = pnand %p534_p8, %p528_p5 }
  0x32   :  { %538 = shalt.err (!%p535_p9)
}
  0x33   :  { %44 = dma.hbm_to_vmem [thread:$0]  %s692_s2, 32, %s42_s13, [#allocation6]  }
  0x34   :  { %561 = dma.done.wait [#allocation3], 1024  }
  0x35   :  { %562 = vsyncadd [#allocation3], 4294966272 }
  0x36   :  { %563 = dma.done.wait [#allocation6], 2080  }
  0x37   :  { %564 = vsyncadd [#allocation6], 4294965216  ;;  %v574_v0 = vmov 0   ;;  %v441_v1 = vld [vmem:[#allocation5 + $0x4] ss:$8 sps:$4 sm:$0xff]   ;;  %v469_v21 = vld [vmem:[#allocation2 + $0x10] sm:$0xff]   ;;  %v89_v25 = vlaneseq }
  0x38   :  { %259 = vmatprep.mubr.bf16.mxu0 %v574_v0  ;;  %299 = vmatprep.mubr.bf16.mxu1 %v574_v0  ;;  %v443_v2 = vld [vmem:[#allocation5] ss:$8 sps:$4 sm:$0xff]   ;;  %v444_v3 = vld [vmem:[#allocation5 + $0x14] ss:$8 sps:$4 sm:$0xff]   ;;  %v446_v4 = vld [vmem:[#allocation5 + $0x10] ss:$8 sps:$4 sm:$0xff]  }
  0x39   :  { %227 = vmatprep.subr.bf16.mxu0 %v441_v1  ;;  %414 = vmatprep.subr.bf16.mxu1 %v441_v1  ;;  %v447_v5 = vld [vmem:[#allocation5 + $0x24] ss:$8 sps:$4 sm:$0xff]   ;;  %v449_v6 = vld [vmem:[#allocation5 + $0x20] ss:$8 sps:$4 sm:$0xff]   ;;  %v450_v7 = vld [vmem:[#allocation5 + $0x34] ss:$8 sps:$4 sm:$0xff]  }
  0x3a   :  { %228 = vmatpush1.bf16.msra.mxu0 %v443_v2  ;;  %422 = vmatpush1.bf16.msra.mxu1 %v443_v2  ;;  %v452_v8 = vld [vmem:[#allocation5 + $0x30] ss:$8 sps:$4 sm:$0xff]   ;;  %v453_v9 = vld [vmem:[#allocation5 + $0x44] ss:$8 sps:$4 sm:$0xff]   ;;  %v455_v10 = vld [vmem:[#allocation5 + $0x40] ss:$8 sps:$4 sm:$0xff]  }
  0x3b   :  { %229 = vmatprep.subr.bf16.mxu0 %v444_v3  ;;  %415 = vmatprep.subr.bf16.mxu1 %v444_v3  ;;  %v456_v11 = vld [vmem:[#allocation5 + $0x54] ss:$8 sps:$4 sm:$0xff]   ;;  %v458_v12 = vld [vmem:[#allocation5 + $0x50] ss:$8 sps:$4 sm:$0xff]   ;;  %v459_v13 = vld [vmem:[#allocation5 + $0x64] ss:$8 sps:$4 sm:$0xff]  }
  0x3c   :  { %v461_v14 = vld [vmem:[#allocation5 + $0x60] ss:$8 sps:$4 sm:$0xff]   ;;  %v462_v15 = vld [vmem:[#allocation5 + $0x74] ss:$8 sps:$4 sm:$0xff]   ;;  %v464_v16 = vld [vmem:[#allocation5 + $0x70] ss:$8 sps:$4 sm:$0xff]  }
  0x3d   :  { %v465_v17 = vld [vmem:[#allocation2] sm:$0xff]   ;;  %v467_v19 = vld [vmem:[#allocation2 + $0x8] sm:$0xff]   ;;  %v470_v22 = vld [vmem:[#allocation2 + $0x30] sm:$0xff]   ;;  %v90_v26 = vshrl.u32 %v89_v25, 7  ;;  %s575_s2 = smov [#allocation8]  }
  0x3e   :  { %230 = vmatpush1.bf16.msra.mxu0 %v446_v4  ;;  %423 = vmatpush1.bf16.msra.mxu1 %v446_v4  ;;  %v466_v18 = vld [vmem:[#allocation2 + $0x20] sm:$0xff]   ;;  %v468_v20 = vld [vmem:[#allocation2 + $0x28] sm:$0xff]   ;;  %v471_v23 = vld [vmem:[#allocation2 + $0x18] sm:$0xff]   ;;  %s377_s23 = sshll.u32 %s575_s2, 4  ;;  %s378_s23 = int_to_ptr.vmem [resolvable:$true] %s377_s23 }
  0x3f   :  { %231 = vmatprep.subr.bf16.mxu0 %v447_v5  ;;  %416 = vmatprep.subr.bf16.mxu1 %v447_v5  ;;  %v472_v24 = vld [vmem:[#allocation2 + $0x38] sm:$0xff]   ;;  %v91_v27 = vsub.s32 0, %v90_v26  ;;  %v87_v28 = vld [vmem:[#allocation7] sm:$0x3]  ;;  %v95_v29 = vsub.s32 1, %v90_v26  ;;  %s539_s24 = scalar_lea.vmem %s378_s23, 4096  ;;  %p544_p11 = scmp.lt.s32.totalorder %s378_s23, %s378_s23 }
  0x40   :  { %p540_p10 = scmp.ne.s32.totalorder %s378_s23, %s539_s24  ;;  %p545_p12 = scmp.lt.s32.totalorder %s539_s24, %s539_s24 }
  0x41   :  { %v642_v30 = vrot.slane %v87_v28, %v91_v27  ;;  %v644_v31 = vrot.slane %v87_v28, %v95_v29 }
  0x42   :  { %232 = vmatpush1.bf16.msra.mxu0 %v449_v6  ;;  %424 = vmatpush1.bf16.msra.mxu1 %v449_v6  ;;  %p546_p13 = por %p545_p12, %p544_p11 }
  0x43   :  { %233 = vmatprep.subr.bf16.mxu0 %v450_v7  ;;  %417 = vmatprep.subr.bf16.mxu1 %v450_v7 }
  0x44   :  { %p547_p0 = pnand %p546_p13, %p540_p10 }
  0x46   :  { %234 = vmatpush1.bf16.msra.mxu0 %v452_v8  ;;  %425 = vmatpush1.bf16.msra.mxu1 %v452_v8 }
  0x47   :  { %235 = vmatprep.subr.bf16.mxu0 %v453_v9  ;;  %418 = vmatprep.subr.bf16.mxu1 %v453_v9 }
  0x4a   :  { %236 = vmatpush1.bf16.msra.mxu0 %v455_v10  ;;  %426 = vmatpush1.bf16.msra.mxu1 %v455_v10 }
  0x4b   :  { %237 = vmatprep.subr.bf16.mxu0 %v456_v11  ;;  %419 = vmatprep.subr.bf16.mxu1 %v456_v11 }
  0x4e   :  { %238 = vmatpush1.bf16.msra.mxu0 %v458_v12  ;;  %427 = vmatpush1.bf16.msra.mxu1 %v458_v12 }
  0x4f   :  { %239 = vmatprep.subr.bf16.mxu0 %v459_v13  ;;  %420 = vmatprep.subr.bf16.mxu1 %v459_v13 }
  0x52   :  { %240 = vmatpush1.bf16.msra.mxu0 %v461_v14  ;;  %428 = vmatpush1.bf16.msra.mxu1 %v461_v14 }
  0x53   :  { %241 = vmatprep.subr.bf16.mxu0 %v462_v15  ;;  %421 = vmatprep.subr.bf16.mxu1 %v462_v15 }
  0x56   :  { %242 = vmatpush1.bf16.msra.mxu0 %v464_v16  ;;  %429 = vmatpush1.bf16.msra.mxu1 %v464_v16 }
  0x59   :  { %260 = vmatmul.mubr.bf16.vlgmr.msra.gmra.mrb[0].mxu0 %v465_v17  ;;  %300 = vmatmul.mubr.bf16.vlgmr.msra.gmra.mrb[0].mxu1 %v466_v18 }
  0x5a   :  { %269 = vmatprep.mubr.bf16.mxu0 %v574_v0  ;;  %309 = vmatprep.mubr.bf16.mxu1 %v574_v0 }
  0x61   :  { %270 = vmatmul.mubr.bf16.gmra.mrb[4].mxu0 %v467_v19  ;;  %310 = vmatmul.mubr.bf16.gmra.mrb[4].mxu1 %v468_v20 }
  0x62   :  { %279 = vmatprep.mubr.bf16.mxu0 %v574_v0  ;;  %319 = vmatprep.mubr.bf16.mxu1 %v574_v0 }
  0x69   :  { %280 = vmatmul.mubr.bf16.gmra.mrb[8].mxu0 %v469_v21  ;;  %320 = vmatmul.mubr.bf16.gmra.mrb[8].mxu1 %v470_v22 }
  0x6a   :  { %289 = vmatprep.mubr.bf16.mxu0 %v574_v0  ;;  %329 = vmatprep.mubr.bf16.mxu1 %v574_v0 }
  0x71   :  { %290 = vmatmul.mubr.bf16.gmra.mrb[12].mxu0 %v471_v23  ;;  %330 = vmatmul.mubr.bf16.gmra.mrb[12].mxu1 %v472_v24 }
 0x12c   :  { %v261_v32 = vpop.f32.mrb[0].mxu0  ;;  %v301_v33 = vpop.f32.mrb[0].mxu1 }
 0x12d   :  { %v262_v34 = vadd.f32 %v261_v32, %v642_v30  ;;  %v302_v35 = vadd.f32 %v301_v33, %v642_v30  ;;  %v263_v36 = vpop.f32.mrb[1].mxu0  ;;  %v303_v37 = vpop.f32.mrb[1].mxu1 }
 0x12e   :  { %v264_v38 = vadd.f32 %v263_v36, %v644_v31  ;;  %v304_v39 = vadd.f32 %v303_v37, %v644_v31  ;;  %v265_v40 = vpop.f32.mrb[2].mxu0  ;;  %v305_v41 = vpop.f32.mrb[2].mxu1 }
 0x12f   :  { %340 = vst [vmem:[#allocation8] sm:$0xff] %v262_v34  ;;  %356 = vst [vmem:[#allocation8 + $0x80] sm:$0xff] %v302_v35  ;;  %v266_v42 = vadd.f32 %v265_v40, %v642_v30  ;;  %v306_v43 = vadd.f32 %v305_v41, %v642_v30  ;;  %v267_v44 = vpop.f32.mrb[3].mxu0  ;;  %v307_v45 = vpop.f32.mrb[3].mxu1 }
 0x130   :  { %341 = vst [vmem:[#allocation8 + $0x8] sm:$0xff] %v264_v38  ;;  %357 = vst [vmem:[#allocation8 + $0x88] sm:$0xff] %v304_v39  ;;  %v268_v46 = vadd.f32 %v267_v44, %v644_v31  ;;  %v308_v47 = vadd.f32 %v307_v45, %v644_v31 }
 0x131   :  { %342 = vst [vmem:[#allocation8 + $0x10] sm:$0xff] %v266_v42  ;;  %358 = vst [vmem:[#allocation8 + $0x90] sm:$0xff] %v306_v43 }
 0x132   :  { %343 = vst [vmem:[#allocation8 + $0x18] sm:$0xff] %v268_v46  ;;  %359 = vst [vmem:[#allocation8 + $0x98] sm:$0xff] %v308_v47 }
 0x134   :  { %v271_v48 = vpop.f32.mrb[4].mxu0  ;;  %v311_v49 = vpop.f32.mrb[4].mxu1 }
 0x135   :  { %v272_v50 = vadd.f32 %v271_v48, %v642_v30  ;;  %v312_v51 = vadd.f32 %v311_v49, %v642_v30  ;;  %v273_v52 = vpop.f32.mrb[5].mxu0  ;;  %v313_v53 = vpop.f32.mrb[5].mxu1 }
 0x136   :  { %v274_v54 = vadd.f32 %v273_v52, %v644_v31  ;;  %v314_v55 = vadd.f32 %v313_v53, %v644_v31  ;;  %v275_v56 = vpop.f32.mrb[6].mxu0  ;;  %v315_v57 = vpop.f32.mrb[6].mxu1 }
 0x137   :  { %344 = vst [vmem:[#allocation8 + $0x20] sm:$0xff] %v272_v50  ;;  %360 = vst [vmem:[#allocation8 + $0xa0] sm:$0xff] %v312_v51  ;;  %v276_v58 = vadd.f32 %v275_v56, %v642_v30  ;;  %v316_v59 = vadd.f32 %v315_v57, %v642_v30  ;;  %v277_v60 = vpop.f32.mrb[7].mxu0  ;;  %v317_v61 = vpop.f32.mrb[7].mxu1 }
 0x138   :  { %345 = vst [vmem:[#allocation8 + $0x28] sm:$0xff] %v274_v54  ;;  %361 = vst [vmem:[#allocation8 + $0xa8] sm:$0xff] %v314_v55  ;;  %v278_v62 = vadd.f32 %v277_v60, %v644_v31  ;;  %v318_v63 = vadd.f32 %v317_v61, %v644_v31 }
 0x139   :  { %346 = vst [vmem:[#allocation8 + $0x30] sm:$0xff] %v276_v58  ;;  %362 = vst [vmem:[#allocation8 + $0xb0] sm:$0xff] %v316_v59 }
 0x13a   :  { %347 = vst [vmem:[#allocation8 + $0x38] sm:$0xff] %v278_v62  ;;  %363 = vst [vmem:[#allocation8 + $0xb8] sm:$0xff] %v318_v63 }
 0x13c   :  { %v281_v0 = vpop.f32.mrb[8].mxu0  ;;  %v321_v1 = vpop.f32.mrb[8].mxu1 }
 0x13d   :  { %v282_v2 = vadd.f32 %v281_v0, %v642_v30  ;;  %v322_v3 = vadd.f32 %v321_v1, %v642_v30  ;;  %v283_v4 = vpop.f32.mrb[9].mxu0  ;;  %v323_v5 = vpop.f32.mrb[9].mxu1 }
 0x13e   :  { %v284_v6 = vadd.f32 %v283_v4, %v644_v31  ;;  %v324_v7 = vadd.f32 %v323_v5, %v644_v31  ;;  %v285_v8 = vpop.f32.mrb[10].mxu0  ;;  %v325_v9 = vpop.f32.mrb[10].mxu1 }
 0x13f   :  { %348 = vst [vmem:[#allocation8 + $0x40] sm:$0xff] %v282_v2  ;;  %364 = vst [vmem:[#allocation8 + $0xc0] sm:$0xff] %v322_v3  ;;  %v286_v10 = vadd.f32 %v285_v8, %v642_v30  ;;  %v326_v11 = vadd.f32 %v325_v9, %v642_v30  ;;  %v287_v12 = vpop.f32.mrb[11].mxu0  ;;  %v327_v13 = vpop.f32.mrb[11].mxu1 }
 0x140   :  { %349 = vst [vmem:[#allocation8 + $0x48] sm:$0xff] %v284_v6  ;;  %365 = vst [vmem:[#allocation8 + $0xc8] sm:$0xff] %v324_v7  ;;  %v288_v14 = vadd.f32 %v287_v12, %v644_v31  ;;  %v328_v15 = vadd.f32 %v327_v13, %v644_v31 }
 0x141   :  { %350 = vst [vmem:[#allocation8 + $0x50] sm:$0xff] %v286_v10  ;;  %366 = vst [vmem:[#allocation8 + $0xd0] sm:$0xff] %v326_v11 }
 0x142   :  { %351 = vst [vmem:[#allocation8 + $0x58] sm:$0xff] %v288_v14  ;;  %367 = vst [vmem:[#allocation8 + $0xd8] sm:$0xff] %v328_v15 }
 0x144   :  { %v291_v16 = vpop.f32.mrb[12].mxu0  ;;  %v331_v17 = vpop.f32.mrb[12].mxu1 }
 0x145   :  { %v292_v18 = vadd.f32 %v291_v16, %v642_v30  ;;  %v332_v19 = vadd.f32 %v331_v17, %v642_v30  ;;  %v293_v20 = vpop.f32.mrb[13].mxu0  ;;  %v333_v21 = vpop.f32.mrb[13].mxu1 }
 0x146   :  { %v294_v22 = vadd.f32 %v293_v20, %v644_v31  ;;  %v334_v23 = vadd.f32 %v333_v21, %v644_v31  ;;  %v295_v24 = vpop.f32.mrb[14].mxu0  ;;  %v335_v25 = vpop.f32.mrb[14].mxu1 }
 0x147   :  { %352 = vst [vmem:[#allocation8 + $0x60] sm:$0xff] %v292_v18  ;;  %368 = vst [vmem:[#allocation8 + $0xe0] sm:$0xff] %v332_v19  ;;  %v296_v26 = vadd.f32 %v295_v24, %v642_v30  ;;  %v336_v27 = vadd.f32 %v335_v25, %v642_v30  ;;  %v297_v28 = vpop.f32.mrb[15].mxu0  ;;  %v337_v29 = vpop.f32.mrb[15].mxu1 }
 0x148   :  { %353 = vst [vmem:[#allocation8 + $0x68] sm:$0xff] %v294_v22  ;;  %369 = vst [vmem:[#allocation8 + $0xe8] sm:$0xff] %v334_v23  ;;  %v298_v32 = vadd.f32 %v297_v28, %v644_v31  ;;  %v338_v33 = vadd.f32 %v337_v29, %v644_v31 }
 0x149   :  { %354 = vst [vmem:[#allocation8 + $0x70] sm:$0xff] %v296_v26  ;;  %370 = vst [vmem:[#allocation8 + $0xf0] sm:$0xff] %v336_v27 }
 0x14a   :  { %355 = vst [vmem:[#allocation8 + $0x78] sm:$0xff] %v298_v32  ;;  %371 = vst [vmem:[#allocation8 + $0xf8] sm:$0xff] %v338_v33 }
 0x14b   :  { %550 = shalt.err (!%p547_p0)
}
 0x14c   :  { %s551_s27 = scalar_lea.hbm %s693_s3, 4096 }
 0x14d   :  { %p552_p1 = scmp.ne.s32.totalorder %s693_s3, %s551_s27  ;;  %p555_p2 = scmp.lt.u32.totalorder %s551_s27, %s693_s3 }
 0x14f   :  { %p557_p3 = pnand %p555_p2, %p552_p1 }
 0x151   :  { %560 = shalt.err (!%p557_p3)
}
 0x152   :  { %s576_s5 = smov 256   ;;  %s577_s6 = smov 16  }
 0x153   :  { %383 = dma.vmem_to_hbm [thread:$0]  %s378_s23, 4096, %s693_s3, [#allocation4], %s576_s5, %s576_s5, %s577_s6  }
 0x154   :  { %565 = dma.done.wait [#allocation4], 4096  }
 0x155   :  { %566 = vsyncadd [#allocation4], 4294963200 }
 0x156   :  { %387 = vsyncpa [#allocation3], 1 }
 0x157   :  { %388 = vsyncpa [#allocation6], 1 }
 0x158   :  { %389 = vsyncpa [#allocation4], 1 }

// kernel: decoder_rnn_b_forward.3
= control target key start
LH: loop header
LB: loop body
LE: loop exit
PB: predicated region body
PF: predicated region fallthrough
CT: control target
= control target key end

     0   :  { %s1456_s0 = inlined_call_operand.hbm [shape: bf16[128,32], index: 0, kind: input, shape index: {}]   ;;  %s1457_s1 = inlined_call_operand.hbm [shape: bf16[32,512], index: 1, kind: input, shape index: {}]   ;;  %s1458_s2 = inlined_call_operand.hbm [shape: f32[1,512], index: 2, kind: input, shape index: {}]   ;;  %s1459_s3 = inlined_call_operand.hbm [shape: bf16[128,512], index: 3, kind: output, shape index: {}]  }
   0x1   :  { %1468 = sst [smem:[#allocation13_spill]] %s1457_s1 }
   0x2   :  { %8 = vsyncpa [#allocation3], 0 }
   0x3   :  { %9 = vsyncpa [#allocation6], 0 }
   0x4   :  { %11 = vsyncpa [#allocation6 + $0x1], 0 }
   0x5   :  { %12 = vsyncpa [#allocation4], 0 }
   0x6   :  { %14 = vsyncpa [#allocation4 + $0x1], 0  ;;  %s1134_s12 = smov 0   ;;  %s1136_s13 = smov 0  }
   0x7   :  { %s1138_s14 = smov 0   ;;  %s1140_s15 = smov 0  }
   0x8   :  { %s1142_s16 = smov 0   ;;  %s1144_s17 = smov 0  }
   0x9 LB: > { %s32_s18 = sadd.s32 1, %s1095_s16  ;;  %s65_s19 = sadd.s32 1, %s1087_s14  ;;  %s1099_s17 = sphi %s1144_s17, %s20_s17   ;;  %s1095_s16 = sphi %s1142_s16, %s1492_s16   ;;  %s1091_s15 = sphi %s1140_s15, %s1491_s15   ;;  %s1087_s14 = sphi %s1138_s14, %s1490_s14   ;;  %s1083_s13 = sphi %s1136_s13, %s1489_s13   ;;  %s1079_s12 = sphi %s1134_s12, %s1488_s12  }
   0xa   : > { %p34_p0 = scmp.ge.s32.totalorder %s32_s18, 2  ;;  %p72_p1 = scmp.ne.s32.totalorder %s1087_s14, %s1083_s13 }
   0xb   : > { %p73_p2 = scmp.eq.s32.totalorder %s1099_s17, 0  ;;  %p850_p5 = scmp.lt.s32.totalorder %s1099_s17, 2 }
   0xc   : > { %s1494_s18 = smov (%p34_p0, %s32_s18), 0  ;;  %s172_s21 = sand.u32 1, %s1099_s17  }
   0xd   : > { %1469 = sst [smem:[#allocation12_spill]] %s1494_s18  ;;  %p74_p4 = por %p73_p2, %p72_p1 }
   0xe   : > { %s62_s20 = ssub.s32 %s1095_s16, %s1494_s18  ;;  %s174_s22 = sand.u32 1, %s1087_s14  }
   0xf   : > { %p63_p6 = scmp.eq.s32.totalorder %s62_s20, 0  ;;  %s801_s23 = sshll.u32 %s1095_s16, 7 }
  0x10   : > { %s749_s25 = sshll.u32 %s174_s22, 5  ;;  %s1470_s1 = sld [smem:[#allocation13_spill]] }
  0x11   : > { %s1182_s24 = scalar_select %p63_p6, %s1087_s14, %s65_s19  }
  0x12   : > { %p1191_p7 = pnand %p850_p5, %p74_p4  ;;  %s176_s30 = scalar_lea.vmem [#allocation5], %s749_s25 }
  0x13   : > { %s183_s4 = sshll.u32 %s176_s30, 4  ;;  %s1197_s5 = scalar_lea.sflag [#allocation6], %s172_s21  ;;  %s1195_s4 = int_to_ptr.vmem [resolvable:$true] %s183_s4 }
  0x14   : > { %s1471_s29 = scalar_select %p1191_p7, 1, 0 }
  0x15   : > { %p1462_p9 = pneg %p1191_p7 }
  0x16   : > { %s1189_s28 = scalar_lea.hbm %s1470_s1, %s801_s23  ;;  %s930_s9 = scalar_lea.hbm %s1470_s1, 1024 }
  0x17   : > { %s925_s6 = scalar_lea.hbm %s1189_s28, 512  ;;  %p931_p12 = scmp.lt.u32.totalorder %s1189_s28, %s1470_s1 }
  0x18   : > { %p926_p8 = scmp.ne.s32.totalorder %s1189_s28, %s925_s6  ;;  %p932_p13 = scmp.lt.u32.totalorder %s930_s9, %s925_s6 }
  0x19   : > { %p934_p2 = scmp.lt.u32.totalorder %s925_s6, %s1189_s28 }
  0x1a   : > { %p928_p10 = pnand %p1462_p9, %p926_p8  ;;  %p933_p0 = por %p932_p13, %p931_p12 }
  0x1c   : > { %p929_p11 = pneg %p928_p10  ;;  %p935_p4 = por %p934_p2, %p933_p0 }
  0x1e   : > { %p936_p5 = pnand %p935_p4, %p929_p11 }
  0x20   : > { %939 = shalt.err (!%p936_p5)
}
  0x21   : > { %s940_s19 = scalar_lea.vmem %s1195_s4, 512  ;;  %s1101_s20 = smov [#allocation5]  }
  0x22   : > { %p941_p6 = scmp.ne.s32.totalorder %s1195_s4, %s940_s19  ;;  %s945_s21 = sshll.u32 %s1101_s20, 4  ;;  %s946_s21 = int_to_ptr.vmem [resolvable:$false] %s945_s21 }
  0x23   : > { %s947_s23 = scalar_lea.vmem %s946_s21, 1024  ;;  %p948_p3 = scmp.lt.s32.totalorder %s1195_s4, %s946_s21 }
  0x24   : > { %p943_p8 = pnand %p941_p6, %p1462_p9  ;;  %p949_p12 = scmp.lt.s32.totalorder %s947_s23, %s940_s19 }
  0x26   : > { %p944_p10 = pneg %p943_p8  ;;  %p950_p13 = por %p949_p12, %p948_p3 }
  0x28   : > { %p951_p0 = pnand %p950_p13, %p944_p10 }
  0x2a   : > { %954 = shalt.err (!%p951_p0)
}
  0x2b   : > { %s1102_s25 = smov 256   ;;  %s1103_s26 = smov 128  }
  0x2c   : > { %s1104_s27 = smov 8   ;;  %s1226_s30 = sadd.s32 4294967295, %s1099_s17  }
  0x2d   : > { %841 = dma.hbm_to_vmem [thread:$0]  (!%p1191_p7), %s1189_s28, 512, %s1195_s4, %s1197_s5, %s1102_s25, %s1103_s26, %s1104_s27  }
  0x2e   : > { %s745_s6 = sadd.s32 4294967294, %s1099_s17   ;;  %p78_p3 = scmp.ne.s32.totalorder %s1083_s13, %s1079_s12 }
  0x2f   : > { %p1461_p11 = scmp.eq.s32.totalorder %s1226_s30, 0  ;;  %p130_p2 = scmp.eq.s32.totalorder %s1226_s30, 1 }
  0x30   : > { %p136_p4 = scmp.eq.s32.totalorder %s745_s6, 1  ;;  %p746_p6 = scmp.ge.s32.totalorder %s1099_s17, 1 }
  0x31   : > { %p1235_p5 = por %p1461_p11, %p78_p3  ;;  %p1243_p8 = por %p130_p2, %p72_p1 }
  0x32   : > { %p1247_p10 = por %p136_p4, %p78_p3  ;;  %p143_p12 = scmp.lt.s32.totalorder %s1099_s17, 3 }
  0x33   : > { %s1472_s7 = scalar_select %p1235_p5, 1, 0 }
  0x34   : > { %s1473_s28 = scalar_select %p1243_p8, 1, 0 }
  0x35   : > { %s1474_s4 = scalar_select %p1247_p10, 1, 0 }
  0x36   : > { %p1252_p13 = pnand %p746_p6, %p143_p12  ;;  %s1105_s9 = smov [#allocation2]  }
  0x37   : > { %s158_s10 = sshll.u32 %s1105_s9, 4  ;;  %s752_s11 = sshll.u32 %s174_s22, 1  ;;  %s1256_s10 = int_to_ptr.vmem [resolvable:$true] %s158_s10 }
  0x38   : > { %s1475_s8 = scalar_select %p1252_p13, 1, 0 }
  0x39   : > { %p834_p0 = pneg %p1252_p13  ;;  %s802_s19 = sshll.u32 %s1095_s16, 5 }
  0x3a   : > { %s1272_s25 = scalar_lea.hbm %s1458_s2, %s802_s19  ;;  %s197_s26 = scalar_lea.vmem [#allocation7], %s752_s11 }
  0x3b   : > { %p1265_p1 = pnand %p834_p0, %p1461_p11  ;;  %s205_s27 = sshll.u32 %s197_s26, 4  ;;  %s1274_s27 = int_to_ptr.vmem [resolvable:$true] %s205_s27 }
  0x3c   : > { %s955_s22 = scalar_lea.hbm %s1456_s0, 1024 }
  0x3d   : > { %p956_p3 = scmp.ne.s32.totalorder %s1456_s0, %s955_s22  ;;  %p957_p2 = pneg %p1265_p1 }
  0x3e   : > { %p962_p12 = scmp.lt.u32.totalorder %s955_s22, %s1456_s0 }
  0x3f   : > { %p958_p4 = pnand %p957_p2, %p956_p3 }
  0x41   : > { %p959_p6 = pneg %p958_p4 }
  0x43   : > { %p964_p0 = pnand %p962_p12, %p959_p6 }
  0x45   : > { %967 = shalt.err (!%p964_p0)
}
  0x46   : > { %s968_s11 = scalar_lea.vmem %s1256_s10, 1024  ;;  %p976_p8 = scmp.lt.s32.totalorder %s1256_s10, %s1256_s10 }
  0x47   : > { %p969_p11 = scmp.ne.s32.totalorder %s1256_s10, %s968_s11  ;;  %p977_p5 = scmp.lt.s32.totalorder %s968_s11, %s968_s11 }
  0x49   : > { %p971_p9 = pnand %p969_p11, %p957_p2  ;;  %p978_p13 = por %p977_p5, %p976_p8 }
  0x4b   : > { %p972_p10 = pneg %p971_p9 }
  0x4d   : > { %p979_p7 = pnand %p978_p13, %p972_p10 }
  0x4f   : > { %982 = shalt.err (!%p979_p7)
}
  0x50   : > { %s1106_s1 = smov 64   ;;  %s1107_s18 = smov 4  }
  0x51   : > { %837 = dma.hbm_to_vmem [thread:$0]  (!%p1265_p1), %s1456_s0, 1024, %s1256_s10, [#allocation3], %s1106_s1, %s1106_s1, %s1107_s18  }
  0x52   : > { %s983_s6 = scalar_lea.hbm %s1272_s25, 32  ;;  %p1477_p11 = scmp.ne.s32.totalorder %s1471_s29, 0 }
  0x53   : > { %p984_p9 = scmp.ne.s32.totalorder %s1272_s25, %s983_s6  ;;  %s988_s21 = scalar_lea.hbm %s1458_s2, 64 }
  0x54   : > { %p1478_p5 = pneg %p1477_p11  ;;  %p989_p10 = scmp.lt.u32.totalorder %s1272_s25, %s1458_s2 }
  0x55   : > { %p990_p13 = scmp.lt.u32.totalorder %s988_s21, %s983_s6  ;;  %p992_p2 = scmp.lt.u32.totalorder %s983_s6, %s1272_s25 }
  0x56   : > { %p986_p8 = pnand %p984_p9, %p1478_p5 }
  0x57   : > { %p991_p3 = por %p990_p13, %p989_p10 }
  0x58   : > { %p987_p7 = pneg %p986_p8 }
  0x59   : > { %p993_p4 = por %p992_p2, %p991_p3 }
  0x5b   : > { %p994_p6 = pnand %p993_p4, %p987_p7 }
  0x5d   : > { %997 = shalt.err (!%p994_p6)
}
  0x5e   : > { %s998_s10 = scalar_lea.vmem %s1274_s27, 32  ;;  %p1479_p12 = pmov %p1478_p5 }
  0x5f   : > { %p999_p1 = scmp.ne.s32.totalorder %s1274_s27, %s998_s10  ;;  %s1108_s20 = smov [#allocation7]  }
  0x60   : > { %s1003_s1 = sshll.u32 %s1108_s20, 4  ;;  %s1004_s1 = int_to_ptr.vmem [resolvable:$false] %s1003_s1 }
  0x61   : > { %p1001_p0 = pnand %p999_p1, %p1479_p12  ;;  %s1005_s18 = scalar_lea.vmem %s1004_s1, 64 }
  0x62   : > { %p1006_p5 = scmp.lt.s32.totalorder %s1274_s27, %s1004_s1  ;;  %p1007_p8 = scmp.lt.s32.totalorder %s1005_s18, %s998_s10 }
  0x63   : > { %p1002_p9 = pneg %p1001_p0 }
  0x64   : > { %p1008_p10 = por %p1007_p8, %p1006_p5 }
  0x66   : > { %p1009_p13 = pnand %p1008_p10, %p1002_p9 }
  0x68   : > { %1012 = shalt.err (!%p1009_p13)
}
  0x69   : > { %844 = dma.hbm_to_vmem [thread:$0]  (!%p1477_p11), %s1272_s25, 32, %s1274_s27, %s1197_s5  }
  0x6a   : > { %p1480_p7 = scmp.ne.s32.totalorder %s1475_s8, 0 }
  0x6b   : > { %p1481_p3 = scmp.eq.s32.totalorder (!%p1480_p7), %s1226_s30, 0 }
  0x6c   : > { %214 = sbr.rel (%p1480_p7) target bundleno = 390 (0x186), region = 32 }
  0x73   : > { %1066 = dma.done.wait (%p1481_p3), [#allocation3], 1024   ;;  %p1482_p2 = pmov %p1481_p3 }
  0x74   : > { %s220_s19 = sand.u32 1, %s1226_s30   ;;  %s1329_s26 = sand.u32 1, %s1083_s13  }
  0x75   : > { %1068 = vsyncadd (%p1482_p2), [#allocation3], 4294966272  ;;  %s757_s29 = sshll.u32 %s1329_s26, 5  ;;  %s221_s6 = scalar_lea.sflag [#allocation6], %s220_s19 }
  0x76   : > { %s224_s9 = scalar_lea.vmem [#allocation5], %s757_s29  ;;  %p1483_p11 = scmp.ne.s32.totalorder %s1472_s7, 0 }
  0x78   : > { %1070 = dma.done.wait (%p1483_p11), %s221_s6, 544  }
  0x79   : > { %1072 = vsyncadd (%p1483_p11), %s221_s6, 4294966752  ;;  %v1109_v0 = vmov 0   ;;  %v911_v1 = vld [vmem:[%s224_s9 + $0x4] ss:$8 sps:$4 sm:$0xff]   ;;  %v913_v2 = vld [vmem:[%s224_s9] ss:$8 sps:$4 sm:$0xff]   ;;  %v289_v13 = vlaneseq }
  0x7a   : > { %416 = vmatprep.mubr.bf16.mxu0 %v1109_v0  ;;  %456 = vmatprep.mubr.bf16.mxu1 %v1109_v0  ;;  %v914_v3 = vld [vmem:[%s224_s9 + $0x14] ss:$8 sps:$4 sm:$0xff]   ;;  %v916_v4 = vld [vmem:[%s224_s9 + $0x10] ss:$8 sps:$4 sm:$0xff]   ;;  %v917_v5 = vld [vmem:[#allocation2] sm:$0xff]   ;;  %vm359_vm0 = vcmask 261120  }
  0x7b   : > { %384 = vmatprep.subr.bf16.mxu0 %v911_v1  ;;  %820 = vmatprep.subr.bf16.mxu1 %v911_v1  ;;  %v918_v6 = vld [vmem:[#allocation2 + $0x20] sm:$0xff]   ;;  %v919_v7 = vld [vmem:[#allocation2 + $0x8] sm:$0xff]   ;;  %v921_v9 = vld [vmem:[#allocation2 + $0x10] sm:$0xff]   ;;  %s758_s5 = sshll.u32 %s1329_s26, 1  ;;  %v290_v14 = vshrl.u32 %v289_v13, 7  ;;  %s759_s7 = sshll.u32 %s1329_s26, 7 }
  0x7c   : > { %385 = vmatpush1.bf16.msra.mxu0 %v913_v2  ;;  %822 = vmatpush1.bf16.msra.mxu1 %v913_v2  ;;  %v920_v8 = vld [vmem:[#allocation2 + $0x28] sm:$0xff]   ;;  %v922_v10 = vld [vmem:[#allocation2 + $0x30] sm:$0xff]   ;;  %v923_v11 = vld [vmem:[#allocation2 + $0x18] sm:$0xff]   ;;  %s233_s30 = scalar_lea.vmem [#allocation7], %s758_s5  ;;  %s1358_s8 = scalar_lea.vmem [#allocation8], %s759_s7 }
  0x7d   : > { %386 = vmatprep.subr.bf16.mxu0 %v914_v3  ;;  %821 = vmatprep.subr.bf16.mxu1 %v914_v3  ;;  %v924_v12 = vld [vmem:[#allocation2 + $0x38] sm:$0xff]   ;;  %v291_v15 = vsub.s32 0, %v290_v14  ;;  %v287_v16 = vld [vmem:[%s233_s30] sm:$0x3]  ;;  %v295_v17 = vsub.s32 1, %v290_v14  ;;  %s819_s25 = sshll.u32 %s1091_s15, 7 }
  0x7e   : > { %s626_s27 = sshll.u32 %s1358_s8, 4  ;;  %s1401_s21 = scalar_lea.hbm %s1459_s3, %s819_s25  ;;  %s1403_s27 = int_to_ptr.vmem [resolvable:$true] %s626_s27 }
  0x7f   : > { %v1345_v18 = vrot.slane %v287_v16, %v291_v15  ;;  %v1347_v19 = vrot.slane %v287_v16, %v295_v17  ;;  %s610_s23 = scalar_lea.sflag [#allocation4], %s1329_s26  ;;  %s1013_s11 = scalar_lea.vmem %s1403_s27, 2048 }
  0x80   : > { %387 = vmatpush1.bf16.msra.mxu0 %v916_v4  ;;  %823 = vmatpush1.bf16.msra.mxu1 %v916_v4  ;;  %p1014_p4 = scmp.ne.s32.totalorder %s1403_s27, %s1013_s11  ;;  %p1484_p6 = scmp.ne.s32.totalorder %s1473_s28, 0 }
  0x81   : > { %s1110_s10 = smov [#allocation8]  }
  0x82   : > { %p1015_p1 = pnand %p1014_p4, %p1484_p6  ;;  %s1017_s20 = sshll.u32 %s1110_s10, 4  ;;  %s1018_s20 = int_to_ptr.vmem [resolvable:$false] %s1017_s20 }
  0x83   : > { %772 = vmatmul.mubr.msk.bf16.vlgmr.msra.gmra.mrb[0].mxu0 %vm359_vm0, %v917_v5  ;;  %776 = vmatmul.mubr.msk.bf16.vlgmr.msra.gmra.mrb[0].mxu1 %vm359_vm0, %v918_v6  ;;  %s1019_s1 = scalar_lea.vmem %s1018_s20, 4096  ;;  %p1020_p0 = scmp.lt.s32.totalorder %s1403_s27, %s1018_s20 }
  0x84   : > { %426 = vmatprep.mubr.bf16.mxu0 %v1109_v0  ;;  %466 = vmatprep.mubr.bf16.mxu1 %v1109_v0  ;;  %p1016_p12 = pneg %p1015_p1  ;;  %p1021_p9 = scmp.lt.s32.totalorder %s1019_s1, %s1013_s11 }
  0x86   : > { %p1022_p5 = por %p1021_p9, %p1020_p0 }
  0x88   : > { %p1023_p8 = pnand %p1022_p5, %p1016_p12 }
  0x8b   : > { %773 = vmatmul.mubr.msk.bf16.gmra.mrb[4].mxu0 %vm359_vm0, %v919_v7  ;;  %777 = vmatmul.mubr.msk.bf16.gmra.mrb[4].mxu1 %vm359_vm0, %v920_v8 }
  0x8c   : > { %436 = vmatprep.mubr.bf16.mxu0 %v1109_v0  ;;  %476 = vmatprep.mubr.bf16.mxu1 %v1109_v0 }
  0x93   : > { %774 = vmatmul.mubr.msk.bf16.gmra.mrb[8].mxu0 %vm359_vm0, %v921_v9  ;;  %778 = vmatmul.mubr.msk.bf16.gmra.mrb[8].mxu1 %vm359_vm0, %v922_v10 }
  0x94   : > { %446 = vmatprep.mubr.bf16.mxu0 %v1109_v0  ;;  %486 = vmatprep.mubr.bf16.mxu1 %v1109_v0 }
  0x9b   : > { %775 = vmatmul.mubr.msk.bf16.gmra.mrb[12].mxu0 %vm359_vm0, %v923_v11  ;;  %779 = vmatmul.mubr.msk.bf16.gmra.mrb[12].mxu1 %vm359_vm0, %v924_v12 }
 0x156   : > { %v418_v20 = vpop.f32.mrb[0].mxu0  ;;  %v458_v21 = vpop.f32.mrb[0].mxu1 }
 0x157   : > { %v419_v22 = vadd.f32 %v418_v20, %v1345_v18  ;;  %v459_v23 = vadd.f32 %v458_v21, %v1345_v18  ;;  %v420_v24 = vpop.f32.mrb[1].mxu0  ;;  %v460_v25 = vpop.f32.mrb[1].mxu1 }
 0x158   : > { %v421_v26 = vadd.f32 %v420_v24, %v1347_v19  ;;  %v461_v27 = vadd.f32 %v460_v25, %v1347_v19  ;;  %v422_v28 = vpop.f32.mrb[2].mxu0  ;;  %v462_v29 = vpop.f32.mrb[2].mxu1 }
 0x159   : > { %v423_v30 = vadd.f32 %v422_v28, %v1345_v18  ;;  %v463_v31 = vadd.f32 %v462_v29, %v1345_v18  ;;  %v424_v32 = vpop.f32.mrb[3].mxu0  ;;  %v464_v33 = vpop.f32.mrb[3].mxu1 }
 0x15a   : > { %v803_v34 = vpack.c.bf16 %v421_v26, %v419_v22  ;;  %v811_v35 = vpack.c.bf16 %v461_v27, %v459_v23  ;;  %v425_v36 = vadd.f32 %v424_v32, %v1347_v19  ;;  %v465_v37 = vadd.f32 %v464_v33, %v1347_v19 }
 0x15c   : > { %593 = vst [vmem:[%s1358_s8] sm:$0xff] %v803_v34  ;;  %601 = vst [vmem:[%s1358_s8 + $0x40] sm:$0xff] %v811_v35  ;;  %v804_v38 = vpack.c.bf16 %v425_v36, %v423_v30  ;;  %v812_v39 = vpack.c.bf16 %v465_v37, %v463_v31 }
 0x15e   : > { %594 = vst [vmem:[%s1358_s8 + $0x8] sm:$0xff] %v804_v38  ;;  %602 = vst [vmem:[%s1358_s8 + $0x48] sm:$0xff] %v812_v39  ;;  %v428_v40 = vpop.f32.mrb[4].mxu0  ;;  %v468_v41 = vpop.f32.mrb[4].mxu1 }
 0x15f   : > { %v429_v42 = vadd.f32 %v428_v40, %v1345_v18  ;;  %v469_v43 = vadd.f32 %v468_v41, %v1345_v18  ;;  %v430_v44 = vpop.f32.mrb[5].mxu0  ;;  %v470_v45 = vpop.f32.mrb[5].mxu1 }
 0x160   : > { %v431_v46 = vadd.f32 %v430_v44, %v1347_v19  ;;  %v471_v47 = vadd.f32 %v470_v45, %v1347_v19  ;;  %v432_v48 = vpop.f32.mrb[6].mxu0  ;;  %v472_v49 = vpop.f32.mrb[6].mxu1 }
 0x161   : > { %v433_v50 = vadd.f32 %v432_v48, %v1345_v18  ;;  %v473_v51 = vadd.f32 %v472_v49, %v1345_v18  ;;  %v434_v52 = vpop.f32.mrb[7].mxu0  ;;  %v474_v53 = vpop.f32.mrb[7].mxu1 }
 0x162   : > { %v805_v54 = vpack.c.bf16 %v431_v46, %v429_v42  ;;  %v813_v55 = vpack.c.bf16 %v471_v47, %v469_v43  ;;  %v435_v56 = vadd.f32 %v434_v52, %v1347_v19  ;;  %v475_v57 = vadd.f32 %v474_v53, %v1347_v19 }
 0x164   : > { %595 = vst [vmem:[%s1358_s8 + $0x10] sm:$0xff] %v805_v54  ;;  %603 = vst [vmem:[%s1358_s8 + $0x50] sm:$0xff] %v813_v55  ;;  %v806_v58 = vpack.c.bf16 %v435_v56, %v433_v50  ;;  %v814_v59 = vpack.c.bf16 %v475_v57, %v473_v51 }
 0x166   : > { %596 = vst [vmem:[%s1358_s8 + $0x18] sm:$0xff] %v806_v58  ;;  %604 = vst [vmem:[%s1358_s8 + $0x58] sm:$0xff] %v814_v59  ;;  %v438_v60 = vpop.f32.mrb[8].mxu0  ;;  %v478_v61 = vpop.f32.mrb[8].mxu1 }
 0x167   : > { %v439_v62 = vadd.f32 %v438_v60, %v1345_v18  ;;  %v479_v63 = vadd.f32 %v478_v61, %v1345_v18  ;;  %v440_v0 = vpop.f32.mrb[9].mxu0  ;;  %v480_v1 = vpop.f32.mrb[9].mxu1 }
 0x168   : > { %v441_v2 = vadd.f32 %v440_v0, %v1347_v19  ;;  %v481_v3 = vadd.f32 %v480_v1, %v1347_v19  ;;  %v442_v4 = vpop.f32.mrb[10].mxu0  ;;  %v482_v5 = vpop.f32.mrb[10].mxu1 }
 0x169   : > { %v443_v6 = vadd.f32 %v442_v4, %v1345_v18  ;;  %v483_v7 = vadd.f32 %v482_v5, %v1345_v18  ;;  %v444_v8 = vpop.f32.mrb[11].mxu0  ;;  %v484_v9 = vpop.f32.mrb[11].mxu1 }
 0x16a   : > { %v807_v10 = vpack.c.bf16 %v441_v2, %v439_v62  ;;  %v815_v11 = vpack.c.bf16 %v481_v3, %v479_v63  ;;  %v445_v12 = vadd.f32 %v444_v8, %v1347_v19  ;;  %v485_v13 = vadd.f32 %v484_v9, %v1347_v19 }
 0x16c   : > { %597 = vst [vmem:[%s1358_s8 + $0x20] sm:$0xff] %v807_v10  ;;  %605 = vst [vmem:[%s1358_s8 + $0x60] sm:$0xff] %v815_v11  ;;  %v808_v14 = vpack.c.bf16 %v445_v12, %v443_v6  ;;  %v816_v15 = vpack.c.bf16 %v485_v13, %v483_v7 }
 0x16e   : > { %598 = vst [vmem:[%s1358_s8 + $0x28] sm:$0xff] %v808_v14  ;;  %606 = vst [vmem:[%s1358_s8 + $0x68] sm:$0xff] %v816_v15  ;;  %v448_v16 = vpop.f32.mrb[12].mxu0  ;;  %v488_v17 = vpop.f32.mrb[12].mxu1 }
 0x16f   : > { %v449_v20 = vadd.f32 %v448_v16, %v1345_v18  ;;  %v489_v21 = vadd.f32 %v488_v17, %v1345_v18  ;;  %v450_v22 = vpop.f32.mrb[13].mxu0  ;;  %v490_v23 = vpop.f32.mrb[13].mxu1 }
 0x170   : > { %v451_v24 = vadd.f32 %v450_v22, %v1347_v19  ;;  %v491_v25 = vadd.f32 %v490_v23, %v1347_v19  ;;  %v452_v26 = vpop.f32.mrb[14].mxu0  ;;  %v492_v27 = vpop.f32.mrb[14].mxu1 }
 0x171   : > { %v453_v28 = vadd.f32 %v452_v26, %v1345_v18  ;;  %v493_v29 = vadd.f32 %v492_v27, %v1345_v18  ;;  %v454_v30 = vpop.f32.mrb[15].mxu0  ;;  %v494_v31 = vpop.f32.mrb[15].mxu1 }
 0x172   : > { %v809_v32 = vpack.c.bf16 %v451_v24, %v449_v20  ;;  %v817_v33 = vpack.c.bf16 %v491_v25, %v489_v21  ;;  %v455_v34 = vadd.f32 %v454_v30, %v1347_v19  ;;  %v495_v35 = vadd.f32 %v494_v31, %v1347_v19 }
 0x174   : > { %599 = vst [vmem:[%s1358_s8 + $0x30] sm:$0xff] %v809_v32  ;;  %607 = vst [vmem:[%s1358_s8 + $0x70] sm:$0xff] %v817_v33  ;;  %v810_v18 = vpack.c.bf16 %v455_v34, %v453_v28  ;;  %v818_v36 = vpack.c.bf16 %v495_v35, %v493_v29 }
 0x176   : > { %600 = vst [vmem:[%s1358_s8 + $0x38] sm:$0xff] %v810_v18  ;;  %608 = vst [vmem:[%s1358_s8 + $0x78] sm:$0xff] %v818_v36 }
 0x177   : > { %1026 = shalt.err (!%p1023_p8)
}
 0x178   : > { %s1027_s18 = scalar_lea.hbm %s1401_s21, 2048  ;;  %s1031_s6 = scalar_lea.hbm %s1459_s3, 4096 }
 0x179   : > { %p1028_p10 = scmp.ne.s32.totalorder %s1401_s21, %s1027_s18  ;;  %p1032_p3 = scmp.lt.u32.totalorder %s1401_s21, %s1459_s3 }
 0x17a   : > { %p1033_p2 = scmp.lt.u32.totalorder %s1031_s6, %s1027_s18  ;;  %p1035_p4 = scmp.lt.u32.totalorder %s1027_s18, %s1401_s21 }
 0x17b   : > { %p1029_p13 = pnand %p1028_p10, %p1484_p6 }
 0x17c   : > { %p1034_p11 = por %p1033_p2, %p1032_p3 }
 0x17d   : > { %p1030_p7 = pneg %p1029_p13 }
 0x17e   : > { %p1036_p1 = por %p1035_p4, %p1034_p11 }
 0x180   : > { %p1037_p12 = pnand %p1036_p1, %p1030_p7 }
 0x182   : > { %1040 = shalt.err (!%p1037_p12)
}
 0x183   : > { %s1111_s30 = smov 128   ;;  %s1112_s7 = smov 256  }
 0x184   : > { %s1113_s8 = smov 8  }
 0x185   : > { %832 = dma.vmem_to_hbm [thread:$0]  (%p1484_p6), %s1403_s27, 2048, %s1401_s21, %s610_s23, %s1111_s30, %s1112_s7, %s1113_s8  }
 0x186 PF: > { %s641_s25 = sand.u32 1, %s1079_s12   ;;  %p1485_p0 = scmp.ne.s32.totalorder %s1474_s4, 0 }
 0x187   : > { %p1486_p9 = scmp.ge.s32.totalorder %s1099_s17, 2  ;;  %s642_s15 = scalar_lea.sflag [#allocation4], %s641_s25 }
 0x189   : > { %p846_p5 = pnand %p1486_p9, %p1485_p0 }
 0x18b   : > { %1074 = dma.done.wait (!%p846_p5), %s642_s15, 2048  }
 0x18c   : > { %1076 = vsyncadd (!%p846_p5), %s642_s15, 4294965248  ;;  %s20_s17 = sadd.s32 1, %s1099_s17   ;;  %s1487_s28 = sld [smem:[#allocation12_spill]] }
 0x18d   : > { %p17_p8 = scmp.ge.s32.totalorder %s20_s17, 4   ;;  %s1488_s12 = smov %s1083_s13 }
 0x18e   : > { %s1489_s13 = smov %s1087_s14  ;;  %s1490_s14 = smov %s1182_s24 }
 0x18f   : > { %s1491_s15 = smov %s1095_s16  ;;  %19 = sbr.rel (!%p17_p8) target bundleno = 9 (0x9), region = 94 }
 0x192   : > { %s1492_s16 = smov %s1487_s28 }
 0x196   :  { %647 = vsyncpa [#allocation3], 1 }
 0x197   :  { %649 = vsyncpa [#allocation3 + $0x1], 1 }
 0x198   :  { %650 = vsyncpa [#allocation6], 1 }
 0x199   :  { %652 = vsyncpa [#allocation6 + $0x1], 1 }
 0x19a   :  { %653 = vsyncpa [#allocation4], 1 }
 0x19b   :  { %655 = vsyncpa [#allocation4 + $0x1], 1 }

// kernel: decoder_rnn_b_forward.4
= control target key start
LH: loop header
LB: loop body
LE: loop exit
PB: predicated region body
PF: predicated region fallthrough
CT: control target
= control target key end

     0   :  { %7 = vsyncpa [#allocation5], 0  ;;  %s3636_s0 = inlined_call_operand.hbm [shape: bf16[16,8,512], index: 0, kind: input, shape index: {}]   ;;  %s3637_s1 = inlined_call_operand.hbm [shape: bf16[128,512], index: 1, kind: input, shape index: {}]   ;;  %s3638_s2 = inlined_call_operand.hbm [shape: bf16[16,8,128], index: 2, kind: output, shape index: {}]  }
   0x1   :  { %8 = vsyncpa [#allocation8], 0 }
   0x2   :  { %9 = vsyncpa [#allocation6], 0  ;;  %s2784_s9 = smov [#allocation4]   ;;  %s2712_s13 = scalar_lea.hbm %s3636_s0, 4096 }
   0x3   :  { %s15_s10 = sshll.u32 %s2784_s9, 4  ;;  %p2713_p0 = scmp.ne.s32.totalorder %s3636_s0, %s2712_s13  ;;  %s16_s10 = int_to_ptr.vmem [resolvable:$true] %s15_s10 }
   0x4   :  { %p2716_p1 = scmp.lt.u32.totalorder %s2712_s13, %s3636_s0 }
   0x6   :  { %p2718_p2 = pnand %p2716_p1, %p2713_p0 }
   0x8   :  { %2721 = shalt.err (!%p2718_p2)
}
   0x9   :  { %s2722_s18 = scalar_lea.vmem %s16_s10, 4096  ;;  %p2727_p4 = scmp.lt.s32.totalorder %s16_s10, %s16_s10 }
   0xa   :  { %p2723_p3 = scmp.ne.s32.totalorder %s16_s10, %s2722_s18  ;;  %p2728_p5 = scmp.lt.s32.totalorder %s2722_s18, %s2722_s18 }
   0xc   :  { %p2729_p6 = por %p2728_p5, %p2727_p4 }
   0xe   :  { %p2730_p7 = pnand %p2729_p6, %p2723_p3 }
  0x10   :  { %2733 = shalt.err (!%p2730_p7)
}
  0x11   :  { %s2785_s19 = smov 256   ;;  %s2786_s20 = smov 16  }
  0x12   :  { %21 = dma.hbm_to_vmem [thread:$0]  %s3636_s0, 4096, %s16_s10, [#allocation5], %s2785_s19, %s2785_s19, %s2786_s20  }
  0x13   :  { %s2787_s23 = smov [#allocation7]   ;;  %s2734_s27 = scalar_lea.hbm %s3637_s1, 4096 }
  0x14   :  { %s27_s24 = sshll.u32 %s2787_s23, 4  ;;  %p2735_p8 = scmp.ne.s32.totalorder %s3637_s1, %s2734_s27  ;;  %s28_s24 = int_to_ptr.vmem [resolvable:$true] %s27_s24 }
  0x15   :  { %p2738_p9 = scmp.lt.u32.totalorder %s2734_s27, %s3637_s1 }
  0x17   :  { %p2740_p10 = pnand %p2738_p9, %p2735_p8 }
  0x19   :  { %2743 = shalt.err (!%p2740_p10)
}
  0x1a   :  { %s2744_s4 = scalar_lea.vmem %s28_s24, 4096  ;;  %p2749_p12 = scmp.lt.s32.totalorder %s28_s24, %s28_s24 }
  0x1b   :  { %p2745_p11 = scmp.ne.s32.totalorder %s28_s24, %s2744_s4  ;;  %p2750_p13 = scmp.lt.s32.totalorder %s2744_s4, %s2744_s4 }
  0x1d   :  { %p2751_p0 = por %p2750_p13, %p2749_p12 }
  0x1f   :  { %p2752_p1 = pnand %p2751_p0, %p2745_p11 }
  0x21   :  { %2755 = shalt.err (!%p2752_p1)
}
  0x22   :  { %33 = dma.hbm_to_vmem [thread:$0]  %s3637_s1, 4096, %s28_s24, [#allocation8], %s2785_s19, %s2785_s19, %s2786_s20  }
  0x23   :  { %2778 = dma.done.wait [#allocation5], 4096  }
  0x24   :  { %2779 = vsyncadd [#allocation5], 4294963200 }
  0x25   :  { %2780 = dma.done.wait [#allocation8], 4096  }
  0x26   :  { %2781 = vsyncadd [#allocation8], 4294963200  ;;  %v2788_v0 = vmov 0   ;;  %v2834_v1 = vld [vmem:[#allocation7 + $0x4] ss:$16 sps:$4 sm:$0xff]   ;;  %v2789_v33 = vmov 0.0|0.0  }
  0x27   :  { %280 = vmatprep.mubr.bf16.mxu0 %v2788_v0  ;;  %321 = vmatprep.mubr.bf16.mxu1 %v2788_v0  ;;  %v2836_v2 = vld [vmem:[#allocation7] ss:$16 sps:$4 sm:$0xff]   ;;  %v2839_v3 = vld [vmem:[#allocation7 + $0x24] ss:$16 sps:$4 sm:$0xff]   ;;  %v2847_v6 = vld [vmem:[#allocation7 + $0xc] ss:$16 sps:$4 sm:$0xff]  }
  0x28   :  { %248 = vmatprep.subr.bf16.mxu0 %v2834_v1  ;;  %v2842_v4 = vld [vmem:[#allocation7 + $0x20] ss:$16 sps:$4 sm:$0xff]   ;;  %v2845_v5 = vld [vmem:[#allocation7 + $0x44] ss:$16 sps:$4 sm:$0xff]   ;;  %v2849_v7 = vld [vmem:[#allocation7 + $0x8] ss:$16 sps:$4 sm:$0xff]   ;;  %289 = vmatprep.subr.bf16.mxu1 %v2847_v6 }
  0x29   :  { %249 = vmatpush1.bf16.msra.mxu0 %v2836_v2  ;;  %v2852_v8 = vld [vmem:[#allocation7 + $0x40] ss:$16 sps:$4 sm:$0xff]   ;;  %v2856_v9 = vld [vmem:[#allocation7 + $0x64] ss:$16 sps:$4 sm:$0xff]   ;;  %290 = vmatpush1.bf16.msra.mxu1 %v2849_v7  ;;  %v2859_v10 = vld [vmem:[#allocation7 + $0x2c] ss:$16 sps:$4 sm:$0xff]  }
  0x2a   :  { %250 = vmatprep.subr.bf16.mxu0 %v2839_v3  ;;  %v2861_v11 = vld [vmem:[#allocation7 + $0x28] ss:$16 sps:$4 sm:$0xff]   ;;  %291 = vmatprep.subr.bf16.mxu1 %v2859_v10  ;;  %v2865_v12 = vld [vmem:[#allocation7 + $0x60] ss:$16 sps:$4 sm:$0xff]   ;;  %v2867_v13 = vld [vmem:[#allocation7 + $0x84] ss:$16 sps:$4 sm:$0xff]  }
  0x2b   :  { %v2869_v14 = vld [vmem:[#allocation7 + $0x4c] ss:$16 sps:$4 sm:$0xff]   ;;  %v2873_v15 = vld [vmem:[#allocation7 + $0x48] ss:$16 sps:$4 sm:$0xff]   ;;  %v2879_v17 = vld [vmem:[#allocation7 + $0x80] ss:$16 sps:$4 sm:$0xff]  }
  0x2c   :  { %v2876_v16 = vld [vmem:[#allocation7 + $0x6c] ss:$16 sps:$4 sm:$0xff]   ;;  %v2882_v18 = vld [vmem:[#allocation7 + $0xa4] ss:$16 sps:$4 sm:$0xff]   ;;  %v2885_v19 = vld [vmem:[#allocation7 + $0x68] ss:$16 sps:$4 sm:$0xff]  }
  0x2d   :  { %251 = vmatpush1.bf16.msra.mxu0 %v2842_v4  ;;  %292 = vmatpush1.bf16.msra.mxu1 %v2861_v11  ;;  %v2888_v20 = vld [vmem:[#allocation7 + $0x8c] ss:$16 sps:$4 sm:$0xff]   ;;  %v2891_v21 = vld [vmem:[#allocation7 + $0xa0] ss:$16 sps:$4 sm:$0xff]   ;;  %v2893_v22 = vld [vmem:[#allocation7 + $0xc4] ss:$16 sps:$4 sm:$0xff]  }
  0x2e   :  { %252 = vmatprep.subr.bf16.mxu0 %v2845_v5  ;;  %293 = vmatprep.subr.bf16.mxu1 %v2869_v14  ;;  %v2897_v23 = vld [vmem:[#allocation7 + $0x88] ss:$16 sps:$4 sm:$0xff]   ;;  %v2900_v24 = vld [vmem:[#allocation7 + $0xac] ss:$16 sps:$4 sm:$0xff]   ;;  %v2903_v25 = vld [vmem:[#allocation7 + $0xc0] ss:$16 sps:$4 sm:$0xff]  }
  0x2f   :  { %v2906_v26 = vld [vmem:[#allocation7 + $0xe4] ss:$16 sps:$4 sm:$0xff]   ;;  %v2909_v27 = vld [vmem:[#allocation7 + $0xa8] ss:$16 sps:$4 sm:$0xff]   ;;  %v2912_v28 = vld [vmem:[#allocation7 + $0xcc] ss:$16 sps:$4 sm:$0xff]  }
  0x30   :  { %v2915_v29 = vld [vmem:[#allocation7 + $0xe0] ss:$16 sps:$4 sm:$0xff]   ;;  %v2919_v30 = vld [vmem:[#allocation7 + $0xc8] ss:$16 sps:$4 sm:$0xff]   ;;  %v2922_v31 = vld [vmem:[#allocation7 + $0xec] ss:$16 sps:$4 sm:$0xff]  }
  0x31   :  { %253 = vmatpush1.bf16.msra.mxu0 %v2852_v8  ;;  %294 = vmatpush1.bf16.msra.mxu1 %v2873_v15  ;;  %v2926_v32 = vld [vmem:[#allocation7 + $0xe8] ss:$16 sps:$4 sm:$0xff]   ;;  %v81_v34 = vld [vmem:[#allocation4] sm:$0xff]  ;;  %s2790_s1 = smov [#allocation9]  }
  0x32   :  { %254 = vmatprep.subr.bf16.mxu0 %v2856_v9  ;;  %295 = vmatprep.subr.bf16.mxu1 %v2876_v16  ;;  %v83_v35 = vunpack.c.l.bf16 %v81_v34  ;;  %v84_v36 = vunpack.c.h.bf16 %v81_v34  ;;  %v82_v38 = vld [vmem:[#allocation4 + $0x8] sm:$0xff]  ;;  %s2242_s6 = sshll.u32 %s2790_s1, 4  ;;  %s2243_s6 = int_to_ptr.vmem [resolvable:$true] %s2242_s6 }
  0x33   :  { %v86_v45 = vunpack.c.h.bf16 %v82_v38  ;;  %v85_v51 = vunpack.c.l.bf16 %v82_v38  ;;  %s2756_s7 = scalar_lea.vmem %s2243_s6, 1024  ;;  %p2761_p3 = scmp.lt.s32.totalorder %s2243_s6, %s2243_s6 }
  0x34   :  { %p2757_p2 = scmp.ne.s32.totalorder %s2243_s6, %s2756_s7  ;;  %p2762_p4 = scmp.lt.s32.totalorder %s2756_s7, %s2756_s7 }
  0x35   :  { %255 = vmatpush1.bf16.msra.mxu0 %v2865_v12  ;;  %296 = vmatpush1.bf16.msra.mxu1 %v2885_v19 }
  0x36   :  { %256 = vmatprep.subr.bf16.mxu0 %v2867_v13  ;;  %297 = vmatprep.subr.bf16.mxu1 %v2888_v20  ;;  %p2763_p5 = por %p2762_p4, %p2761_p3 }
  0x38   :  { %p2764_p6 = pnand %p2763_p5, %p2757_p2 }
  0x39   :  { %257 = vmatpush1.bf16.msra.mxu0 %v2879_v17  ;;  %298 = vmatpush1.bf16.msra.mxu1 %v2897_v23 }
  0x3a   :  { %258 = vmatprep.subr.bf16.mxu0 %v2882_v18  ;;  %299 = vmatprep.subr.bf16.mxu1 %v2900_v24 }
  0x3d   :  { %259 = vmatpush1.bf16.msra.mxu0 %v2891_v21  ;;  %300 = vmatpush1.bf16.msra.mxu1 %v2909_v27 }
  0x3e   :  { %260 = vmatprep.subr.bf16.mxu0 %v2893_v22  ;;  %301 = vmatprep.subr.bf16.mxu1 %v2912_v28 }
  0x41   :  { %261 = vmatpush1.bf16.msra.mxu0 %v2903_v25  ;;  %302 = vmatpush1.bf16.msra.mxu1 %v2919_v30 }
  0x42   :  { %262 = vmatprep.subr.bf16.mxu0 %v2906_v26  ;;  %303 = vmatprep.subr.bf16.mxu1 %v2922_v31 }
  0x45   :  { %263 = vmatpush1.bf16.msra.mxu0 %v2915_v29  ;;  %304 = vmatpush1.bf16.msra.mxu1 %v2926_v32 }
  0x46   :  { %372 = vmatprep.subr.bf16.mxu0 %v2834_v1  ;;  %413 = vmatprep.subr.bf16.mxu1 %v2847_v6 }
  0x48   :  { %281 = vmatmul.mubr.bf16.vlgmr.msra.gmra.mrb[0].mxu0 %v2789_v33  ;;  %322 = vmatmul.mubr.bf16.vlgmr.msra.gmra.mrb[0].mxu1 %v2789_v33 }
  0x49   :  { %373 = vmatpush1.bf16.msra.mxu0 %v2836_v2  ;;  %404 = vmatprep.mubr.bf16.mxu0 %v2788_v0 }
  0x4a   :  { %374 = vmatprep.subr.bf16.mxu0 %v2839_v3  ;;  %414 = vmatpush1.bf16.msra.mxu1 %v2849_v7 }
  0x4b   :  { %415 = vmatprep.subr.bf16.mxu1 %v2859_v10  ;;  %445 = vmatprep.mubr.bf16.mxu1 %v2788_v0 }
  0x4d   :  { %375 = vmatpush1.bf16.msra.mxu0 %v2842_v4 }
  0x4e   :  { %376 = vmatprep.subr.bf16.mxu0 %v2845_v5  ;;  %416 = vmatpush1.bf16.msra.mxu1 %v2861_v11 }
  0x4f   :  { %417 = vmatprep.subr.bf16.mxu1 %v2869_v14 }
  0x51   :  { %377 = vmatpush1.bf16.msra.mxu0 %v2852_v8 }
  0x52   :  { %378 = vmatprep.subr.bf16.mxu0 %v2856_v9  ;;  %418 = vmatpush1.bf16.msra.mxu1 %v2873_v15 }
  0x53   :  { %419 = vmatprep.subr.bf16.mxu1 %v2876_v16 }
  0x55   :  { %379 = vmatpush1.bf16.msra.mxu0 %v2865_v12 }
  0x56   :  { %380 = vmatprep.subr.bf16.mxu0 %v2867_v13  ;;  %420 = vmatpush1.bf16.msra.mxu1 %v2885_v19 }
  0x57   :  { %421 = vmatprep.subr.bf16.mxu1 %v2888_v20 }
  0x59   :  { %381 = vmatpush1.bf16.msra.mxu0 %v2879_v17 }
  0x5a   :  { %382 = vmatprep.subr.bf16.mxu0 %v2882_v18  ;;  %422 = vmatpush1.bf16.msra.mxu1 %v2897_v23 }
  0x5b   :  { %423 = vmatprep.subr.bf16.mxu1 %v2900_v24 }
  0x5d   :  { %383 = vmatpush1.bf16.msra.mxu0 %v2891_v21 }
  0x5e   :  { %384 = vmatprep.subr.bf16.mxu0 %v2893_v22  ;;  %424 = vmatpush1.bf16.msra.mxu1 %v2909_v27 }
  0x5f   :  { %425 = vmatprep.subr.bf16.mxu1 %v2912_v28 }
  0x61   :  { %385 = vmatpush1.bf16.msra.mxu0 %v2903_v25 }
  0x62   :  { %386 = vmatprep.subr.bf16.mxu0 %v2906_v26  ;;  %426 = vmatpush1.bf16.msra.mxu1 %v2919_v30 }
  0x63   :  { %427 = vmatprep.subr.bf16.mxu1 %v2922_v31 }
  0x65   :  { %387 = vmatpush1.bf16.msra.mxu0 %v2915_v29 }
  0x66   :  { %497 = vmatprep.subr.bf16.mxu0 %v2834_v1  ;;  %428 = vmatpush1.bf16.msra.mxu1 %v2926_v32 }
  0x67   :  { %538 = vmatprep.subr.bf16.mxu1 %v2847_v6 }
 0x11b   :  { %v282_v37 = vpop.f32.mrb[0].mxu0  ;;  %v323_v47 = vpop.f32.mrb[0].mxu1 }
 0x11c   :  { %v330_v39 = vadd.f32 %v282_v37, %v83_v35  ;;  %v284_v40 = vpop.f32.mrb[1].mxu0  ;;  %v325_v48 = vpop.f32.mrb[1].mxu1  ;;  %v332_v54 = vadd.f32 %v323_v47, %v85_v51 }
 0x11d   :  { %v331_v41 = vadd.f32 %v284_v40, %v84_v36  ;;  %v286_v42 = vpop.f32.mrb[2].mxu0  ;;  %v333_v49 = vadd.f32 %v325_v48, %v86_v45  ;;  %v327_v50 = vpop.f32.mrb[2].mxu1  ;;  %v365_v40 = vld [vmem:[#allocation4 + $0x10] sm:$0xff] }
 0x11e   :  { %v2287_v43 = vmul.f32 -1.442695, %v330_v39  ;;  %v287_v44 = vpop.f32.mrb[3].mxu0  ;;  %v328_v52 = vpop.f32.mrb[3].mxu1  ;;  %v368_v42 = vunpack.c.h.bf16 %v365_v40 }
 0x11f   :  { %v2288_v46 = vmul.f32 -1.442695, %v331_v41  ;;  %v2289_v53 = vmul.f32 -1.442695, %v333_v49  ;;  %v367_v41 = vunpack.c.l.bf16 %v365_v40 }
 0x120   :  { %2392 = vpow2.f32 %v2287_v43 }
 0x121   :  { %2394 = vpow2.f32 %v2288_v46  ;;  %v366_v46 = vld [vmem:[#allocation4 + $0x18] sm:$0xff] }
 0x122   :  { %2396 = vpow2.f32 %v2289_v53 }
 0x123   :  { %2398 = vtanh.f32 %v332_v54 }
 0x12a   :  { %v2393_v55 = vpop.eup %2392 }
 0x12b   :  { %v2395_v56 = vpop.eup %2394  ;;  %v337_v57 = vadd.f32 1.0, %v2393_v55 }
 0x12c   :  { %v343_v58 = vadd.f32 1.0, %v2395_v56  ;;  %v2397_v59 = vpop.eup %2396  ;;  %v370_v56 = vunpack.c.h.bf16 %v366_v46 }
 0x12d   :  { %2400 = vrcp.f32 %v337_v57  ;;  %v2399_v60 = vpop.eup %2398  ;;  %v350_v62 = vadd.f32 1.0, %v2397_v59 }
 0x12e   :  { %2402 = vrcp.f32 %v343_v58  ;;  %v369_v58 = vunpack.c.l.bf16 %v366_v46 }
 0x12f   :  { %2404 = vrcp.f32 %v350_v62 }
 0x137   :  { %v2401_v61 = vpop.eup %2400 }
 0x138   :  { %v2403_v63 = vpop.eup %2402  ;;  %v354_v33 = vmul.f32 %v2401_v61, %v2399_v60 }
 0x139   :  { %v353_v34 = vmul.f32 0.0, %v2403_v63  ;;  %v2405_v36 = vpop.eup %2404 }
 0x13b   :  { %v2966_v35 = vadd.f32 %v354_v33, %v353_v34 }
 0x13d   :  { %2406 = vtanh.f32 %v2966_v35 }
 0x147   :  { %v2407_v37 = vpop.eup %2406 }
 0x148   :  { %v357_v38 = vmul.f32 %v2407_v37, %v2405_v36 }
 0x14a   :  { %v360_v39 = vpack.c.bf16 %v357_v38, %v357_v38 }
 0x14c   :  { %361 = vst [vmem:[#allocation9] sm:$0xf] %v360_v39  ;;  %405 = vmatmul.mubr.bf16.vlgmr.msra.gmra.mrb[4].mxu0 %v360_v39  ;;  %446 = vmatmul.mubr.bf16.vlgmr.msra.gmra.mrb[4].mxu1 %v360_v39 }
 0x14d   :  { %498 = vmatpush1.bf16.msra.mxu0 %v2836_v2  ;;  %539 = vmatpush1.bf16.msra.mxu1 %v2849_v7 }
 0x14e   :  { %499 = vmatprep.subr.bf16.mxu0 %v2839_v3  ;;  %540 = vmatprep.subr.bf16.mxu1 %v2859_v10 }
 0x14f   :  { %529 = vmatprep.mubr.bf16.mxu0 %v2788_v0  ;;  %570 = vmatprep.mubr.bf16.mxu1 %v2788_v0 }
 0x151   :  { %500 = vmatpush1.bf16.msra.mxu0 %v2842_v4  ;;  %541 = vmatpush1.bf16.msra.mxu1 %v2861_v11 }
 0x152   :  { %501 = vmatprep.subr.bf16.mxu0 %v2845_v5  ;;  %542 = vmatprep.subr.bf16.mxu1 %v2869_v14 }
 0x155   :  { %502 = vmatpush1.bf16.msra.mxu0 %v2852_v8  ;;  %543 = vmatpush1.bf16.msra.mxu1 %v2873_v15 }
 0x156   :  { %503 = vmatprep.subr.bf16.mxu0 %v2856_v9  ;;  %544 = vmatprep.subr.bf16.mxu1 %v2876_v16 }
 0x159   :  { %504 = vmatpush1.bf16.msra.mxu0 %v2865_v12  ;;  %545 = vmatpush1.bf16.msra.mxu1 %v2885_v19 }
 0x15a   :  { %505 = vmatprep.subr.bf16.mxu0 %v2867_v13  ;;  %546 = vmatprep.subr.bf16.mxu1 %v2888_v20 }
 0x15d   :  { %506 = vmatpush1.bf16.msra.mxu0 %v2879_v17  ;;  %547 = vmatpush1.bf16.msra.mxu1 %v2897_v23 }
 0x15e   :  { %507 = vmatprep.subr.bf16.mxu0 %v2882_v18  ;;  %548 = vmatprep.subr.bf16.mxu1 %v2900_v24 }
 0x161   :  { %508 = vmatpush1.bf16.msra.mxu0 %v2891_v21  ;;  %549 = vmatpush1.bf16.msra.mxu1 %v2909_v27 }
 0x162   :  { %509 = vmatprep.subr.bf16.mxu0 %v2893_v22  ;;  %550 = vmatprep.subr.bf16.mxu1 %v2912_v28 }
 0x165   :  { %510 = vmatpush1.bf16.msra.mxu0 %v2903_v25  ;;  %551 = vmatpush1.bf16.msra.mxu1 %v2919_v30 }
 0x166   :  { %511 = vmatprep.subr.bf16.mxu0 %v2906_v26  ;;  %552 = vmatprep.subr.bf16.mxu1 %v2922_v31 }
 0x169   :  { %512 = vmatpush1.bf16.msra.mxu0 %v2915_v29  ;;  %553 = vmatpush1.bf16.msra.mxu1 %v2926_v32 }
 0x16a   :  { %622 = vmatprep.subr.bf16.mxu0 %v2834_v1  ;;  %663 = vmatprep.subr.bf16.mxu1 %v2847_v6 }
 0x21f   :  { %v406_v43 = vpop.f32.mrb[4].mxu0  ;;  %v447_v44 = vpop.f32.mrb[4].mxu1 }
 0x220   :  { %v454_v45 = vadd.f32 %v406_v43, %v367_v41  ;;  %v408_v47 = vpop.f32.mrb[5].mxu0  ;;  %v449_v48 = vpop.f32.mrb[5].mxu1  ;;  %v456_v60 = vadd.f32 %v447_v44, %v369_v58 }
 0x221   :  { %v455_v49 = vadd.f32 %v408_v47, %v368_v42  ;;  %v410_v50 = vpop.f32.mrb[6].mxu0  ;;  %v451_v51 = vpop.f32.mrb[6].mxu1  ;;  %v457_v57 = vadd.f32 %v449_v48, %v370_v56 }
 0x222   :  { %v2290_v52 = vmul.f32 -1.442695, %v454_v45  ;;  %v411_v53 = vpop.f32.mrb[7].mxu0  ;;  %v452_v54 = vpop.f32.mrb[7].mxu1 }
 0x223   :  { %v2291_v55 = vmul.f32 -1.442695, %v455_v49  ;;  %v2292_v59 = vmul.f32 -1.442695, %v457_v57 }
 0x224   :  { %2408 = vpow2.f32 %v2290_v52  ;;  %v491_v52 = vld [vmem:[#allocation4 + $0x28] sm:$0xff] }
 0x225   :  { %2410 = vpow2.f32 %v2291_v55 }
 0x226   :  { %2412 = vpow2.f32 %v2292_v59 }
 0x227   :  { %2414 = vtanh.f32 %v456_v60 }
 0x22e   :  { %v2409_v61 = vpop.eup %2408 }
 0x22f   :  { %v2411_v62 = vpop.eup %2410  ;;  %v461_v63 = vadd.f32 1.0, %v2409_v61 }
 0x230   :  { %v467_v33 = vadd.f32 1.0, %v2411_v62  ;;  %v2413_v34 = vpop.eup %2412  ;;  %v495_v62 = vunpack.c.h.bf16 %v491_v52 }
 0x231   :  { %2416 = vrcp.f32 %v461_v63  ;;  %v2415_v36 = vpop.eup %2414  ;;  %v474_v40 = vadd.f32 1.0, %v2413_v34 }
 0x232   :  { %2418 = vrcp.f32 %v467_v33  ;;  %v494_v33 = vunpack.c.l.bf16 %v491_v52 }
 0x233   :  { %2420 = vrcp.f32 %v474_v40 }
 0x23b   :  { %v2417_v37 = vpop.eup %2416 }
 0x23c   :  { %v2419_v38 = vpop.eup %2418  ;;  %v478_v39 = vmul.f32 %v2417_v37, %v2415_v36 }
 0x23d   :  { %v477_v41 = vmul.f32 %v2419_v38, %v2966_v35  ;;  %v2421_v43 = vpop.eup %2420  ;;  %v490_v35 = vld [vmem:[#allocation4 + $0x20] sm:$0xff] }
 0x23e   :  { %v492_v47 = vunpack.c.l.bf16 %v490_v35  ;;  %v493_v48 = vunpack.c.h.bf16 %v490_v35 }
 0x23f   :  { %v3004_v42 = vadd.f32 %v478_v39, %v477_v41 }
 0x241   :  { %2422 = vtanh.f32 %v3004_v42 }
 0x24b   :  { %v2423_v44 = vpop.eup %2422 }
 0x24c   :  { %v481_v45 = vmul.f32 %v2423_v44, %v2421_v43 }
 0x24e   :  { %v484_v46 = vpack.c.bf16 %v481_v45, %v481_v45 }
 0x250   :  { %486 = vst [vmem:[#allocation9 + $0x4] sm:$0xf] %v484_v46  ;;  %530 = vmatmul.mubr.bf16.vlgmr.msra.gmra.mrb[8].mxu0 %v484_v46  ;;  %571 = vmatmul.mubr.bf16.vlgmr.msra.gmra.mrb[8].mxu1 %v484_v46 }
 0x251   :  { %623 = vmatpush1.bf16.msra.mxu0 %v2836_v2  ;;  %664 = vmatpush1.bf16.msra.mxu1 %v2849_v7 }
 0x252   :  { %624 = vmatprep.subr.bf16.mxu0 %v2839_v3  ;;  %665 = vmatprep.subr.bf16.mxu1 %v2859_v10 }
 0x253   :  { %654 = vmatprep.mubr.bf16.mxu0 %v2788_v0  ;;  %695 = vmatprep.mubr.bf16.mxu1 %v2788_v0 }
 0x255   :  { %625 = vmatpush1.bf16.msra.mxu0 %v2842_v4  ;;  %666 = vmatpush1.bf16.msra.mxu1 %v2861_v11 }
 0x256   :  { %626 = vmatprep.subr.bf16.mxu0 %v2845_v5  ;;  %667 = vmatprep.subr.bf16.mxu1 %v2869_v14 }
 0x259   :  { %627 = vmatpush1.bf16.msra.mxu0 %v2852_v8  ;;  %668 = vmatpush1.bf16.msra.mxu1 %v2873_v15 }
 0x25a   :  { %628 = vmatprep.subr.bf16.mxu0 %v2856_v9  ;;  %669 = vmatprep.subr.bf16.mxu1 %v2876_v16 }
 0x25d   :  { %629 = vmatpush1.bf16.msra.mxu0 %v2865_v12  ;;  %670 = vmatpush1.bf16.msra.mxu1 %v2885_v19 }
 0x25e   :  { %630 = vmatprep.subr.bf16.mxu0 %v2867_v13  ;;  %671 = vmatprep.subr.bf16.mxu1 %v2888_v20 }
 0x261   :  { %631 = vmatpush1.bf16.msra.mxu0 %v2879_v17  ;;  %672 = vmatpush1.bf16.msra.mxu1 %v2897_v23 }
 0x262   :  { %632 = vmatprep.subr.bf16.mxu0 %v2882_v18  ;;  %673 = vmatprep.subr.bf16.mxu1 %v2900_v24 }
 0x265   :  { %633 = vmatpush1.bf16.msra.mxu0 %v2891_v21  ;;  %674 = vmatpush1.bf16.msra.mxu1 %v2909_v27 }
 0x266   :  { %634 = vmatprep.subr.bf16.mxu0 %v2893_v22  ;;  %675 = vmatprep.subr.bf16.mxu1 %v2912_v28 }
 0x269   :  { %635 = vmatpush1.bf16.msra.mxu0 %v2903_v25  ;;  %676 = vmatpush1.bf16.msra.mxu1 %v2919_v30 }
 0x26a   :  { %636 = vmatprep.subr.bf16.mxu0 %v2906_v26  ;;  %677 = vmatprep.subr.bf16.mxu1 %v2922_v31 }
 0x26d   :  { %637 = vmatpush1.bf16.msra.mxu0 %v2915_v29  ;;  %678 = vmatpush1.bf16.msra.mxu1 %v2926_v32 }
 0x26e   :  { %747 = vmatprep.subr.bf16.mxu0 %v2834_v1  ;;  %788 = vmatprep.subr.bf16.mxu1 %v2847_v6 }
 0x323   :  { %v531_v49 = vpop.f32.mrb[8].mxu0  ;;  %v572_v50 = vpop.f32.mrb[8].mxu1 }
 0x324   :  { %v579_v51 = vadd.f32 %v531_v49, %v492_v47  ;;  %v533_v53 = vpop.f32.mrb[9].mxu0  ;;  %v574_v54 = vpop.f32.mrb[9].mxu1  ;;  %v581_v36 = vadd.f32 %v572_v50, %v494_v33 }
 0x325   :  { %v580_v55 = vadd.f32 %v533_v53, %v493_v48  ;;  %v535_v56 = vpop.f32.mrb[10].mxu0  ;;  %v576_v57 = vpop.f32.mrb[10].mxu1  ;;  %v582_v63 = vadd.f32 %v574_v54, %v495_v62 }
 0x326   :  { %v2293_v58 = vmul.f32 -1.442695, %v579_v51  ;;  %v536_v59 = vpop.f32.mrb[11].mxu0  ;;  %v577_v60 = vpop.f32.mrb[11].mxu1 }
 0x327   :  { %v2294_v61 = vmul.f32 -1.442695, %v580_v55  ;;  %v2295_v34 = vmul.f32 -1.442695, %v582_v63 }
 0x328   :  { %2424 = vpow2.f32 %v2293_v58  ;;  %v616_v58 = vld [vmem:[#allocation4 + $0x38] sm:$0xff] }
 0x329   :  { %2426 = vpow2.f32 %v2294_v61 }
 0x32a   :  { %2428 = vpow2.f32 %v2295_v34 }
 0x32b   :  { %2430 = vtanh.f32 %v581_v36 }
 0x332   :  { %v2425_v37 = vpop.eup %2424 }
 0x333   :  { %v2427_v38 = vpop.eup %2426  ;;  %v586_v39 = vadd.f32 1.0, %v2425_v37 }
 0x334   :  { %v592_v40 = vadd.f32 1.0, %v2427_v38  ;;  %v2429_v41 = vpop.eup %2428  ;;  %v620_v38 = vunpack.c.h.bf16 %v616_v58 }
 0x335   :  { %2432 = vrcp.f32 %v586_v39  ;;  %v2431_v43 = vpop.eup %2430  ;;  %v599_v35 = vadd.f32 1.0, %v2429_v41 }
 0x336   :  { %2434 = vrcp.f32 %v592_v40  ;;  %v619_v40 = vunpack.c.l.bf16 %v616_v58 }
 0x337   :  { %2436 = vrcp.f32 %v599_v35 }
 0x33f   :  { %v2433_v44 = vpop.eup %2432 }
 0x340   :  { %v2435_v45 = vpop.eup %2434  ;;  %v603_v46 = vmul.f32 %v2433_v44, %v2431_v43 }
 0x341   :  { %v602_v47 = vmul.f32 %v2435_v45, %v3004_v42  ;;  %v2437_v49 = vpop.eup %2436  ;;  %v615_v42 = vld [vmem:[#allocation4 + $0x30] sm:$0xff] }
 0x342   :  { %v617_v53 = vunpack.c.l.bf16 %v615_v42  ;;  %v618_v54 = vunpack.c.h.bf16 %v615_v42 }
 0x343   :  { %v3042_v48 = vadd.f32 %v603_v46, %v602_v47 }
 0x345   :  { %2438 = vtanh.f32 %v3042_v48 }
 0x34f   :  { %v2439_v50 = vpop.eup %2438 }
 0x350   :  { %v606_v51 = vmul.f32 %v2439_v50, %v2437_v49 }
 0x352   :  { %v609_v52 = vpack.c.bf16 %v606_v51, %v606_v51 }
 0x354   :  { %611 = vst [vmem:[#allocation9 + $0x8] sm:$0xf] %v609_v52  ;;  %655 = vmatmul.mubr.bf16.vlgmr.msra.gmra.mrb[12].mxu0 %v609_v52  ;;  %696 = vmatmul.mubr.bf16.vlgmr.msra.gmra.mrb[12].mxu1 %v609_v52 }
 0x355   :  { %748 = vmatpush1.bf16.msra.mxu0 %v2836_v2  ;;  %789 = vmatpush1.bf16.msra.mxu1 %v2849_v7 }
 0x356   :  { %749 = vmatprep.subr.bf16.mxu0 %v2839_v3  ;;  %790 = vmatprep.subr.bf16.mxu1 %v2859_v10 }
 0x357   :  { %779 = vmatprep.mubr.bf16.mxu0 %v2788_v0  ;;  %820 = vmatprep.mubr.bf16.mxu1 %v2788_v0 }
 0x359   :  { %750 = vmatpush1.bf16.msra.mxu0 %v2842_v4  ;;  %791 = vmatpush1.bf16.msra.mxu1 %v2861_v11 }
 0x35a   :  { %751 = vmatprep.subr.bf16.mxu0 %v2845_v5  ;;  %792 = vmatprep.subr.bf16.mxu1 %v2869_v14 }
 0x35d   :  { %752 = vmatpush1.bf16.msra.mxu0 %v2852_v8  ;;  %793 = vmatpush1.bf16.msra.mxu1 %v2873_v15 }
 0x35e   :  { %753 = vmatprep.subr.bf16.mxu0 %v2856_v9  ;;  %794 = vmatprep.subr.bf16.mxu1 %v2876_v16 }
 0x361   :  { %754 = vmatpush1.bf16.msra.mxu0 %v2865_v12  ;;  %795 = vmatpush1.bf16.msra.mxu1 %v2885_v19 }
 0x362   :  { %755 = vmatprep.subr.bf16.mxu0 %v2867_v13  ;;  %796 = vmatprep.subr.bf16.mxu1 %v2888_v20 }
 0x365   :  { %756 = vmatpush1.bf16.msra.mxu0 %v2879_v17  ;;  %797 = vmatpush1.bf16.msra.mxu1 %v2897_v23 }
 0x366   :  { %757 = vmatprep.subr.bf16.mxu0 %v2882_v18  ;;  %798 = vmatprep.subr.bf16.mxu1 %v2900_v24 }
 0x369   :  { %758 = vmatpush1.bf16.msra.mxu0 %v2891_v21  ;;  %799 = vmatpush1.bf16.msra.mxu1 %v2909_v27 }
 0x36a   :  { %759 = vmatprep.subr.bf16.mxu0 %v2893_v22  ;;  %800 = vmatprep.subr.bf16.mxu1 %v2912_v28 }
 0x36d   :  { %760 = vmatpush1.bf16.msra.mxu0 %v2903_v25  ;;  %801 = vmatpush1.bf16.msra.mxu1 %v2919_v30 }
 0x36e   :  { %761 = vmatprep.subr.bf16.mxu0 %v2906_v26  ;;  %802 = vmatprep.subr.bf16.mxu1 %v2922_v31 }
 0x371   :  { %762 = vmatpush1.bf16.msra.mxu0 %v2915_v29  ;;  %803 = vmatpush1.bf16.msra.mxu1 %v2926_v32 }
 0x372   :  { %872 = vmatprep.subr.bf16.mxu0 %v2834_v1  ;;  %913 = vmatprep.subr.bf16.mxu1 %v2847_v6 }
 0x427   :  { %v656_v55 = vpop.f32.mrb[12].mxu0  ;;  %v697_v56 = vpop.f32.mrb[12].mxu1 }
 0x428   :  { %v704_v57 = vadd.f32 %v656_v55, %v617_v53  ;;  %v658_v59 = vpop.f32.mrb[13].mxu0  ;;  %v699_v60 = vpop.f32.mrb[13].mxu1  ;;  %v706_v43 = vadd.f32 %v697_v56, %v619_v40 }
 0x429   :  { %v705_v61 = vadd.f32 %v658_v59, %v618_v54  ;;  %v660_v62 = vpop.f32.mrb[14].mxu0  ;;  %v701_v63 = vpop.f32.mrb[14].mxu1  ;;  %v707_v39 = vadd.f32 %v699_v60, %v620_v38 }
 0x42a   :  { %v2296_v33 = vmul.f32 -1.442695, %v704_v57  ;;  %v661_v34 = vpop.f32.mrb[15].mxu0  ;;  %v702_v36 = vpop.f32.mrb[15].mxu1 }
 0x42b   :  { %v2297_v37 = vmul.f32 -1.442695, %v705_v61  ;;  %v2298_v41 = vmul.f32 -1.442695, %v707_v39 }
 0x42c   :  { %2440 = vpow2.f32 %v2296_v33  ;;  %v741_v33 = vld [vmem:[#allocation4 + $0x48] sm:$0xff] }
 0x42d   :  { %2442 = vpow2.f32 %v2297_v37 }
 0x42e   :  { %2444 = vpow2.f32 %v2298_v41 }
 0x42f   :  { %2446 = vtanh.f32 %v706_v43 }
 0x436   :  { %v2441_v44 = vpop.eup %2440 }
 0x437   :  { %v2443_v45 = vpop.eup %2442  ;;  %v711_v46 = vadd.f32 1.0, %v2441_v44 }
 0x438   :  { %v717_v35 = vadd.f32 1.0, %v2443_v45  ;;  %v2445_v47 = vpop.eup %2444  ;;  %v745_v45 = vunpack.c.h.bf16 %v741_v33 }
 0x439   :  { %2448 = vrcp.f32 %v711_v46  ;;  %v2447_v49 = vpop.eup %2446  ;;  %v724_v42 = vadd.f32 1.0, %v2445_v47 }
 0x43a   :  { %2450 = vrcp.f32 %v717_v35 }
 0x43b   :  { %2452 = vrcp.f32 %v724_v42 }
 0x443   :  { %v2449_v50 = vpop.eup %2448 }
 0x444   :  { %v2451_v51 = vpop.eup %2450  ;;  %v728_v52 = vmul.f32 %v2449_v50, %v2447_v49 }
 0x445   :  { %v727_v53 = vmul.f32 %v2451_v51, %v3042_v48  ;;  %v2453_v55 = vpop.eup %2452  ;;  %v740_v48 = vld [vmem:[#allocation4 + $0x40] sm:$0xff] }
 0x446   :  { %v742_v59 = vunpack.c.l.bf16 %v740_v48  ;;  %v743_v60 = vunpack.c.h.bf16 %v740_v48 }
 0x447   :  { %v3080_v54 = vadd.f32 %v728_v52, %v727_v53 }
 0x449   :  { %2454 = vtanh.f32 %v3080_v54 }
 0x453   :  { %v2455_v56 = vpop.eup %2454 }
 0x454   :  { %v731_v57 = vmul.f32 %v2455_v56, %v2453_v55 }
 0x456   :  { %v734_v58 = vpack.c.bf16 %v731_v57, %v731_v57 }
 0x458   :  { %736 = vst [vmem:[#allocation9 + $0xc] sm:$0xf] %v734_v58  ;;  %780 = vmatmul.mubr.bf16.vlgmr.msra.gmra.mrb[16].mxu0 %v734_v58  ;;  %821 = vmatmul.mubr.bf16.vlgmr.msra.gmra.mrb[16].mxu1 %v734_v58 }
 0x459   :  { %873 = vmatpush1.bf16.msra.mxu0 %v2836_v2  ;;  %914 = vmatpush1.bf16.msra.mxu1 %v2849_v7 }
 0x45a   :  { %874 = vmatprep.subr.bf16.mxu0 %v2839_v3  ;;  %915 = vmatprep.subr.bf16.mxu1 %v2859_v10 }
 0x45b   :  { %904 = vmatprep.mubr.bf16.mxu0 %v2788_v0  ;;  %945 = vmatprep.mubr.bf16.mxu1 %v2788_v0 }
 0x45d   :  { %875 = vmatpush1.bf16.msra.mxu0 %v2842_v4  ;;  %916 = vmatpush1.bf16.msra.mxu1 %v2861_v11 }
 0x45e   :  { %876 = vmatprep.subr.bf16.mxu0 %v2845_v5  ;;  %917 = vmatprep.subr.bf16.mxu1 %v2869_v14 }
 0x461   :  { %877 = vmatpush1.bf16.msra.mxu0 %v2852_v8  ;;  %918 = vmatpush1.bf16.msra.mxu1 %v2873_v15 }
 0x462   :  { %878 = vmatprep.subr.bf16.mxu0 %v2856_v9  ;;  %919 = vmatprep.subr.bf16.mxu1 %v2876_v16 }
 0x465   :  { %879 = vmatpush1.bf16.msra.mxu0 %v2865_v12  ;;  %920 = vmatpush1.bf16.msra.mxu1 %v2885_v19 }
 0x466   :  { %880 = vmatprep.subr.bf16.mxu0 %v2867_v13  ;;  %921 = vmatprep.subr.bf16.mxu1 %v2888_v20 }
 0x469   :  { %881 = vmatpush1.bf16.msra.mxu0 %v2879_v17  ;;  %922 = vmatpush1.bf16.msra.mxu1 %v2897_v23 }
 0x46a   :  { %882 = vmatprep.subr.bf16.mxu0 %v2882_v18  ;;  %923 = vmatprep.subr.bf16.mxu1 %v2900_v24 }
 0x46d   :  { %883 = vmatpush1.bf16.msra.mxu0 %v2891_v21  ;;  %924 = vmatpush1.bf16.msra.mxu1 %v2909_v27 }
 0x46e   :  { %884 = vmatprep.subr.bf16.mxu0 %v2893_v22  ;;  %925 = vmatprep.subr.bf16.mxu1 %v2912_v28 }
 0x471   :  { %885 = vmatpush1.bf16.msra.mxu0 %v2903_v25  ;;  %926 = vmatpush1.bf16.msra.mxu1 %v2919_v30 }
 0x472   :  { %886 = vmatprep.subr.bf16.mxu0 %v2906_v26  ;;  %927 = vmatprep.subr.bf16.mxu1 %v2922_v31 }
 0x475   :  { %887 = vmatpush1.bf16.msra.mxu0 %v2915_v29  ;;  %928 = vmatpush1.bf16.msra.mxu1 %v2926_v32 }
 0x476   :  { %997 = vmatprep.subr.bf16.mxu0 %v2834_v1  ;;  %1038 = vmatprep.subr.bf16.mxu1 %v2847_v6  ;;  %v744_v6 = vunpack.c.l.bf16 %v741_v33 }
 0x52b   :  { %v781_v61 = vpop.f32.mrb[16].mxu0  ;;  %v822_v62 = vpop.f32.mrb[16].mxu1 }
 0x52c   :  { %v829_v63 = vadd.f32 %v781_v61, %v742_v59  ;;  %v783_v34 = vpop.f32.mrb[17].mxu0  ;;  %v824_v36 = vpop.f32.mrb[17].mxu1  ;;  %v831_v35 = vadd.f32 %v822_v62, %v744_v6  ;;  %v3180_v6 = vld [vmem:[#allocation7 + $0x28] ss:$16 sps:$4 sm:$0xff]  }
 0x52d   :  { %v830_v37 = vadd.f32 %v783_v34, %v743_v60  ;;  %v785_v38 = vpop.f32.mrb[18].mxu0  ;;  %v826_v39 = vpop.f32.mrb[18].mxu1  ;;  %v832_v1 = vadd.f32 %v824_v36, %v745_v45  ;;  %v3172_v45 = vld [vmem:[#allocation7 + $0x2c] ss:$16 sps:$4 sm:$0xff]  }
 0x52e   :  { %v2299_v40 = vmul.f32 -1.442695, %v829_v63  ;;  %v786_v41 = vpop.f32.mrb[19].mxu0  ;;  %v827_v43 = vpop.f32.mrb[19].mxu1 }
 0x52f   :  { %v2300_v44 = vmul.f32 -1.442695, %v830_v37  ;;  %v2301_v46 = vmul.f32 -1.442695, %v832_v1  ;;  %v3163_v41 = vld [vmem:[#allocation7] ss:$16 sps:$4 sm:$0xff]  }
 0x530   :  { %2456 = vpow2.f32 %v2299_v40  ;;  %v3166_v43 = vld [vmem:[#allocation7 + $0x8] ss:$16 sps:$4 sm:$0xff]   ;;  %v3177_v1 = vld [vmem:[#allocation7 + $0x20] ss:$16 sps:$4 sm:$0xff]  }
 0x531   :  { %2458 = vpow2.f32 %v2300_v44  ;;  %v3169_v44 = vld [vmem:[#allocation7 + $0x24] ss:$16 sps:$4 sm:$0xff]  }
 0x532   :  { %2460 = vpow2.f32 %v2301_v46  ;;  %v3183_v46 = vld [vmem:[#allocation7 + $0x44] ss:$16 sps:$4 sm:$0xff]  }
 0x533   :  { %2462 = vtanh.f32 %v831_v35  ;;  %v3186_v35 = vld [vmem:[#allocation7 + $0x4c] ss:$16 sps:$4 sm:$0xff]  }
 0x53a   :  { %v2457_v47 = vpop.eup %2456 }
 0x53b   :  { %v2459_v49 = vpop.eup %2458  ;;  %v836_v50 = vadd.f32 1.0, %v2457_v47  ;;  %v3189_v47 = vld [vmem:[#allocation7 + $0x40] ss:$16 sps:$4 sm:$0xff]  }
 0x53c   :  { %v842_v51 = vadd.f32 1.0, %v2459_v49  ;;  %v2461_v52 = vpop.eup %2460  ;;  %v3192_v49 = vld [vmem:[#allocation7 + $0x48] ss:$16 sps:$4 sm:$0xff]  }
 0x53d   :  { %2464 = vrcp.f32 %v836_v50  ;;  %v2463_v42 = vpop.eup %2462  ;;  %v849_v57 = vadd.f32 1.0, %v2461_v52  ;;  %v3195_v50 = vld [vmem:[#allocation7 + $0x64] ss:$16 sps:$4 sm:$0xff]   ;;  %v3201_v52 = vld [vmem:[#allocation7 + $0x60] ss:$16 sps:$4 sm:$0xff]  }
 0x53e   :  { %2466 = vrcp.f32 %v842_v51  ;;  %v3198_v51 = vld [vmem:[#allocation7 + $0x6c] ss:$16 sps:$4 sm:$0xff]  }
 0x53f   :  { %2468 = vrcp.f32 %v849_v57  ;;  %v3216_v57 = vld [vmem:[#allocation7 + $0x88] ss:$16 sps:$4 sm:$0xff]  }
 0x547   :  { %v2465_v53 = vpop.eup %2464 }
 0x548   :  { %v2467_v55 = vpop.eup %2466  ;;  %v853_v56 = vmul.f32 %v2465_v53, %v2463_v42  ;;  %v3204_v42 = vld [vmem:[#allocation7 + $0x68] ss:$16 sps:$4 sm:$0xff]   ;;  %v3207_v53 = vld [vmem:[#allocation7 + $0x84] ss:$16 sps:$4 sm:$0xff]  }
 0x549   :  { %v852_v58 = vmul.f32 %v2467_v55, %v3080_v54  ;;  %v2469_v59 = vpop.eup %2468  ;;  %v3210_v55 = vld [vmem:[#allocation7 + $0x8c] ss:$16 sps:$4 sm:$0xff]  }
 0x54b   :  { %v3118_v48 = vadd.f32 %v853_v56, %v852_v58  ;;  %v3213_v56 = vld [vmem:[#allocation7 + $0x80] ss:$16 sps:$4 sm:$0xff]   ;;  %v3219_v58 = vld [vmem:[#allocation7 + $0xa4] ss:$16 sps:$4 sm:$0xff]  }
 0x54d   :  { %2470 = vtanh.f32 %v3118_v48 }
 0x557   :  { %v2471_v60 = vpop.eup %2470 }
 0x558   :  { %v856_v61 = vmul.f32 %v2471_v60, %v2469_v59  ;;  %v3225_v59 = vld [vmem:[#allocation7 + $0xa0] ss:$16 sps:$4 sm:$0xff]   ;;  %v3228_v60 = vld [vmem:[#allocation7 + $0xa8] ss:$16 sps:$4 sm:$0xff]  }
 0x55a   :  { %v859_v62 = vpack.c.bf16 %v856_v61, %v856_v61  ;;  %v3231_v61 = vld [vmem:[#allocation7 + $0xc4] ss:$16 sps:$4 sm:$0xff]  }
 0x55c   :  { %861 = vst [vmem:[#allocation9 + $0x10] sm:$0xf] %v859_v62  ;;  %905 = vmatmul.mubr.bf16.vlgmr.msra.gmra.mrb[20].mxu0 %v859_v62  ;;  %946 = vmatmul.mubr.bf16.vlgmr.msra.gmra.mrb[20].mxu1 %v859_v62  ;;  %v3234_v62 = vld [vmem:[#allocation7 + $0xcc] ss:$16 sps:$4 sm:$0xff]  }
 0x55d   :  { %998 = vmatpush1.bf16.msra.mxu0 %v2836_v2  ;;  %1039 = vmatpush1.bf16.msra.mxu1 %v2849_v7  ;;  %v3153_v2 = vld [vmem:[#allocation7 + $0x4] ss:$16 sps:$4 sm:$0xff]  }
 0x55e   :  { %999 = vmatprep.subr.bf16.mxu0 %v2839_v3  ;;  %1040 = vmatprep.subr.bf16.mxu1 %v2859_v10  ;;  %v3156_v3 = vld [vmem:[#allocation7 + $0xc] ss:$16 sps:$4 sm:$0xff]  }
 0x55f   :  { %1029 = vmatprep.mubr.bf16.mxu0 %v2788_v0  ;;  %1070 = vmatprep.mubr.bf16.mxu1 %v2788_v0 }
 0x561   :  { %1000 = vmatpush1.bf16.msra.mxu0 %v2842_v4  ;;  %1041 = vmatpush1.bf16.msra.mxu1 %v2861_v11  ;;  %v865_v4 = vld [vmem:[#allocation4 + $0x50] sm:$0xff]  ;;  %v866_v11 = vld [vmem:[#allocation4 + $0x58] sm:$0xff] }
 0x562   :  { %1001 = vmatprep.subr.bf16.mxu0 %v2845_v5  ;;  %1042 = vmatprep.subr.bf16.mxu1 %v2869_v14  ;;  %v867_v5 = vunpack.c.l.bf16 %v865_v4  ;;  %v868_v7 = vunpack.c.h.bf16 %v865_v4  ;;  %v3237_v4 = vld [vmem:[#allocation7 + $0xc0] ss:$16 sps:$4 sm:$0xff]  }
 0x565   :  { %1002 = vmatpush1.bf16.msra.mxu0 %v2852_v8  ;;  %1043 = vmatpush1.bf16.msra.mxu1 %v2873_v15 }
 0x566   :  { %1003 = vmatprep.subr.bf16.mxu0 %v2856_v9  ;;  %1044 = vmatprep.subr.bf16.mxu1 %v2876_v16 }
 0x569   :  { %1004 = vmatpush1.bf16.msra.mxu0 %v2865_v12  ;;  %1045 = vmatpush1.bf16.msra.mxu1 %v2885_v19 }
 0x56a   :  { %1005 = vmatprep.subr.bf16.mxu0 %v2867_v13  ;;  %1046 = vmatprep.subr.bf16.mxu1 %v2888_v20 }
 0x56d   :  { %1006 = vmatpush1.bf16.msra.mxu0 %v2879_v17  ;;  %1047 = vmatpush1.bf16.msra.mxu1 %v2897_v23  ;;  %v869_v23 = vunpack.c.l.bf16 %v866_v11 }
 0x56e   :  { %1007 = vmatprep.subr.bf16.mxu0 %v2882_v18  ;;  %1048 = vmatprep.subr.bf16.mxu1 %v2900_v24 }
 0x571   :  { %1008 = vmatpush1.bf16.msra.mxu0 %v2891_v21  ;;  %1049 = vmatpush1.bf16.msra.mxu1 %v2909_v27  ;;  %v870_v21 = vunpack.c.h.bf16 %v866_v11  ;;  %v990_v11 = vld [vmem:[#allocation4 + $0x60] sm:$0xff] }
 0x572   :  { %1009 = vmatprep.subr.bf16.mxu0 %v2893_v22  ;;  %1050 = vmatprep.subr.bf16.mxu1 %v2912_v28 }
 0x575   :  { %1010 = vmatpush1.bf16.msra.mxu0 %v2903_v25  ;;  %1051 = vmatpush1.bf16.msra.mxu1 %v2919_v30 }
 0x576   :  { %1011 = vmatprep.subr.bf16.mxu0 %v2906_v26  ;;  %1052 = vmatprep.subr.bf16.mxu1 %v2922_v31 }
 0x579   :  { %1012 = vmatpush1.bf16.msra.mxu0 %v2915_v29  ;;  %1053 = vmatpush1.bf16.msra.mxu1 %v2926_v32 }
 0x57a   :  { %1122 = vmatprep.subr.bf16.mxu0 %v3153_v2  ;;  %1163 = vmatprep.subr.bf16.mxu1 %v3156_v3 }
 0x62f   :  { %v906_v8 = vpop.f32.mrb[20].mxu0  ;;  %v947_v9 = vpop.f32.mrb[20].mxu1 }
 0x630   :  { %v954_v10 = vadd.f32 %v906_v8, %v867_v5  ;;  %v908_v12 = vpop.f32.mrb[21].mxu0  ;;  %v949_v13 = vpop.f32.mrb[21].mxu1  ;;  %v956_v25 = vadd.f32 %v947_v9, %v869_v23  ;;  %v3240_v5 = vld [vmem:[#allocation7 + $0xc8] ss:$16 sps:$4 sm:$0xff]   ;;  %v3246_v8 = vld [vmem:[#allocation7 + $0xec] ss:$16 sps:$4 sm:$0xff]  }
 0x631   :  { %v955_v14 = vadd.f32 %v908_v12, %v868_v7  ;;  %v910_v15 = vpop.f32.mrb[22].mxu0  ;;  %v951_v16 = vpop.f32.mrb[22].mxu1  ;;  %v957_v22 = vadd.f32 %v949_v13, %v870_v21  ;;  %v3243_v7 = vld [vmem:[#allocation7 + $0xe4] ss:$16 sps:$4 sm:$0xff]   ;;  %v3249_v9 = vld [vmem:[#allocation7 + $0xe0] ss:$16 sps:$4 sm:$0xff]   ;;  %v992_v12 = vunpack.c.l.bf16 %v990_v11  ;;  %v993_v13 = vunpack.c.h.bf16 %v990_v11 }
 0x632   :  { %v2302_v17 = vmul.f32 -1.442695, %v954_v10  ;;  %v911_v18 = vpop.f32.mrb[23].mxu0  ;;  %v952_v19 = vpop.f32.mrb[23].mxu1  ;;  %v3252_v10 = vld [vmem:[#allocation7 + $0xe8] ss:$16 sps:$4 sm:$0xff]  }
 0x633   :  { %v2303_v20 = vmul.f32 -1.442695, %v955_v14  ;;  %v2304_v24 = vmul.f32 -1.442695, %v957_v22 }
 0x634   :  { %2472 = vpow2.f32 %v2302_v17  ;;  %v991_v17 = vld [vmem:[#allocation4 + $0x68] sm:$0xff] }
 0x635   :  { %2474 = vpow2.f32 %v2303_v20 }
 0x636   :  { %2476 = vpow2.f32 %v2304_v24 }
 0x637   :  { %2478 = vtanh.f32 %v956_v25 }
 0x63e   :  { %v2473_v26 = vpop.eup %2472 }
 0x63f   :  { %v2475_v27 = vpop.eup %2474  ;;  %v961_v28 = vadd.f32 1.0, %v2473_v26 }
 0x640   :  { %v967_v29 = vadd.f32 1.0, %v2475_v27  ;;  %v2477_v30 = vpop.eup %2476  ;;  %v995_v27 = vunpack.c.h.bf16 %v991_v17 }
 0x641   :  { %2480 = vrcp.f32 %v961_v28  ;;  %v2479_v31 = vpop.eup %2478  ;;  %v974_v33 = vadd.f32 1.0, %v2477_v30 }
 0x642   :  { %2482 = vrcp.f32 %v967_v29  ;;  %v994_v29 = vunpack.c.l.bf16 %v991_v17 }
 0x643   :  { %2484 = vrcp.f32 %v974_v33 }
 0x64b   :  { %v2481_v32 = vpop.eup %2480 }
 0x64c   :  { %v2483_v54 = vpop.eup %2482  ;;  %v978_v63 = vmul.f32 %v2481_v32, %v2479_v31 }
 0x64d   :  { %v977_v34 = vmul.f32 %v2483_v54, %v3118_v48  ;;  %v2485_v37 = vpop.eup %2484  ;;  %v3222_v48 = vld [vmem:[#allocation7 + $0xac] ss:$16 sps:$4 sm:$0xff]  }
 0x64f   :  { %v3160_v36 = vadd.f32 %v978_v63, %v977_v34 }
 0x651   :  { %2486 = vtanh.f32 %v3160_v36 }
 0x65b   :  { %v2487_v38 = vpop.eup %2486 }
 0x65c   :  { %v981_v39 = vmul.f32 %v2487_v38, %v2485_v37 }
 0x65e   :  { %v984_v40 = vpack.c.bf16 %v981_v39, %v981_v39 }
 0x660   :  { %986 = vst [vmem:[#allocation9 + $0x14] sm:$0xf] %v984_v40  ;;  %1030 = vmatmul.mubr.bf16.vlgmr.msra.gmra.mrb[24].mxu0 %v984_v40  ;;  %1071 = vmatmul.mubr.bf16.vlgmr.msra.gmra.mrb[24].mxu1 %v984_v40 }
 0x661   :  { %1123 = vmatpush1.bf16.msra.mxu0 %v3163_v41  ;;  %1164 = vmatpush1.bf16.msra.mxu1 %v3166_v43 }
 0x662   :  { %1124 = vmatprep.subr.bf16.mxu0 %v3169_v44  ;;  %1165 = vmatprep.subr.bf16.mxu1 %v3172_v45 }
 0x663   :  { %1154 = vmatprep.mubr.bf16.mxu0 %v2788_v0  ;;  %1195 = vmatprep.mubr.bf16.mxu1 %v2788_v0 }
 0x665   :  { %1125 = vmatpush1.bf16.msra.mxu0 %v3177_v1  ;;  %1166 = vmatpush1.bf16.msra.mxu1 %v3180_v6 }
 0x666   :  { %1126 = vmatprep.subr.bf16.mxu0 %v3183_v46  ;;  %1167 = vmatprep.subr.bf16.mxu1 %v3186_v35 }
 0x669   :  { %1127 = vmatpush1.bf16.msra.mxu0 %v3189_v47  ;;  %1168 = vmatpush1.bf16.msra.mxu1 %v3192_v49 }
 0x66a   :  { %1128 = vmatprep.subr.bf16.mxu0 %v3195_v50  ;;  %1169 = vmatprep.subr.bf16.mxu1 %v3198_v51 }
 0x66d   :  { %1129 = vmatpush1.bf16.msra.mxu0 %v3201_v52  ;;  %1170 = vmatpush1.bf16.msra.mxu1 %v3204_v42 }
 0x66e   :  { %1130 = vmatprep.subr.bf16.mxu0 %v3207_v53  ;;  %1171 = vmatprep.subr.bf16.mxu1 %v3210_v55 }
 0x671   :  { %1131 = vmatpush1.bf16.msra.mxu0 %v3213_v56  ;;  %1172 = vmatpush1.bf16.msra.mxu1 %v3216_v57 }
 0x672   :  { %1132 = vmatprep.subr.bf16.mxu0 %v3219_v58  ;;  %1173 = vmatprep.subr.bf16.mxu1 %v3222_v48 }
 0x675   :  { %1133 = vmatpush1.bf16.msra.mxu0 %v3225_v59  ;;  %1174 = vmatpush1.bf16.msra.mxu1 %v3228_v60 }
 0x676   :  { %1134 = vmatprep.subr.bf16.mxu0 %v3231_v61  ;;  %1175 = vmatprep.subr.bf16.mxu1 %v3234_v62 }
 0x679   :  { %1135 = vmatpush1.bf16.msra.mxu0 %v3237_v4  ;;  %1176 = vmatpush1.bf16.msra.mxu1 %v3240_v5 }
 0x67a   :  { %1136 = vmatprep.subr.bf16.mxu0 %v3243_v7  ;;  %1177 = vmatprep.subr.bf16.mxu1 %v3246_v8 }
 0x67d   :  { %1137 = vmatpush1.bf16.msra.mxu0 %v3249_v9  ;;  %1178 = vmatpush1.bf16.msra.mxu1 %v3252_v10 }
 0x67e   :  { %1247 = vmatprep.subr.bf16.mxu0 %v3153_v2  ;;  %1288 = vmatprep.subr.bf16.mxu1 %v3156_v3 }
 0x733   :  { %v1031_v14 = vpop.f32.mrb[24].mxu0  ;;  %v1072_v15 = vpop.f32.mrb[24].mxu1 }
 0x734   :  { %v1079_v16 = vadd.f32 %v1031_v14, %v992_v12  ;;  %v1033_v18 = vpop.f32.mrb[25].mxu0  ;;  %v1074_v19 = vpop.f32.mrb[25].mxu1  ;;  %v1081_v31 = vadd.f32 %v1072_v15, %v994_v29 }
 0x735   :  { %v1080_v20 = vadd.f32 %v1033_v18, %v993_v13  ;;  %v1035_v21 = vpop.f32.mrb[26].mxu0  ;;  %v1076_v22 = vpop.f32.mrb[26].mxu1  ;;  %v1082_v28 = vadd.f32 %v1074_v19, %v995_v27 }
 0x736   :  { %v2305_v23 = vmul.f32 -1.442695, %v1079_v16  ;;  %v1036_v24 = vpop.f32.mrb[27].mxu0  ;;  %v1077_v25 = vpop.f32.mrb[27].mxu1 }
 0x737   :  { %v2306_v26 = vmul.f32 -1.442695, %v1080_v20  ;;  %v2307_v30 = vmul.f32 -1.442695, %v1082_v28 }
 0x738   :  { %2488 = vpow2.f32 %v2305_v23  ;;  %v1116_v23 = vld [vmem:[#allocation4 + $0x78] sm:$0xff] }
 0x739   :  { %2490 = vpow2.f32 %v2306_v26 }
 0x73a   :  { %2492 = vpow2.f32 %v2307_v30 }
 0x73b   :  { %2494 = vtanh.f32 %v1081_v31 }
 0x742   :  { %v2489_v32 = vpop.eup %2488 }
 0x743   :  { %v2491_v54 = vpop.eup %2490  ;;  %v1086_v63 = vadd.f32 1.0, %v2489_v32 }
 0x744   :  { %v1092_v33 = vadd.f32 1.0, %v2491_v54  ;;  %v2493_v34 = vpop.eup %2492  ;;  %v1120_v54 = vunpack.c.h.bf16 %v1116_v23 }
 0x745   :  { %2496 = vrcp.f32 %v1086_v63  ;;  %v2495_v37 = vpop.eup %2494  ;;  %v1099_v11 = vadd.f32 1.0, %v2493_v34 }
 0x746   :  { %2498 = vrcp.f32 %v1092_v33  ;;  %v1119_v33 = vunpack.c.l.bf16 %v1116_v23 }
 0x747   :  { %2500 = vrcp.f32 %v1099_v11 }
 0x74f   :  { %v2497_v38 = vpop.eup %2496 }
 0x750   :  { %v2499_v39 = vpop.eup %2498  ;;  %v1103_v40 = vmul.f32 %v2497_v38, %v2495_v37 }
 0x751   :  { %v1102_v12 = vmul.f32 %v2499_v39, %v3160_v36  ;;  %v2501_v14 = vpop.eup %2500  ;;  %v1115_v36 = vld [vmem:[#allocation4 + $0x70] sm:$0xff] }
 0x752   :  { %v1117_v18 = vunpack.c.l.bf16 %v1115_v36  ;;  %v1118_v19 = vunpack.c.h.bf16 %v1115_v36 }
 0x753   :  { %v3258_v13 = vadd.f32 %v1103_v40, %v1102_v12 }
 0x755   :  { %2502 = vtanh.f32 %v3258_v13 }
 0x75f   :  { %v2503_v15 = vpop.eup %2502 }
 0x760   :  { %v1106_v16 = vmul.f32 %v2503_v15, %v2501_v14 }
 0x762   :  { %v1109_v17 = vpack.c.bf16 %v1106_v16, %v1106_v16 }
 0x764   :  { %1111 = vst [vmem:[#allocation9 + $0x18] sm:$0xf] %v1109_v17  ;;  %1155 = vmatmul.mubr.bf16.vlgmr.msra.gmra.mrb[28].mxu0 %v1109_v17  ;;  %1196 = vmatmul.mubr.bf16.vlgmr.msra.gmra.mrb[28].mxu1 %v1109_v17 }
 0x765   :  { %1248 = vmatpush1.bf16.msra.mxu0 %v3163_v41  ;;  %1289 = vmatpush1.bf16.msra.mxu1 %v3166_v43 }
 0x766   :  { %1249 = vmatprep.subr.bf16.mxu0 %v3169_v44  ;;  %1290 = vmatprep.subr.bf16.mxu1 %v3172_v45 }
 0x767   :  { %1279 = vmatprep.mubr.bf16.mxu0 %v2788_v0  ;;  %1320 = vmatprep.mubr.bf16.mxu1 %v2788_v0 }
 0x769   :  { %1250 = vmatpush1.bf16.msra.mxu0 %v3177_v1  ;;  %1291 = vmatpush1.bf16.msra.mxu1 %v3180_v6 }
 0x76a   :  { %1251 = vmatprep.subr.bf16.mxu0 %v3183_v46  ;;  %1292 = vmatprep.subr.bf16.mxu1 %v3186_v35 }
 0x76d   :  { %1252 = vmatpush1.bf16.msra.mxu0 %v3189_v47  ;;  %1293 = vmatpush1.bf16.msra.mxu1 %v3192_v49 }
 0x76e   :  { %1253 = vmatprep.subr.bf16.mxu0 %v3195_v50  ;;  %1294 = vmatprep.subr.bf16.mxu1 %v3198_v51 }
 0x771   :  { %1254 = vmatpush1.bf16.msra.mxu0 %v3201_v52  ;;  %1295 = vmatpush1.bf16.msra.mxu1 %v3204_v42 }
 0x772   :  { %1255 = vmatprep.subr.bf16.mxu0 %v3207_v53  ;;  %1296 = vmatprep.subr.bf16.mxu1 %v3210_v55 }
 0x775   :  { %1256 = vmatpush1.bf16.msra.mxu0 %v3213_v56  ;;  %1297 = vmatpush1.bf16.msra.mxu1 %v3216_v57 }
 0x776   :  { %1257 = vmatprep.subr.bf16.mxu0 %v3219_v58  ;;  %1298 = vmatprep.subr.bf16.mxu1 %v3222_v48 }
 0x779   :  { %1258 = vmatpush1.bf16.msra.mxu0 %v3225_v59  ;;  %1299 = vmatpush1.bf16.msra.mxu1 %v3228_v60 }
 0x77a   :  { %1259 = vmatprep.subr.bf16.mxu0 %v3231_v61  ;;  %1300 = vmatprep.subr.bf16.mxu1 %v3234_v62 }
 0x77d   :  { %1260 = vmatpush1.bf16.msra.mxu0 %v3237_v4  ;;  %1301 = vmatpush1.bf16.msra.mxu1 %v3240_v5 }
 0x77e   :  { %1261 = vmatprep.subr.bf16.mxu0 %v3243_v7  ;;  %1302 = vmatprep.subr.bf16.mxu1 %v3246_v8 }
 0x781   :  { %1262 = vmatpush1.bf16.msra.mxu0 %v3249_v9  ;;  %1303 = vmatpush1.bf16.msra.mxu1 %v3252_v10 }
 0x782   :  { %1372 = vmatprep.subr.bf16.mxu0 %v3153_v2  ;;  %1413 = vmatprep.subr.bf16.mxu1 %v3156_v3 }
 0x837   :  { %v1156_v20 = vpop.f32.mrb[28].mxu0  ;;  %v1197_v21 = vpop.f32.mrb[28].mxu1 }
 0x838   :  { %v1204_v22 = vadd.f32 %v1156_v20, %v1117_v18  ;;  %v1158_v24 = vpop.f32.mrb[29].mxu0  ;;  %v1199_v25 = vpop.f32.mrb[29].mxu1  ;;  %v1206_v37 = vadd.f32 %v1197_v21, %v1119_v33 }
 0x839   :  { %v1205_v26 = vadd.f32 %v1158_v24, %v1118_v19  ;;  %v1160_v27 = vpop.f32.mrb[30].mxu0  ;;  %v1201_v28 = vpop.f32.mrb[30].mxu1  ;;  %v1207_v63 = vadd.f32 %v1199_v25, %v1120_v54 }
 0x83a   :  { %v2308_v29 = vmul.f32 -1.442695, %v1204_v22  ;;  %v1161_v30 = vpop.f32.mrb[31].mxu0  ;;  %v1202_v31 = vpop.f32.mrb[31].mxu1 }
 0x83b   :  { %v2309_v32 = vmul.f32 -1.442695, %v1205_v26  ;;  %v2310_v34 = vmul.f32 -1.442695, %v1207_v63 }
 0x83c   :  { %2504 = vpow2.f32 %v2308_v29  ;;  %v1241_v29 = vld [vmem:[#allocation4 + $0x88] sm:$0xff] }
 0x83d   :  { %2506 = vpow2.f32 %v2309_v32 }
 0x83e   :  { %2508 = vpow2.f32 %v2310_v34 }
 0x83f   :  { %2510 = vtanh.f32 %v1206_v37 }
 0x846   :  { %v2505_v38 = vpop.eup %2504 }
 0x847   :  { %v2507_v39 = vpop.eup %2506  ;;  %v1211_v40 = vadd.f32 1.0, %v2505_v38 }
 0x848   :  { %v1217_v11 = vadd.f32 1.0, %v2507_v39  ;;  %v2509_v12 = vpop.eup %2508  ;;  %v1245_v39 = vunpack.c.h.bf16 %v1241_v29 }
 0x849   :  { %2512 = vrcp.f32 %v1211_v40  ;;  %v2511_v14 = vpop.eup %2510  ;;  %v1224_v36 = vadd.f32 1.0, %v2509_v12 }
 0x84a   :  { %2514 = vrcp.f32 %v1217_v11  ;;  %v1244_v11 = vunpack.c.l.bf16 %v1241_v29 }
 0x84b   :  { %2516 = vrcp.f32 %v1224_v36 }
 0x853   :  { %v2513_v15 = vpop.eup %2512 }
 0x854   :  { %v2515_v16 = vpop.eup %2514  ;;  %v1228_v17 = vmul.f32 %v2513_v15, %v2511_v14 }
 0x855   :  { %v1227_v18 = vmul.f32 %v2515_v16, %v3258_v13  ;;  %v2517_v20 = vpop.eup %2516  ;;  %v1240_v13 = vld [vmem:[#allocation4 + $0x80] sm:$0xff] }
 0x856   :  { %v1242_v24 = vunpack.c.l.bf16 %v1240_v13  ;;  %v1243_v25 = vunpack.c.h.bf16 %v1240_v13 }
 0x857   :  { %v3296_v19 = vadd.f32 %v1228_v17, %v1227_v18 }
 0x859   :  { %2518 = vtanh.f32 %v3296_v19 }
 0x863   :  { %v2519_v21 = vpop.eup %2518 }
 0x864   :  { %v1231_v22 = vmul.f32 %v2519_v21, %v2517_v20 }
 0x866   :  { %v1234_v23 = vpack.c.bf16 %v1231_v22, %v1231_v22 }
 0x868   :  { %1236 = vst [vmem:[#allocation9 + $0x1c] sm:$0xf] %v1234_v23  ;;  %1280 = vmatmul.mubr.bf16.vlgmr.msra.gmra.mrb[32].mxu0 %v1234_v23  ;;  %1321 = vmatmul.mubr.bf16.vlgmr.msra.gmra.mrb[32].mxu1 %v1234_v23 }
 0x869   :  { %1373 = vmatpush1.bf16.msra.mxu0 %v3163_v41  ;;  %1414 = vmatpush1.bf16.msra.mxu1 %v3166_v43 }
 0x86a   :  { %1374 = vmatprep.subr.bf16.mxu0 %v3169_v44  ;;  %1415 = vmatprep.subr.bf16.mxu1 %v3172_v45 }
 0x86b   :  { %1404 = vmatprep.mubr.bf16.mxu0 %v2788_v0  ;;  %1445 = vmatprep.mubr.bf16.mxu1 %v2788_v0 }
 0x86d   :  { %1375 = vmatpush1.bf16.msra.mxu0 %v3177_v1  ;;  %1416 = vmatpush1.bf16.msra.mxu1 %v3180_v6 }
 0x86e   :  { %1376 = vmatprep.subr.bf16.mxu0 %v3183_v46  ;;  %1417 = vmatprep.subr.bf16.mxu1 %v3186_v35 }
 0x871   :  { %1377 = vmatpush1.bf16.msra.mxu0 %v3189_v47  ;;  %1418 = vmatpush1.bf16.msra.mxu1 %v3192_v49 }
 0x872   :  { %1378 = vmatprep.subr.bf16.mxu0 %v3195_v50  ;;  %1419 = vmatprep.subr.bf16.mxu1 %v3198_v51 }
 0x875   :  { %1379 = vmatpush1.bf16.msra.mxu0 %v3201_v52  ;;  %1420 = vmatpush1.bf16.msra.mxu1 %v3204_v42 }
 0x876   :  { %1380 = vmatprep.subr.bf16.mxu0 %v3207_v53  ;;  %1421 = vmatprep.subr.bf16.mxu1 %v3210_v55 }
 0x879   :  { %1381 = vmatpush1.bf16.msra.mxu0 %v3213_v56  ;;  %1422 = vmatpush1.bf16.msra.mxu1 %v3216_v57 }
 0x87a   :  { %1382 = vmatprep.subr.bf16.mxu0 %v3219_v58  ;;  %1423 = vmatprep.subr.bf16.mxu1 %v3222_v48 }
 0x87d   :  { %1383 = vmatpush1.bf16.msra.mxu0 %v3225_v59  ;;  %1424 = vmatpush1.bf16.msra.mxu1 %v3228_v60 }
 0x87e   :  { %1384 = vmatprep.subr.bf16.mxu0 %v3231_v61  ;;  %1425 = vmatprep.subr.bf16.mxu1 %v3234_v62 }
 0x881   :  { %1385 = vmatpush1.bf16.msra.mxu0 %v3237_v4  ;;  %1426 = vmatpush1.bf16.msra.mxu1 %v3240_v5 }
 0x882   :  { %1386 = vmatprep.subr.bf16.mxu0 %v3243_v7  ;;  %1427 = vmatprep.subr.bf16.mxu1 %v3246_v8 }
 0x885   :  { %1387 = vmatpush1.bf16.msra.mxu0 %v3249_v9  ;;  %1428 = vmatpush1.bf16.msra.mxu1 %v3252_v10 }
 0x886   :  { %1497 = vmatprep.subr.bf16.mxu0 %v3153_v2  ;;  %1538 = vmatprep.subr.bf16.mxu1 %v3156_v3 }
 0x93b   :  { %v1281_v26 = vpop.f32.mrb[32].mxu0  ;;  %v1322_v27 = vpop.f32.mrb[32].mxu1 }
 0x93c   :  { %v1329_v28 = vadd.f32 %v1281_v26, %v1242_v24  ;;  %v1283_v30 = vpop.f32.mrb[33].mxu0  ;;  %v1324_v31 = vpop.f32.mrb[33].mxu1  ;;  %v1331_v14 = vadd.f32 %v1322_v27, %v1244_v11 }
 0x93d   :  { %v1330_v32 = vadd.f32 %v1283_v30, %v1243_v25  ;;  %v1285_v54 = vpop.f32.mrb[34].mxu0  ;;  %v1326_v63 = vpop.f32.mrb[34].mxu1  ;;  %v1332_v40 = vadd.f32 %v1324_v31, %v1245_v39 }
 0x93e   :  { %v2311_v33 = vmul.f32 -1.442695, %v1329_v28  ;;  %v1286_v34 = vpop.f32.mrb[35].mxu0  ;;  %v1327_v37 = vpop.f32.mrb[35].mxu1 }
 0x93f   :  { %v2312_v38 = vmul.f32 -1.442695, %v1330_v32  ;;  %v2313_v12 = vmul.f32 -1.442695, %v1332_v40 }
 0x940   :  { %2520 = vpow2.f32 %v2311_v33  ;;  %v1366_v33 = vld [vmem:[#allocation4 + $0x98] sm:$0xff] }
 0x941   :  { %2522 = vpow2.f32 %v2312_v38 }
 0x942   :  { %2524 = vpow2.f32 %v2313_v12 }
 0x943   :  { %2526 = vtanh.f32 %v1331_v14 }
 0x94a   :  { %v2521_v15 = vpop.eup %2520 }
 0x94b   :  { %v2523_v16 = vpop.eup %2522  ;;  %v1336_v17 = vadd.f32 1.0, %v2521_v15 }
 0x94c   :  { %v1342_v36 = vadd.f32 1.0, %v2523_v16  ;;  %v2525_v18 = vpop.eup %2524  ;;  %v1370_v16 = vunpack.c.h.bf16 %v1366_v33 }
 0x94d   :  { %2528 = vrcp.f32 %v1336_v17  ;;  %v2527_v20 = vpop.eup %2526  ;;  %v1349_v13 = vadd.f32 1.0, %v2525_v18 }
 0x94e   :  { %2530 = vrcp.f32 %v1342_v36  ;;  %v1369_v36 = vunpack.c.l.bf16 %v1366_v33 }
 0x94f   :  { %2532 = vrcp.f32 %v1349_v13 }
 0x957   :  { %v2529_v21 = vpop.eup %2528 }
 0x958   :  { %v2531_v22 = vpop.eup %2530  ;;  %v1353_v23 = vmul.f32 %v2529_v21, %v2527_v20 }
 0x959   :  { %v1352_v24 = vmul.f32 %v2531_v22, %v3296_v19  ;;  %v2533_v26 = vpop.eup %2532  ;;  %v1365_v19 = vld [vmem:[#allocation4 + $0x90] sm:$0xff] }
 0x95a   :  { %v1367_v30 = vunpack.c.l.bf16 %v1365_v19  ;;  %v1368_v31 = vunpack.c.h.bf16 %v1365_v19 }
 0x95b   :  { %v3334_v25 = vadd.f32 %v1353_v23, %v1352_v24 }
 0x95d   :  { %2534 = vtanh.f32 %v3334_v25 }
 0x967   :  { %v2535_v27 = vpop.eup %2534 }
 0x968   :  { %v1356_v28 = vmul.f32 %v2535_v27, %v2533_v26 }
 0x96a   :  { %v1359_v29 = vpack.c.bf16 %v1356_v28, %v1356_v28 }
 0x96c   :  { %1361 = vst [vmem:[#allocation9 + $0x20] sm:$0xf] %v1359_v29  ;;  %1405 = vmatmul.mubr.bf16.vlgmr.msra.gmra.mrb[36].mxu0 %v1359_v29  ;;  %1446 = vmatmul.mubr.bf16.vlgmr.msra.gmra.mrb[36].mxu1 %v1359_v29 }
 0x96d   :  { %1498 = vmatpush1.bf16.msra.mxu0 %v3163_v41  ;;  %1539 = vmatpush1.bf16.msra.mxu1 %v3166_v43 }
 0x96e   :  { %1499 = vmatprep.subr.bf16.mxu0 %v3169_v44  ;;  %1540 = vmatprep.subr.bf16.mxu1 %v3172_v45 }
 0x96f   :  { %1529 = vmatprep.mubr.bf16.mxu0 %v2788_v0  ;;  %1570 = vmatprep.mubr.bf16.mxu1 %v2788_v0 }
 0x971   :  { %1500 = vmatpush1.bf16.msra.mxu0 %v3177_v1  ;;  %1541 = vmatpush1.bf16.msra.mxu1 %v3180_v6 }
 0x972   :  { %1501 = vmatprep.subr.bf16.mxu0 %v3183_v46  ;;  %1542 = vmatprep.subr.bf16.mxu1 %v3186_v35 }
 0x975   :  { %1502 = vmatpush1.bf16.msra.mxu0 %v3189_v47  ;;  %1543 = vmatpush1.bf16.msra.mxu1 %v3192_v49 }
 0x976   :  { %1503 = vmatprep.subr.bf16.mxu0 %v3195_v50  ;;  %1544 = vmatprep.subr.bf16.mxu1 %v3198_v51 }
 0x979   :  { %1504 = vmatpush1.bf16.msra.mxu0 %v3201_v52  ;;  %1545 = vmatpush1.bf16.msra.mxu1 %v3204_v42 }
 0x97a   :  { %1505 = vmatprep.subr.bf16.mxu0 %v3207_v53  ;;  %1546 = vmatprep.subr.bf16.mxu1 %v3210_v55 }
 0x97d   :  { %1506 = vmatpush1.bf16.msra.mxu0 %v3213_v56  ;;  %1547 = vmatpush1.bf16.msra.mxu1 %v3216_v57 }
 0x97e   :  { %1507 = vmatprep.subr.bf16.mxu0 %v3219_v58  ;;  %1548 = vmatprep.subr.bf16.mxu1 %v3222_v48 }
 0x981   :  { %1508 = vmatpush1.bf16.msra.mxu0 %v3225_v59  ;;  %1549 = vmatpush1.bf16.msra.mxu1 %v3228_v60 }
 0x982   :  { %1509 = vmatprep.subr.bf16.mxu0 %v3231_v61  ;;  %1550 = vmatprep.subr.bf16.mxu1 %v3234_v62 }
 0x985   :  { %1510 = vmatpush1.bf16.msra.mxu0 %v3237_v4  ;;  %1551 = vmatpush1.bf16.msra.mxu1 %v3240_v5 }
 0x986   :  { %1511 = vmatprep.subr.bf16.mxu0 %v3243_v7  ;;  %1552 = vmatprep.subr.bf16.mxu1 %v3246_v8 }
 0x989   :  { %1512 = vmatpush1.bf16.msra.mxu0 %v3249_v9  ;;  %1553 = vmatpush1.bf16.msra.mxu1 %v3252_v10 }
 0x98a   :  { %1622 = vmatprep.subr.bf16.mxu0 %v3153_v2  ;;  %1663 = vmatprep.subr.bf16.mxu1 %v3156_v3 }
 0xa3f   :  { %v1406_v32 = vpop.f32.mrb[36].mxu0  ;;  %v1447_v54 = vpop.f32.mrb[36].mxu1 }
 0xa40   :  { %v1454_v63 = vadd.f32 %v1406_v32, %v1367_v30  ;;  %v1408_v34 = vpop.f32.mrb[37].mxu0  ;;  %v1449_v37 = vpop.f32.mrb[37].mxu1  ;;  %v1456_v20 = vadd.f32 %v1447_v54, %v1369_v36 }
 0xa41   :  { %v1455_v38 = vadd.f32 %v1408_v34, %v1368_v31  ;;  %v1410_v39 = vpop.f32.mrb[38].mxu0  ;;  %v1451_v40 = vpop.f32.mrb[38].mxu1  ;;  %v1457_v17 = vadd.f32 %v1449_v37, %v1370_v16 }
 0xa42   :  { %v2314_v11 = vmul.f32 -1.442695, %v1454_v63  ;;  %v1411_v12 = vpop.f32.mrb[39].mxu0  ;;  %v1452_v14 = vpop.f32.mrb[39].mxu1 }
 0xa43   :  { %v2315_v15 = vmul.f32 -1.442695, %v1455_v38  ;;  %v2316_v18 = vmul.f32 -1.442695, %v1457_v17 }
 0xa44   :  { %2536 = vpow2.f32 %v2314_v11  ;;  %v1491_v11 = vld [vmem:[#allocation4 + $0xa8] sm:$0xff] }
 0xa45   :  { %2538 = vpow2.f32 %v2315_v15 }
 0xa46   :  { %2540 = vpow2.f32 %v2316_v18 }
 0xa47   :  { %2542 = vtanh.f32 %v1456_v20 }
 0xa4e   :  { %v2537_v21 = vpop.eup %2536 }
 0xa4f   :  { %v2539_v22 = vpop.eup %2538  ;;  %v1461_v23 = vadd.f32 1.0, %v2537_v21 }
 0xa50   :  { %v1467_v13 = vadd.f32 1.0, %v2539_v22  ;;  %v2541_v24 = vpop.eup %2540  ;;  %v1495_v22 = vunpack.c.h.bf16 %v1491_v11 }
 0xa51   :  { %2544 = vrcp.f32 %v1461_v23  ;;  %v2543_v26 = vpop.eup %2542  ;;  %v1474_v19 = vadd.f32 1.0, %v2541_v24 }
 0xa52   :  { %2546 = vrcp.f32 %v1467_v13  ;;  %v1494_v13 = vunpack.c.l.bf16 %v1491_v11 }
 0xa53   :  { %2548 = vrcp.f32 %v1474_v19 }
 0xa5b   :  { %v2545_v27 = vpop.eup %2544 }
 0xa5c   :  { %v2547_v28 = vpop.eup %2546  ;;  %v1478_v29 = vmul.f32 %v2545_v27, %v2543_v26 }
 0xa5d   :  { %v1477_v30 = vmul.f32 %v2547_v28, %v3334_v25  ;;  %v2549_v32 = vpop.eup %2548  ;;  %v1490_v25 = vld [vmem:[#allocation4 + $0xa0] sm:$0xff] }
 0xa5e   :  { %v1492_v34 = vunpack.c.l.bf16 %v1490_v25  ;;  %v1493_v37 = vunpack.c.h.bf16 %v1490_v25 }
 0xa5f   :  { %v3372_v31 = vadd.f32 %v1478_v29, %v1477_v30 }
 0xa61   :  { %2550 = vtanh.f32 %v3372_v31 }
 0xa6b   :  { %v2551_v54 = vpop.eup %2550 }
 0xa6c   :  { %v1481_v63 = vmul.f32 %v2551_v54, %v2549_v32 }
 0xa6e   :  { %v1484_v33 = vpack.c.bf16 %v1481_v63, %v1481_v63 }
 0xa70   :  { %1486 = vst [vmem:[#allocation9 + $0x24] sm:$0xf] %v1484_v33  ;;  %1530 = vmatmul.mubr.bf16.vlgmr.msra.gmra.mrb[40].mxu0 %v1484_v33  ;;  %1571 = vmatmul.mubr.bf16.vlgmr.msra.gmra.mrb[40].mxu1 %v1484_v33 }
 0xa71   :  { %1623 = vmatpush1.bf16.msra.mxu0 %v3163_v41  ;;  %1664 = vmatpush1.bf16.msra.mxu1 %v3166_v43 }
 0xa72   :  { %1624 = vmatprep.subr.bf16.mxu0 %v3169_v44  ;;  %1665 = vmatprep.subr.bf16.mxu1 %v3172_v45 }
 0xa73   :  { %1654 = vmatprep.mubr.bf16.mxu0 %v2788_v0  ;;  %1695 = vmatprep.mubr.bf16.mxu1 %v2788_v0 }
 0xa75   :  { %1625 = vmatpush1.bf16.msra.mxu0 %v3177_v1  ;;  %1666 = vmatpush1.bf16.msra.mxu1 %v3180_v6 }
 0xa76   :  { %1626 = vmatprep.subr.bf16.mxu0 %v3183_v46  ;;  %1667 = vmatprep.subr.bf16.mxu1 %v3186_v35 }
 0xa79   :  { %1627 = vmatpush1.bf16.msra.mxu0 %v3189_v47  ;;  %1668 = vmatpush1.bf16.msra.mxu1 %v3192_v49 }
 0xa7a   :  { %1628 = vmatprep.subr.bf16.mxu0 %v3195_v50  ;;  %1669 = vmatprep.subr.bf16.mxu1 %v3198_v51 }
 0xa7d   :  { %1629 = vmatpush1.bf16.msra.mxu0 %v3201_v52  ;;  %1670 = vmatpush1.bf16.msra.mxu1 %v3204_v42 }
 0xa7e   :  { %1630 = vmatprep.subr.bf16.mxu0 %v3207_v53  ;;  %1671 = vmatprep.subr.bf16.mxu1 %v3210_v55 }
 0xa81   :  { %1631 = vmatpush1.bf16.msra.mxu0 %v3213_v56  ;;  %1672 = vmatpush1.bf16.msra.mxu1 %v3216_v57 }
 0xa82   :  { %1632 = vmatprep.subr.bf16.mxu0 %v3219_v58  ;;  %1673 = vmatprep.subr.bf16.mxu1 %v3222_v48 }
 0xa85   :  { %1633 = vmatpush1.bf16.msra.mxu0 %v3225_v59  ;;  %1674 = vmatpush1.bf16.msra.mxu1 %v3228_v60 }
 0xa86   :  { %1634 = vmatprep.subr.bf16.mxu0 %v3231_v61  ;;  %1675 = vmatprep.subr.bf16.mxu1 %v3234_v62 }
 0xa89   :  { %1635 = vmatpush1.bf16.msra.mxu0 %v3237_v4  ;;  %1676 = vmatpush1.bf16.msra.mxu1 %v3240_v5 }
 0xa8a   :  { %1636 = vmatprep.subr.bf16.mxu0 %v3243_v7  ;;  %1677 = vmatprep.subr.bf16.mxu1 %v3246_v8 }
 0xa8d   :  { %1637 = vmatpush1.bf16.msra.mxu0 %v3249_v9  ;;  %1678 = vmatpush1.bf16.msra.mxu1 %v3252_v10 }
 0xa8e   :  { %1747 = vmatprep.subr.bf16.mxu0 %v3153_v2  ;;  %1788 = vmatprep.subr.bf16.mxu1 %v3156_v3 }
 0xb43   :  { %v1531_v38 = vpop.f32.mrb[40].mxu0  ;;  %v1572_v39 = vpop.f32.mrb[40].mxu1 }
 0xb44   :  { %v1579_v40 = vadd.f32 %v1531_v38, %v1492_v34  ;;  %v1533_v12 = vpop.f32.mrb[41].mxu0  ;;  %v1574_v14 = vpop.f32.mrb[41].mxu1  ;;  %v1581_v26 = vadd.f32 %v1572_v39, %v1494_v13 }
 0xb45   :  { %v1580_v15 = vadd.f32 %v1533_v12, %v1493_v37  ;;  %v1535_v16 = vpop.f32.mrb[42].mxu0  ;;  %v1576_v17 = vpop.f32.mrb[42].mxu1  ;;  %v1582_v23 = vadd.f32 %v1574_v14, %v1495_v22 }
 0xb46   :  { %v2317_v36 = vmul.f32 -1.442695, %v1579_v40  ;;  %v1536_v18 = vpop.f32.mrb[43].mxu0  ;;  %v1577_v20 = vpop.f32.mrb[43].mxu1 }
 0xb47   :  { %v2318_v21 = vmul.f32 -1.442695, %v1580_v15  ;;  %v2319_v24 = vmul.f32 -1.442695, %v1582_v23 }
 0xb48   :  { %2552 = vpow2.f32 %v2317_v36  ;;  %v1616_v36 = vld [vmem:[#allocation4 + $0xb8] sm:$0xff] }
 0xb49   :  { %2554 = vpow2.f32 %v2318_v21 }
 0xb4a   :  { %2556 = vpow2.f32 %v2319_v24 }
 0xb4b   :  { %2558 = vtanh.f32 %v1581_v26 }
 0xb52   :  { %v2553_v27 = vpop.eup %2552 }
 0xb53   :  { %v2555_v28 = vpop.eup %2554  ;;  %v1586_v29 = vadd.f32 1.0, %v2553_v27 }
 0xb54   :  { %v1592_v19 = vadd.f32 1.0, %v2555_v28  ;;  %v2557_v30 = vpop.eup %2556  ;;  %v1620_v28 = vunpack.c.h.bf16 %v1616_v36 }
 0xb55   :  { %2560 = vrcp.f32 %v1586_v29  ;;  %v2559_v32 = vpop.eup %2558  ;;  %v1599_v25 = vadd.f32 1.0, %v2557_v30 }
 0xb56   :  { %2562 = vrcp.f32 %v1592_v19 }
 0xb57   :  { %2564 = vrcp.f32 %v1599_v25 }
 0xb5f   :  { %v2561_v54 = vpop.eup %2560 }
 0xb60   :  { %v2563_v63 = vpop.eup %2562  ;;  %v1603_v33 = vmul.f32 %v2561_v54, %v2559_v32 }
 0xb61   :  { %v1602_v34 = vmul.f32 %v2563_v63, %v3372_v31  ;;  %v2565_v38 = vpop.eup %2564  ;;  %v1615_v31 = vld [vmem:[#allocation4 + $0xb0] sm:$0xff] }
 0xb62   :  { %v1617_v12 = vunpack.c.l.bf16 %v1615_v31  ;;  %v1618_v14 = vunpack.c.h.bf16 %v1615_v31 }
 0xb63   :  { %v3410_v37 = vadd.f32 %v1603_v33, %v1602_v34 }
 0xb65   :  { %2566 = vtanh.f32 %v3410_v37 }
 0xb6f   :  { %v2567_v39 = vpop.eup %2566 }
 0xb70   :  { %v1606_v40 = vmul.f32 %v2567_v39, %v2565_v38 }
 0xb72   :  { %v1609_v11 = vpack.c.bf16 %v1606_v40, %v1606_v40 }
 0xb74   :  { %1611 = vst [vmem:[#allocation9 + $0x28] sm:$0xf] %v1609_v11  ;;  %1655 = vmatmul.mubr.bf16.vlgmr.msra.gmra.mrb[44].mxu0 %v1609_v11  ;;  %1696 = vmatmul.mubr.bf16.vlgmr.msra.gmra.mrb[44].mxu1 %v1609_v11 }
 0xb75   :  { %1748 = vmatpush1.bf16.msra.mxu0 %v3163_v41  ;;  %1789 = vmatpush1.bf16.msra.mxu1 %v3166_v43 }
 0xb76   :  { %1749 = vmatprep.subr.bf16.mxu0 %v3169_v44  ;;  %1790 = vmatprep.subr.bf16.mxu1 %v3172_v45 }
 0xb77   :  { %1779 = vmatprep.mubr.bf16.mxu0 %v2788_v0  ;;  %1820 = vmatprep.mubr.bf16.mxu1 %v2788_v0 }
 0xb79   :  { %1750 = vmatpush1.bf16.msra.mxu0 %v3177_v1  ;;  %1791 = vmatpush1.bf16.msra.mxu1 %v3180_v6 }
 0xb7a   :  { %1751 = vmatprep.subr.bf16.mxu0 %v3183_v46  ;;  %1792 = vmatprep.subr.bf16.mxu1 %v3186_v35 }
 0xb7d   :  { %1752 = vmatpush1.bf16.msra.mxu0 %v3189_v47  ;;  %1793 = vmatpush1.bf16.msra.mxu1 %v3192_v49 }
 0xb7e   :  { %1753 = vmatprep.subr.bf16.mxu0 %v3195_v50  ;;  %1794 = vmatprep.subr.bf16.mxu1 %v3198_v51 }
 0xb81   :  { %1754 = vmatpush1.bf16.msra.mxu0 %v3201_v52  ;;  %1795 = vmatpush1.bf16.msra.mxu1 %v3204_v42 }
 0xb82   :  { %1755 = vmatprep.subr.bf16.mxu0 %v3207_v53  ;;  %1796 = vmatprep.subr.bf16.mxu1 %v3210_v55 }
 0xb85   :  { %1756 = vmatpush1.bf16.msra.mxu0 %v3213_v56  ;;  %1797 = vmatpush1.bf16.msra.mxu1 %v3216_v57 }
 0xb86   :  { %1757 = vmatprep.subr.bf16.mxu0 %v3219_v58  ;;  %1798 = vmatprep.subr.bf16.mxu1 %v3222_v48 }
 0xb89   :  { %1758 = vmatpush1.bf16.msra.mxu0 %v3225_v59  ;;  %1799 = vmatpush1.bf16.msra.mxu1 %v3228_v60 }
 0xb8a   :  { %1759 = vmatprep.subr.bf16.mxu0 %v3231_v61  ;;  %1800 = vmatprep.subr.bf16.mxu1 %v3234_v62 }
 0xb8d   :  { %1760 = vmatpush1.bf16.msra.mxu0 %v3237_v4  ;;  %1801 = vmatpush1.bf16.msra.mxu1 %v3240_v5 }
 0xb8e   :  { %1761 = vmatprep.subr.bf16.mxu0 %v3243_v7  ;;  %1802 = vmatprep.subr.bf16.mxu1 %v3246_v8 }
 0xb91   :  { %1762 = vmatpush1.bf16.msra.mxu0 %v3249_v9  ;;  %1803 = vmatpush1.bf16.msra.mxu1 %v3252_v10 }
 0xb92   :  { %1872 = vmatprep.subr.bf16.mxu0 %v3153_v2  ;;  %1913 = vmatprep.subr.bf16.mxu1 %v3156_v3  ;;  %v1619_v3 = vunpack.c.l.bf16 %v1616_v36 }
 0xc47   :  { %v1656_v15 = vpop.f32.mrb[44].mxu0  ;;  %v1697_v16 = vpop.f32.mrb[44].mxu1 }
 0xc48   :  { %v1704_v17 = vadd.f32 %v1656_v15, %v1617_v12  ;;  %v1658_v18 = vpop.f32.mrb[45].mxu0  ;;  %v1699_v20 = vpop.f32.mrb[45].mxu1  ;;  %v1706_v19 = vadd.f32 %v1697_v16, %v1619_v3  ;;  %v3510_v3 = vld [vmem:[#allocation7 + $0x28] ss:$16 sps:$4 sm:$0xff]  }
 0xc49   :  { %v1705_v21 = vadd.f32 %v1658_v18, %v1618_v14  ;;  %v1660_v22 = vpop.f32.mrb[46].mxu0  ;;  %v1701_v23 = vpop.f32.mrb[46].mxu1  ;;  %v1707_v2 = vadd.f32 %v1699_v20, %v1620_v28  ;;  %v3502_v28 = vld [vmem:[#allocation7 + $0x2c] ss:$16 sps:$4 sm:$0xff]  }
 0xc4a   :  { %v2320_v13 = vmul.f32 -1.442695, %v1704_v17  ;;  %v1661_v24 = vpop.f32.mrb[47].mxu0  ;;  %v1702_v26 = vpop.f32.mrb[47].mxu1 }
 0xc4b   :  { %v2321_v27 = vmul.f32 -1.442695, %v1705_v21  ;;  %v2322_v29 = vmul.f32 -1.442695, %v1707_v2  ;;  %v3493_v24 = vld [vmem:[#allocation7] ss:$16 sps:$4 sm:$0xff]  }
 0xc4c   :  { %2568 = vpow2.f32 %v2320_v13  ;;  %v3496_v26 = vld [vmem:[#allocation7 + $0x8] ss:$16 sps:$4 sm:$0xff]   ;;  %v3507_v2 = vld [vmem:[#allocation7 + $0x20] ss:$16 sps:$4 sm:$0xff]  }
 0xc4d   :  { %2570 = vpow2.f32 %v2321_v27  ;;  %v3499_v27 = vld [vmem:[#allocation7 + $0x24] ss:$16 sps:$4 sm:$0xff]  }
 0xc4e   :  { %2572 = vpow2.f32 %v2322_v29  ;;  %v3513_v29 = vld [vmem:[#allocation7 + $0x44] ss:$16 sps:$4 sm:$0xff]  }
 0xc4f   :  { %2574 = vtanh.f32 %v1706_v19  ;;  %v3516_v19 = vld [vmem:[#allocation7 + $0x4c] ss:$16 sps:$4 sm:$0xff]  }
 0xc56   :  { %v2569_v30 = vpop.eup %2568 }
 0xc57   :  { %v2571_v32 = vpop.eup %2570  ;;  %v1711_v54 = vadd.f32 1.0, %v2569_v30  ;;  %v3519_v30 = vld [vmem:[#allocation7 + $0x40] ss:$16 sps:$4 sm:$0xff]  }
 0xc58   :  { %v1717_v63 = vadd.f32 1.0, %v2571_v32  ;;  %v2573_v33 = vpop.eup %2572  ;;  %v3522_v32 = vld [vmem:[#allocation7 + $0x48] ss:$16 sps:$4 sm:$0xff]  }
 0xc59   :  { %2576 = vrcp.f32 %v1711_v54  ;;  %v2575_v25 = vpop.eup %2574  ;;  %v1724_v40 = vadd.f32 1.0, %v2573_v33  ;;  %v3525_v54 = vld [vmem:[#allocation7 + $0x64] ss:$16 sps:$4 sm:$0xff]   ;;  %v3531_v33 = vld [vmem:[#allocation7 + $0x60] ss:$16 sps:$4 sm:$0xff]  }
 0xc5a   :  { %2578 = vrcp.f32 %v1717_v63  ;;  %v3528_v63 = vld [vmem:[#allocation7 + $0x6c] ss:$16 sps:$4 sm:$0xff]  }
 0xc5b   :  { %2580 = vrcp.f32 %v1724_v40  ;;  %v3546_v40 = vld [vmem:[#allocation7 + $0x88] ss:$16 sps:$4 sm:$0xff]  }
 0xc63   :  { %v2577_v34 = vpop.eup %2576 }
 0xc64   :  { %v2579_v38 = vpop.eup %2578  ;;  %v1728_v39 = vmul.f32 %v2577_v34, %v2575_v25  ;;  %v3534_v25 = vld [vmem:[#allocation7 + $0x68] ss:$16 sps:$4 sm:$0xff]   ;;  %v3537_v34 = vld [vmem:[#allocation7 + $0x84] ss:$16 sps:$4 sm:$0xff]  }
 0xc65   :  { %v1727_v11 = vmul.f32 %v2579_v38, %v3410_v37  ;;  %v2581_v12 = vpop.eup %2580  ;;  %v3540_v38 = vld [vmem:[#allocation7 + $0x8c] ss:$16 sps:$4 sm:$0xff]  }
 0xc67   :  { %v3448_v31 = vadd.f32 %v1728_v39, %v1727_v11  ;;  %v3543_v39 = vld [vmem:[#allocation7 + $0x80] ss:$16 sps:$4 sm:$0xff]   ;;  %v3549_v11 = vld [vmem:[#allocation7 + $0xa4] ss:$16 sps:$4 sm:$0xff]  }
 0xc69   :  { %2582 = vtanh.f32 %v3448_v31 }
 0xc73   :  { %v2583_v14 = vpop.eup %2582 }
 0xc74   :  { %v1731_v15 = vmul.f32 %v2583_v14, %v2581_v12  ;;  %v3555_v12 = vld [vmem:[#allocation7 + $0xa0] ss:$16 sps:$4 sm:$0xff]   ;;  %v3558_v14 = vld [vmem:[#allocation7 + $0xa8] ss:$16 sps:$4 sm:$0xff]  }
 0xc76   :  { %v1734_v16 = vpack.c.bf16 %v1731_v15, %v1731_v15  ;;  %v3561_v15 = vld [vmem:[#allocation7 + $0xc4] ss:$16 sps:$4 sm:$0xff]  }
 0xc78   :  { %1736 = vst [vmem:[#allocation9 + $0x2c] sm:$0xf] %v1734_v16  ;;  %1780 = vmatmul.mubr.bf16.vlgmr.msra.gmra.mrb[48].mxu0 %v1734_v16  ;;  %1821 = vmatmul.mubr.bf16.vlgmr.msra.gmra.mrb[48].mxu1 %v1734_v16  ;;  %v3564_v16 = vld [vmem:[#allocation7 + $0xcc] ss:$16 sps:$4 sm:$0xff]  }
 0xc79   :  { %1873 = vmatpush1.bf16.msra.mxu0 %v3163_v41  ;;  %1914 = vmatpush1.bf16.msra.mxu1 %v3166_v43  ;;  %v3483_v41 = vld [vmem:[#allocation7 + $0x4] ss:$16 sps:$4 sm:$0xff]   ;;  %v3486_v43 = vld [vmem:[#allocation7 + $0xc] ss:$16 sps:$4 sm:$0xff]  }
 0xc7a   :  { %1874 = vmatprep.subr.bf16.mxu0 %v3169_v44  ;;  %1915 = vmatprep.subr.bf16.mxu1 %v3172_v45  ;;  %v1740_v44 = vld [vmem:[#allocation4 + $0xc0] sm:$0xff] }
 0xc7b   :  { %1904 = vmatprep.mubr.bf16.mxu0 %v2788_v0  ;;  %1945 = vmatprep.mubr.bf16.mxu1 %v2788_v0  ;;  %v1742_v45 = vunpack.c.l.bf16 %v1740_v44 }
 0xc7d   :  { %1875 = vmatpush1.bf16.msra.mxu0 %v3177_v1  ;;  %1916 = vmatpush1.bf16.msra.mxu1 %v3180_v6  ;;  %v1743_v1 = vunpack.c.h.bf16 %v1740_v44  ;;  %v3567_v44 = vld [vmem:[#allocation7 + $0xc0] ss:$16 sps:$4 sm:$0xff]  }
 0xc7e   :  { %1876 = vmatprep.subr.bf16.mxu0 %v3183_v46  ;;  %1917 = vmatprep.subr.bf16.mxu1 %v3186_v35 }
 0xc81   :  { %1877 = vmatpush1.bf16.msra.mxu0 %v3189_v47  ;;  %1918 = vmatpush1.bf16.msra.mxu1 %v3192_v49  ;;  %v1741_v47 = vld [vmem:[#allocation4 + $0xc8] sm:$0xff] }
 0xc82   :  { %1878 = vmatprep.subr.bf16.mxu0 %v3195_v50  ;;  %1919 = vmatprep.subr.bf16.mxu1 %v3198_v51 }
 0xc85   :  { %1879 = vmatpush1.bf16.msra.mxu0 %v3201_v52  ;;  %1920 = vmatpush1.bf16.msra.mxu1 %v3204_v42 }
 0xc86   :  { %1880 = vmatprep.subr.bf16.mxu0 %v3207_v53  ;;  %1921 = vmatprep.subr.bf16.mxu1 %v3210_v55 }
 0xc89   :  { %1881 = vmatpush1.bf16.msra.mxu0 %v3213_v56  ;;  %1922 = vmatpush1.bf16.msra.mxu1 %v3216_v57 }
 0xc8a   :  { %1882 = vmatprep.subr.bf16.mxu0 %v3219_v58  ;;  %1923 = vmatprep.subr.bf16.mxu1 %v3222_v48  ;;  %v1745_v58 = vunpack.c.h.bf16 %v1741_v47 }
 0xc8d   :  { %1883 = vmatpush1.bf16.msra.mxu0 %v3225_v59  ;;  %1924 = vmatpush1.bf16.msra.mxu1 %v3228_v60  ;;  %v1744_v59 = vunpack.c.l.bf16 %v1741_v47  ;;  %v1865_v47 = vld [vmem:[#allocation4 + $0xd0] sm:$0xff] }
 0xc8e   :  { %1884 = vmatprep.subr.bf16.mxu0 %v3231_v61  ;;  %1925 = vmatprep.subr.bf16.mxu1 %v3234_v62 }
 0xc91   :  { %1885 = vmatpush1.bf16.msra.mxu0 %v3237_v4  ;;  %1926 = vmatpush1.bf16.msra.mxu1 %v3240_v5 }
 0xc92   :  { %1886 = vmatprep.subr.bf16.mxu0 %v3243_v7  ;;  %1927 = vmatprep.subr.bf16.mxu1 %v3246_v8 }
 0xc95   :  { %1887 = vmatpush1.bf16.msra.mxu0 %v3249_v9  ;;  %1928 = vmatpush1.bf16.msra.mxu1 %v3252_v10 }
 0xc96   :  { %1997 = vmatprep.subr.bf16.mxu0 %v3483_v41  ;;  %2038 = vmatprep.subr.bf16.mxu1 %v3486_v43 }
 0xd4b   :  { %v1781_v6 = vpop.f32.mrb[48].mxu0  ;;  %v1822_v46 = vpop.f32.mrb[48].mxu1 }
 0xd4c   :  { %v1829_v35 = vadd.f32 %v1781_v6, %v1742_v45  ;;  %v1783_v49 = vpop.f32.mrb[49].mxu0  ;;  %v1824_v50 = vpop.f32.mrb[49].mxu1  ;;  %v1831_v61 = vadd.f32 %v1822_v46, %v1744_v59  ;;  %v3570_v45 = vld [vmem:[#allocation7 + $0xc8] ss:$16 sps:$4 sm:$0xff]   ;;  %v3576_v6 = vld [vmem:[#allocation7 + $0xec] ss:$16 sps:$4 sm:$0xff]  }
 0xd4d   :  { %v1830_v51 = vadd.f32 %v1783_v49, %v1743_v1  ;;  %v1785_v52 = vpop.f32.mrb[50].mxu0  ;;  %v1826_v42 = vpop.f32.mrb[50].mxu1  ;;  %v1832_v48 = vadd.f32 %v1824_v50, %v1745_v58  ;;  %v3573_v1 = vld [vmem:[#allocation7 + $0xe4] ss:$16 sps:$4 sm:$0xff]   ;;  %v3579_v46 = vld [vmem:[#allocation7 + $0xe0] ss:$16 sps:$4 sm:$0xff]   ;;  %v1867_v49 = vunpack.c.l.bf16 %v1865_v47  ;;  %v1868_v50 = vunpack.c.h.bf16 %v1865_v47 }
 0xd4e   :  { %v2323_v53 = vmul.f32 -1.442695, %v1829_v35  ;;  %v1786_v55 = vpop.f32.mrb[51].mxu0  ;;  %v1827_v56 = vpop.f32.mrb[51].mxu1  ;;  %v3582_v35 = vld [vmem:[#allocation7 + $0xe8] ss:$16 sps:$4 sm:$0xff]  }
 0xd4f   :  { %v2324_v57 = vmul.f32 -1.442695, %v1830_v51  ;;  %v2325_v60 = vmul.f32 -1.442695, %v1832_v48 }
 0xd50   :  { %2584 = vpow2.f32 %v2323_v53  ;;  %v1866_v53 = vld [vmem:[#allocation4 + $0xd8] sm:$0xff] }
 0xd51   :  { %2586 = vpow2.f32 %v2324_v57 }
 0xd52   :  { %2588 = vpow2.f32 %v2325_v60 }
 0xd53   :  { %2590 = vtanh.f32 %v1831_v61 }
 0xd5a   :  { %v2585_v62 = vpop.eup %2584 }
 0xd5b   :  { %v2587_v4 = vpop.eup %2586  ;;  %v1836_v5 = vadd.f32 1.0, %v2585_v62 }
 0xd5c   :  { %v1842_v7 = vadd.f32 1.0, %v2587_v4  ;;  %v2589_v8 = vpop.eup %2588  ;;  %v1870_v4 = vunpack.c.h.bf16 %v1866_v53 }
 0xd5d   :  { %2592 = vrcp.f32 %v1836_v5  ;;  %v2591_v9 = vpop.eup %2590  ;;  %v1849_v36 = vadd.f32 1.0, %v2589_v8 }
 0xd5e   :  { %2594 = vrcp.f32 %v1842_v7 }
 0xd5f   :  { %2596 = vrcp.f32 %v1849_v36 }
 0xd67   :  { %v2593_v10 = vpop.eup %2592 }
 0xd68   :  { %v2595_v37 = vpop.eup %2594  ;;  %v1853_v17 = vmul.f32 %v2593_v10, %v2591_v9 }
 0xd69   :  { %v1852_v18 = vmul.f32 %v2595_v37, %v3448_v31  ;;  %v2597_v21 = vpop.eup %2596  ;;  %v3552_v31 = vld [vmem:[#allocation7 + $0xac] ss:$16 sps:$4 sm:$0xff]  }
 0xd6b   :  { %v3490_v20 = vadd.f32 %v1853_v17, %v1852_v18 }
 0xd6d   :  { %2598 = vtanh.f32 %v3490_v20 }
 0xd77   :  { %v2599_v22 = vpop.eup %2598 }
 0xd78   :  { %v1856_v23 = vmul.f32 %v2599_v22, %v2597_v21 }
 0xd7a   :  { %v1859_v13 = vpack.c.bf16 %v1856_v23, %v1856_v23 }
 0xd7c   :  { %1861 = vst [vmem:[#allocation9 + $0x30] sm:$0xf] %v1859_v13  ;;  %1905 = vmatmul.mubr.bf16.vlgmr.msra.gmra.mrb[52].mxu0 %v1859_v13  ;;  %1946 = vmatmul.mubr.bf16.vlgmr.msra.gmra.mrb[52].mxu1 %v1859_v13 }
 0xd7d   :  { %1998 = vmatpush1.bf16.msra.mxu0 %v3493_v24  ;;  %2039 = vmatpush1.bf16.msra.mxu1 %v3496_v26 }
 0xd7e   :  { %1999 = vmatprep.subr.bf16.mxu0 %v3499_v27  ;;  %2040 = vmatprep.subr.bf16.mxu1 %v3502_v28 }
 0xd7f   :  { %2029 = vmatprep.mubr.bf16.mxu0 %v2788_v0  ;;  %2070 = vmatprep.mubr.bf16.mxu1 %v2788_v0 }
 0xd81   :  { %2000 = vmatpush1.bf16.msra.mxu0 %v3507_v2  ;;  %2041 = vmatpush1.bf16.msra.mxu1 %v3510_v3 }
 0xd82   :  { %2001 = vmatprep.subr.bf16.mxu0 %v3513_v29  ;;  %2042 = vmatprep.subr.bf16.mxu1 %v3516_v19 }
 0xd85   :  { %2002 = vmatpush1.bf16.msra.mxu0 %v3519_v30  ;;  %2043 = vmatpush1.bf16.msra.mxu1 %v3522_v32 }
 0xd86   :  { %2003 = vmatprep.subr.bf16.mxu0 %v3525_v54  ;;  %2044 = vmatprep.subr.bf16.mxu1 %v3528_v63 }
 0xd89   :  { %2004 = vmatpush1.bf16.msra.mxu0 %v3531_v33  ;;  %2045 = vmatpush1.bf16.msra.mxu1 %v3534_v25 }
 0xd8a   :  { %2005 = vmatprep.subr.bf16.mxu0 %v3537_v34  ;;  %2046 = vmatprep.subr.bf16.mxu1 %v3540_v38 }
 0xd8d   :  { %2006 = vmatpush1.bf16.msra.mxu0 %v3543_v39  ;;  %2047 = vmatpush1.bf16.msra.mxu1 %v3546_v40 }
 0xd8e   :  { %2007 = vmatprep.subr.bf16.mxu0 %v3549_v11  ;;  %2048 = vmatprep.subr.bf16.mxu1 %v3552_v31 }
 0xd91   :  { %2008 = vmatpush1.bf16.msra.mxu0 %v3555_v12  ;;  %2049 = vmatpush1.bf16.msra.mxu1 %v3558_v14 }
 0xd92   :  { %2009 = vmatprep.subr.bf16.mxu0 %v3561_v15  ;;  %2050 = vmatprep.subr.bf16.mxu1 %v3564_v16 }
 0xd95   :  { %2010 = vmatpush1.bf16.msra.mxu0 %v3567_v44  ;;  %2051 = vmatpush1.bf16.msra.mxu1 %v3570_v45 }
 0xd96   :  { %2011 = vmatprep.subr.bf16.mxu0 %v3573_v1  ;;  %2052 = vmatprep.subr.bf16.mxu1 %v3576_v6 }
 0xd99   :  { %2012 = vmatpush1.bf16.msra.mxu0 %v3579_v46  ;;  %2053 = vmatpush1.bf16.msra.mxu1 %v3582_v35 }
 0xd9a   :  { %2122 = vmatprep.subr.bf16.mxu0 %v3483_v41  ;;  %2163 = vmatprep.subr.bf16.mxu1 %v3486_v43  ;;  %v1869_v43 = vunpack.c.l.bf16 %v1866_v53 }
 0xe4f   :  { %v1906_v51 = vpop.f32.mrb[52].mxu0  ;;  %v1947_v52 = vpop.f32.mrb[52].mxu1 }
 0xe50   :  { %v1954_v42 = vadd.f32 %v1906_v51, %v1867_v49  ;;  %v1908_v55 = vpop.f32.mrb[53].mxu0  ;;  %v1949_v56 = vpop.f32.mrb[53].mxu1  ;;  %v1956_v7 = vadd.f32 %v1947_v52, %v1869_v43 }
 0xe51   :  { %v1955_v57 = vadd.f32 %v1908_v55, %v1868_v50  ;;  %v1910_v58 = vpop.f32.mrb[54].mxu0  ;;  %v1951_v48 = vpop.f32.mrb[54].mxu1  ;;  %v1957_v41 = vadd.f32 %v1949_v56, %v1870_v4  ;;  %v2116_v4 = vld [vmem:[#allocation4 + $0xf8] sm:$0xff] }
 0xe52   :  { %v2326_v59 = vmul.f32 -1.442695, %v1954_v42  ;;  %v1911_v60 = vpop.f32.mrb[55].mxu0  ;;  %v1952_v61 = vpop.f32.mrb[55].mxu1  ;;  %v2115_v58 = vld [vmem:[#allocation4 + $0xf0] sm:$0xff] }
 0xe53   :  { %v2327_v62 = vmul.f32 -1.442695, %v1955_v57  ;;  %v2328_v5 = vmul.f32 -1.442695, %v1957_v41  ;;  %v2117_v48 = vunpack.c.l.bf16 %v2115_v58 }
 0xe54   :  { %2600 = vpow2.f32 %v2326_v59  ;;  %v2118_v59 = vunpack.c.h.bf16 %v2115_v58 }
 0xe55   :  { %2602 = vpow2.f32 %v2327_v62 }
 0xe56   :  { %2604 = vpow2.f32 %v2328_v5 }
 0xe57   :  { %2606 = vtanh.f32 %v1956_v7 }
 0xe5e   :  { %v2601_v8 = vpop.eup %2600 }
 0xe5f   :  { %v2603_v9 = vpop.eup %2602  ;;  %v1961_v10 = vadd.f32 1.0, %v2601_v8 }
 0xe60   :  { %v1967_v37 = vadd.f32 1.0, %v2603_v9  ;;  %v2605_v17 = vpop.eup %2604 }
 0xe61   :  { %2608 = vrcp.f32 %v1961_v10  ;;  %v2607_v36 = vpop.eup %2606  ;;  %v1974_v23 = vadd.f32 1.0, %v2605_v17 }
 0xe62   :  { %2610 = vrcp.f32 %v1967_v37 }
 0xe63   :  { %2612 = vrcp.f32 %v1974_v23 }
 0xe6b   :  { %v2609_v18 = vpop.eup %2608 }
 0xe6c   :  { %v2611_v21 = vpop.eup %2610  ;;  %v1978_v22 = vmul.f32 %v2609_v18, %v2607_v36  ;;  %v2120_v36 = vunpack.c.h.bf16 %v2116_v4 }
 0xe6d   :  { %v1977_v13 = vmul.f32 %v2611_v21, %v3490_v20  ;;  %v2613_v49 = vpop.eup %2612  ;;  %v2119_v21 = vunpack.c.l.bf16 %v2116_v4 }
 0xe6f   :  { %v3588_v47 = vadd.f32 %v1978_v22, %v1977_v13 }
 0xe71   :  { %2614 = vtanh.f32 %v3588_v47 }
 0xe7b   :  { %v2615_v50 = vpop.eup %2614 }
 0xe7c   :  { %v1981_v51 = vmul.f32 %v2615_v50, %v2613_v49 }
 0xe7e   :  { %v1984_v52 = vpack.c.bf16 %v1981_v51, %v1981_v51 }
 0xe80   :  { %1986 = vst [vmem:[#allocation9 + $0x34] sm:$0xf] %v1984_v52  ;;  %2030 = vmatmul.mubr.bf16.vlgmr.msra.gmra.mrb[56].mxu0 %v1984_v52  ;;  %2071 = vmatmul.mubr.bf16.vlgmr.msra.gmra.mrb[56].mxu1 %v1984_v52 }
 0xe81   :  { %2123 = vmatpush1.bf16.msra.mxu0 %v3493_v24  ;;  %2164 = vmatpush1.bf16.msra.mxu1 %v3496_v26 }
 0xe82   :  { %2124 = vmatprep.subr.bf16.mxu0 %v3499_v27  ;;  %2165 = vmatprep.subr.bf16.mxu1 %v3502_v28 }
 0xe83   :  { %2154 = vmatprep.mubr.bf16.mxu0 %v2788_v0  ;;  %2195 = vmatprep.mubr.bf16.mxu1 %v2788_v0  ;;  %v1990_v0 = vld [vmem:[#allocation4 + $0xe0] sm:$0xff] }
 0xe84   :  { %v1992_v20 = vunpack.c.l.bf16 %v1990_v0  ;;  %v1993_v24 = vunpack.c.h.bf16 %v1990_v0 }
 0xe85   :  { %2125 = vmatpush1.bf16.msra.mxu0 %v3507_v2  ;;  %2166 = vmatpush1.bf16.msra.mxu1 %v3510_v3  ;;  %v1991_v2 = vld [vmem:[#allocation4 + $0xe8] sm:$0xff] }
 0xe86   :  { %2126 = vmatprep.subr.bf16.mxu0 %v3513_v29  ;;  %2167 = vmatprep.subr.bf16.mxu1 %v3516_v19 }
 0xe89   :  { %2127 = vmatpush1.bf16.msra.mxu0 %v3519_v30  ;;  %2168 = vmatpush1.bf16.msra.mxu1 %v3522_v32 }
 0xe8a   :  { %2128 = vmatprep.subr.bf16.mxu0 %v3525_v54  ;;  %2169 = vmatprep.subr.bf16.mxu1 %v3528_v63 }
 0xe8d   :  { %2129 = vmatpush1.bf16.msra.mxu0 %v3531_v33  ;;  %2170 = vmatpush1.bf16.msra.mxu1 %v3534_v25 }
 0xe8e   :  { %2130 = vmatprep.subr.bf16.mxu0 %v3537_v34  ;;  %2171 = vmatprep.subr.bf16.mxu1 %v3540_v38  ;;  %v1995_v34 = vunpack.c.h.bf16 %v1991_v2 }
 0xe91   :  { %2131 = vmatpush1.bf16.msra.mxu0 %v3543_v39  ;;  %2172 = vmatpush1.bf16.msra.mxu1 %v3546_v40  ;;  %v1994_v39 = vunpack.c.l.bf16 %v1991_v2 }
 0xe92   :  { %2132 = vmatprep.subr.bf16.mxu0 %v3549_v11  ;;  %2173 = vmatprep.subr.bf16.mxu1 %v3552_v31 }
 0xe95   :  { %2133 = vmatpush1.bf16.msra.mxu0 %v3555_v12  ;;  %2174 = vmatpush1.bf16.msra.mxu1 %v3558_v14 }
 0xe96   :  { %2134 = vmatprep.subr.bf16.mxu0 %v3561_v15  ;;  %2175 = vmatprep.subr.bf16.mxu1 %v3564_v16 }
 0xe99   :  { %2135 = vmatpush1.bf16.msra.mxu0 %v3567_v44  ;;  %2176 = vmatpush1.bf16.msra.mxu1 %v3570_v45 }
 0xe9a   :  { %2136 = vmatprep.subr.bf16.mxu0 %v3573_v1  ;;  %2177 = vmatprep.subr.bf16.mxu1 %v3576_v6 }
 0xe9d   :  { %2137 = vmatpush1.bf16.msra.mxu0 %v3579_v46  ;;  %2178 = vmatpush1.bf16.msra.mxu1 %v3582_v35 }
 0xf53   :  { %v2031_v26 = vpop.f32.mrb[56].mxu0  ;;  %v2072_v27 = vpop.f32.mrb[56].mxu1 }
 0xf54   :  { %v2079_v28 = vadd.f32 %v2031_v26, %v1992_v20  ;;  %v2033_v3 = vpop.f32.mrb[57].mxu0  ;;  %v2074_v29 = vpop.f32.mrb[57].mxu1  ;;  %v2081_v11 = vadd.f32 %v2072_v27, %v1994_v39 }
 0xf55   :  { %v2080_v19 = vadd.f32 %v2033_v3, %v1993_v24  ;;  %v2035_v30 = vpop.f32.mrb[58].mxu0  ;;  %v2076_v32 = vpop.f32.mrb[58].mxu1  ;;  %v2082_v38 = vadd.f32 %v2074_v29, %v1995_v34 }
 0xf56   :  { %v2329_v54 = vmul.f32 -1.442695, %v2079_v28  ;;  %v2036_v63 = vpop.f32.mrb[59].mxu0  ;;  %v2077_v33 = vpop.f32.mrb[59].mxu1 }
 0xf57   :  { %v2330_v25 = vmul.f32 -1.442695, %v2080_v19  ;;  %v2331_v40 = vmul.f32 -1.442695, %v2082_v38 }
 0xf58   :  { %2616 = vpow2.f32 %v2329_v54 }
 0xf59   :  { %2618 = vpow2.f32 %v2330_v25 }
 0xf5a   :  { %2620 = vpow2.f32 %v2331_v40 }
 0xf5b   :  { %2622 = vtanh.f32 %v2081_v11 }
 0xf62   :  { %v2617_v31 = vpop.eup %2616 }
 0xf63   :  { %v2619_v12 = vpop.eup %2618  ;;  %v2086_v14 = vadd.f32 1.0, %v2617_v31 }
 0xf64   :  { %v2092_v15 = vadd.f32 1.0, %v2619_v12  ;;  %v2621_v16 = vpop.eup %2620 }
 0xf65   :  { %2624 = vrcp.f32 %v2086_v14  ;;  %v2623_v44 = vpop.eup %2622  ;;  %v2099_v46 = vadd.f32 1.0, %v2621_v16 }
 0xf66   :  { %2626 = vrcp.f32 %v2092_v15 }
 0xf67   :  { %2628 = vrcp.f32 %v2099_v46 }
 0xf6f   :  { %v2625_v45 = vpop.eup %2624 }
 0xf70   :  { %v2627_v1 = vpop.eup %2626  ;;  %v2103_v6 = vmul.f32 %v2625_v45, %v2623_v44 }
 0xf71   :  { %v2102_v35 = vmul.f32 %v2627_v1, %v3588_v47  ;;  %v2629_v53 = vpop.eup %2628 }
 0xf73   :  { %v2104_v42 = vadd.f32 %v2103_v6, %v2102_v35 }
 0xf75   :  { %2630 = vtanh.f32 %v2104_v42 }
 0xf7f   :  { %v2631_v55 = vpop.eup %2630 }
 0xf80   :  { %v2106_v56 = vmul.f32 %v2631_v55, %v2629_v53 }
 0xf82   :  { %v2109_v57 = vpack.c.bf16 %v2106_v56, %v2106_v56 }
 0xf84   :  { %2111 = vst [vmem:[#allocation9 + $0x38] sm:$0xf] %v2109_v57  ;;  %2155 = vmatmul.mubr.bf16.vlgmr.msra.gmra.mrb[60].mxu0 %v2109_v57  ;;  %2196 = vmatmul.mubr.bf16.vlgmr.msra.gmra.mrb[60].mxu1 %v2109_v57 }
0x1057   :  { %v2156_v60 = vpop.f32.mrb[60].mxu0  ;;  %v2197_v61 = vpop.f32.mrb[60].mxu1 }
0x1058   :  { %v2204_v62 = vadd.f32 %v2156_v60, %v2117_v48  ;;  %v2158_v41 = vpop.f32.mrb[61].mxu0  ;;  %v2199_v43 = vpop.f32.mrb[61].mxu1  ;;  %v2206_v23 = vadd.f32 %v2197_v61, %v2119_v21 }
0x1059   :  { %v2205_v5 = vadd.f32 %v2158_v41, %v2118_v59  ;;  %v2160_v7 = vpop.f32.mrb[62].mxu0  ;;  %v2201_v8 = vpop.f32.mrb[62].mxu1  ;;  %v2207_v18 = vadd.f32 %v2199_v43, %v2120_v36 }
0x105a   :  { %v2332_v9 = vmul.f32 -1.442695, %v2204_v62  ;;  %v2161_v10 = vpop.f32.mrb[63].mxu0  ;;  %v2202_v37 = vpop.f32.mrb[63].mxu1 }
0x105b   :  { %v2333_v17 = vmul.f32 -1.442695, %v2205_v5  ;;  %v2334_v22 = vmul.f32 -1.442695, %v2207_v18 }
0x105c   :  { %2632 = vpow2.f32 %v2332_v9 }
0x105d   :  { %2634 = vpow2.f32 %v2333_v17 }
0x105e   :  { %2636 = vpow2.f32 %v2334_v22 }
0x105f   :  { %2638 = vtanh.f32 %v2206_v23 }
0x1066   :  { %v2633_v13 = vpop.eup %2632 }
0x1067   :  { %v2635_v47 = vpop.eup %2634  ;;  %v2211_v49 = vadd.f32 1.0, %v2633_v13 }
0x1068   :  { %v2217_v50 = vadd.f32 1.0, %v2635_v47  ;;  %v2637_v51 = vpop.eup %2636 }
0x1069   :  { %2640 = vrcp.f32 %v2211_v49  ;;  %v2639_v52 = vpop.eup %2638  ;;  %v2224_v26 = vadd.f32 1.0, %v2637_v51 }
0x106a   :  { %2642 = vrcp.f32 %v2217_v50 }
0x106b   :  { %2644 = vrcp.f32 %v2224_v26 }
0x1073   :  { %v2641_v0 = vpop.eup %2640 }
0x1074   :  { %v2643_v20 = vpop.eup %2642  ;;  %v2228_v24 = vmul.f32 %v2641_v0, %v2639_v52 }
0x1075   :  { %v2227_v27 = vmul.f32 %v2643_v20, %v2104_v42  ;;  %v2645_v2 = vpop.eup %2644 }
0x1077   :  { %v2229_v28 = vadd.f32 %v2228_v24, %v2227_v27 }
0x1079   :  { %2646 = vtanh.f32 %v2229_v28 }
0x1083   :  { %v2647_v3 = vpop.eup %2646 }
0x1084   :  { %v2231_v29 = vmul.f32 %v2647_v3, %v2645_v2 }
0x1086   :  { %v2234_v19 = vpack.c.bf16 %v2231_v29, %v2231_v29 }
0x1088   :  { %2236 = vst [vmem:[#allocation9 + $0x3c] sm:$0xf] %v2234_v19 }
0x1089   :  { %2767 = shalt.err (!%p2764_p6)
}
0x108a   :  { %s2768_s10 = scalar_lea.hbm %s3638_s2, 1024 }
0x108b   :  { %p2769_p7 = scmp.ne.s32.totalorder %s3638_s2, %s2768_s10  ;;  %p2772_p8 = scmp.lt.u32.totalorder %s2768_s10, %s3638_s2 }
0x108d   :  { %p2774_p9 = pnand %p2772_p8, %p2769_p7 }
0x108f   :  { %2777 = shalt.err (!%p2774_p9)
}
0x1090   :  { %s2791_s15 = smov 64   ;;  %s2792_s16 = smov 4  }
0x1091   :  { %2248 = dma.vmem_to_hbm [thread:$0]  %s2243_s6, 1024, %s3638_s2, [#allocation6], %s2791_s15, %s2791_s15, %s2792_s16  }
0x1092   :  { %2782 = dma.done.wait [#allocation6], 1024  }
0x1093   :  { %2783 = vsyncadd [#allocation6], 4294966272 }
0x1094   :  { %2252 = vsyncpa [#allocation5], 1 }
0x1095   :  { %2253 = vsyncpa [#allocation8], 1 }
0x1096   :  { %2254 = vsyncpa [#allocation6], 1 }

</bundles_post_ra>
